<compile_context>
chip_gen: v7x
topology: tpu7x:2x2x1
jax: 0.10.0
libtpu: 0.0.40
codegen_flags: <defaults>
</compile_context>

<pallas_src>
import functools

import jax
import jax.numpy as jnp
from jax.experimental import pallas as pl
from jax.experimental.pallas import tpu as pltpu

# ----------------------------- synthetic config ------------------------------
IN_CHANNELS = 4
BASE_CHANNELS = 8
TIME_EMB_DIM = 32
CFPG_ENABLED = False
USE_CAUSAL_ROUTING = False

# name, spatial, cin, cout, split (channels of the first torch.cat part)
_BLOCKS = (
    ("res1", 16, IN_CHANNELS, BASE_CHANNELS, None),
    ("down1", 8, BASE_CHANNELS, 2 * BASE_CHANNELS, None),
    ("down2", 4, 2 * BASE_CHANNELS, 4 * BASE_CHANNELS, None),
    ("mid1", 4, 4 * BASE_CHANNELS, 4 * BASE_CHANNELS, None),
    ("mid2", 4, 4 * BASE_CHANNELS, 4 * BASE_CHANNELS, None),
    ("up2", 8, 6 * BASE_CHANNELS, 2 * BASE_CHANNELS, 4 * BASE_CHANNELS),
    ("up1", 16, 3 * BASE_CHANNELS, BASE_CHANNELS, 2 * BASE_CHANNELS),
)


# ================================ fused kernel ================================
def _fused_unet_kernel(x_ref, e16_ref, e8_ref, e4_ref,
                       wk64_ref, wk128_ref, wk256_ref, bias_ref,
                       p1r_ref, p2r_ref, uar_ref, ubr_ref,
                       o_ref, *, meta):
    """Whole UNet forward for Bt stacked samples; everything stays in VMEM."""
    f32 = jnp.float32
    bf16 = jnp.bfloat16
    bt = meta["bt"]
    wrefs = {64: wk64_ref, 128: wk128_ref, 256: wk256_ref}

    def Wt(k, name):                          # bf16 weight slice from packed slab
        off, width = meta["w"][k][name]
        return wrefs[k][:, off:off + width]

    def Bv(name):                             # (1,128) f32 bias slice
        off = meta["b"][name]
        return bias_ref[:, off:off + 128]

    def mm(a, b):                             # bf16 MXU matmul, f32 accumulate
        return jnp.dot(a.astype(bf16), b, preferred_element_type=f32)

    def silu(v):
        return v * jax.nn.sigmoid(v)

    # Per-resolution edge masks: zero the conv row-taps that cross a sample's
    # top/bottom edge (this also kills the wrap introduced by pltpu.roll).
    def edge_masks(sp):
        rows = bt * sp
        r = jax.lax.broadcasted_iota(jnp.int32, (rows, 128), 0) % sp
        return (r != 0).astype(f32), (r != sp - 1).astype(f32)

    masks = {sp: edge_masks(sp) for sp in (16, 8, 4)}

    def conv_bands(acc, sp, bias):
        # acc[:, 0:384] = [dy0 | dy1 | dy2] band contributions of each input row.
        top, bot = masks[sp]
        rows = bt * sp
        lo = pltpu.roll(acc[:, 0:128], 1, 0) * top            # out[y] += band0[y-1]
        hi = pltpu.roll(acc[:, 256:384], rows - 1, 0) * bot   # out[y] += band2[y+1]
        return lo + acc[:, 128:256] + hi + bias

    def res_block(name, parts, sp, emb, identity_skip=False):
        # parts: [(slab, K, weight-suffix)] — channel-split inputs of torch.cat.
        # First conv + 1x1 skip conv are fused into one (K, 512) matmul.
        acc = None
        for slab, k, suf in parts:
            a = mm(slab, Wt(k, name + "_c1" + suf))
            acc = a if acc is None else acc + a
        h = silu(conv_bands(acc, sp, Bv(name + "_b1"))) + emb
        a2 = mm(h, Wt(128, name + "_c2"))
        h = silu(conv_bands(a2, sp, Bv(name + "_b2")))
        if identity_skip:
            return h + parts[0][0]
        return h + acc[:, 384:512] + Bv(name + "_skb")

    def maxpool(slab, sp, ch, colname, rowsel_ref):
        # 2x2 maxpool: W-direction via a fused [even|odd] 0/1 matmul + max,
        # H-direction via sublane roll + pairwise max + even-row selection.
        rows = bt * sp
        n2 = (sp // 2) * ch
        cm = mm(slab, Wt(128, colname))                       # (rows, 2*n2)
        mw = jnp.maximum(cm[:, 0:n2], cm[:, n2:2 * n2])
        mh = jnp.maximum(mw, pltpu.roll(mw, rows - 1, 0))     # pair-max at even rows
        return jnp.dot(rowsel_ref[...], mh.astype(bf16), preferred_element_type=f32)

    def upsample(slab, colname, rowdup_ref):
        # nearest 2x: lane duplication via 0/1 matmul, row duplication via a
        # small batch-block-diagonal 0/1 left matmul.
        cm = mm(slab, Wt(128, colname))
        return jnp.dot(rowdup_ref[...], cm.astype(bf16), preferred_element_type=f32)

    # ------------------------------ UNet forward ------------------------------
    x = x_ref[0]                                              # (bt*16, 64) bf16
    e16 = e16_ref[0]                                          # (bt*16, 256) f32
    e8 = e8_ref[0]                                            # (bt*8, 256)
    e4 = e4_ref[0]                                            # (bt*4, 384)

    h1 = res_block("res1", [(x, 64, "")], 16, e16[:, 0:128])                 # (bt*16,128)
    p1 = maxpool(h1, 16, BASE_CHANNELS, "pool1_col", p1r_ref)                # (bt*8, 64)
    h2 = res_block("down1", [(p1, 64, "")], 8, e8[:, 0:128])                 # (bt*8, 128)
    p2 = maxpool(h2, 8, 2 * BASE_CHANNELS, "pool2_col", p2r_ref)             # (bt*4, 64)
    h3 = res_block("down2", [(p2, 64, "")], 4, e4[:, 0:128])                 # (bt*4, 128)
    h3 = res_block("mid1", [(h3, 128, "")], 4, e4[:, 128:256], identity_skip=True)
    h3 = res_block("mid2", [(h3, 128, "")], 4, e4[:, 256:384], identity_skip=True)

    h3u = upsample(h3, "upa_col", uar_ref)                                   # (bt*8, 256)
    h2u = res_block("up2", [(h3u, 256, "_a"), (h2, 128, "_b")], 8, e8[:, 128:256])
    h2uu = upsample(h2u, "upb_col", ubr_ref)                                 # (bt*16, 256)
    h1u = res_block("up1", [(h2uu, 256, "_a"), (h1, 128, "_b")], 16, e16[:, 128:256])

    y = mm(h1u, Wt(128, "out")) + Bv("out_b")                                # (bt*16, 128)
    o_ref[0] = y.astype(o_ref.dtype)


# ============================ weight pre-packing ==============================
def _band_conv(w, sp):
    """(3,3,Cin,Cout) -> (sp*Cin, 3*sp*Cout): im2col along W + zero padding
    folded into the weight; columns are [dy=0 | dy=1 | dy=2] bands."""
    _, _, cin, cout = w.shape
    wp = jnp.arange(sp)[:, None]
    wo = jnp.arange(sp)[None, :]
    bands = []
    for dy in range(3):
        acc = jnp.zeros((sp, cin, sp, cout), w.dtype)
        for dx in range(3):
            sel = (wp == wo + dx - 1).astype(w.dtype)
            acc = acc + sel[:, None, :, None] * w[dy, dx][None, :, None, :]
        bands.append(acc.reshape(sp * cin, sp * cout))
    return jnp.concatenate(bands, axis=1)


def _blockdiag(w, sp):
    """(Cin, Cout) 1x1-conv weight -> (sp*Cin, sp*Cout) block-diagonal slab weight."""
    cin, cout = w.shape
    eye = jnp.eye(sp, dtype=w.dtype)
    return (eye[:, None, :, None] * w[None, :, None, :]).reshape(sp * cin, sp * cout)


def _tile_bias(b, sp):
    return jnp.tile(b.reshape(1, -1), (1, sp))


def _pool_col_sel(sp, c, parity):
    sel = jnp.eye(sp, dtype=jnp.float32)[:, parity::2]
    eye_c = jnp.eye(c, dtype=jnp.float32)
    return (sel[:, None, :, None] * eye_c[None, :, None, :]).reshape(sp * c, (sp // 2) * c)


def _pool_col_fused(sp, c):          # [even | odd] fused selection (sp*c, sp*c)
    return jnp.concatenate([_pool_col_sel(sp, c, 0), _pool_col_sel(sp, c, 1)], axis=1)


def _dup_cols(sp, c):
    dup = jnp.repeat(jnp.eye(sp, dtype=jnp.float32), 2, axis=1)
    eye_c = jnp.eye(c, dtype=jnp.float32)
    return (dup[:, None, :, None] * eye_c[None, :, None, :]).reshape(sp * c, 2 * sp * c)


def _rowsel_even(bt, sp):            # (bt*sp/2, bt*sp) even-row selector per sample
    return jnp.kron(jnp.eye(bt, dtype=jnp.float32),
                    jnp.eye(sp, dtype=jnp.float32)[0::2, :])


def _rowdup(bt, sp):                 # (bt*2sp, bt*sp) nearest row duplication per sample
    return jnp.kron(jnp.eye(bt, dtype=jnp.float32),
                    jnp.repeat(jnp.eye(sp, dtype=jnp.float32), 2, axis=0))


class _SlabBuilder:
    """Concatenates same-K weight matrices along N and records static offsets."""

    def __init__(self, k):
        self.k = k
        self.parts = []
        self.off = {}
        self.n = 0

    def add(self, name, m):
        assert m.shape[0] == self.k and m.shape[1] % 128 == 0, (name, m.shape, self.k)
        self.off[name] = (self.n, m.shape[1])
        self.parts.append(m)
        self.n += m.shape[1]

    def pack(self, dtype):
        return jnp.concatenate(self.parts, axis=1).astype(dtype)


def _pack_weights(params, bt):
    f32, bf16 = jnp.float32, jnp.bfloat16
    slabs = {64: _SlabBuilder(64), 128: _SlabBuilder(128), 256: _SlabBuilder(256)}
    bias = _SlabBuilder(1)

    for name, sp, cin, cout, split in _BLOCKS:
        p = params[name]
        if split is None:
            first = _band_conv(p["w1"], sp)
            if cin != cout:       # fuse 1x1 skip conv with the first conv (shared LHS)
                first = jnp.concatenate([first, _blockdiag(p["skip_w"], sp)], axis=1)
            slabs[sp * cin].add(name + "_c1", first)
        else:                     # consumer of torch.cat: split along Cin (exact)
            fa = jnp.concatenate([_band_conv(p["w1"][:, :, :split, :], sp),
                                  _blockdiag(p["skip_w"][:split], sp)], axis=1)
            fb = jnp.concatenate([_band_conv(p["w1"][:, :, split:, :], sp),
                                  _blockdiag(p["skip_w"][split:], sp)], axis=1)
            slabs[sp * split].add(name + "_c1_a", fa)
            slabs[sp * (cin - split)].add(name + "_c1_b", fb)
        slabs[sp * cout].add(name + "_c2", _band_conv(p["w2"], sp))
        bias.add(name + "_b1", _tile_bias(p["b1"], sp))
        bias.add(name + "_b2", _tile_bias(p["b2"], sp))
        if cin != cout:
            bias.add(name + "_skb", _tile_bias(p["skip_b"], sp))

    # pooling / upsampling lane-direction matrices (all K = 128)
    slabs[128].add("pool1_col", _pool_col_fused(16, BASE_CHANNELS))
    slabs[128].add("pool2_col", _pool_col_fused(8, 2 * BASE_CHANNELS))
    slabs[128].add("upa_col", _dup_cols(4, 4 * BASE_CHANNELS))
    slabs[128].add("upb_col", _dup_cols(8, 2 * BASE_CHANNELS))

    # 1x1 out conv; output channels zero-padded 4->8 for a lane-dense 128-wide store
    pad_out = 8 - IN_CHANNELS
    ow = jnp.concatenate([params["out_w"], jnp.zeros((BASE_CHANNELS, pad_out), f32)], axis=1)
    ob = jnp.concatenate([params["out_b"], jnp.zeros((pad_out,), f32)])
    slabs[128].add("out", _blockdiag(ow, 16))
    bias.add("out_b", _tile_bias(ob, 16))

    wd = {
        "wk64": slabs[64].pack(bf16),      # (64, 1536)
        "wk128": slabs[128].pack(bf16),    # (128, 5376)
        "wk256": slabs[256].pack(bf16),    # (256, 1024)
        "bias": bias.pack(f32),            # (1, 2560)
        "p1r": _rowsel_even(bt, 16).astype(bf16),
        "p2r": _rowsel_even(bt, 8).astype(bf16),
        "uar": _rowdup(bt, 4).astype(bf16),
        "ubr": _rowdup(bt, 8).astype(bf16),
    }
    meta = {
        "bt": bt,
        "w": {64: slabs[64].off, 128: slabs[128].off, 256: slabs[256].off},
        "b": {k: v[0] for k, v in bias.off.items()},
    }
    return wd, meta


# ================================ parameters ==================================
def _init_linear(key, din, dout):
    kw, kb = jax.random.split(key)
    s = 1.0 / jnp.sqrt(float(din))
    w = jax.random.uniform(kw, (din, dout), jnp.float32, -s, s)
    b = jax.random.uniform(kb, (dout,), jnp.float32, -s, s)
    return w, b


def _init_conv3x3(key, cin, cout):
    kw, kb = jax.random.split(key)
    s = 1.0 / jnp.sqrt(9.0 * cin)
    w = jax.random.uniform(kw, (3, 3, cin, cout), jnp.float32, -s, s)
    b = jax.random.uniform(kb, (cout,), jnp.float32, -s, s)
    return w, b


def _init_res_block(key, cin, cout):
    k1, k2, k3, k4 = jax.random.split(key, 4)
    p = {}
    p["w1"], p["b1"] = _init_conv3x3(k1, cin, cout)
    p["w2"], p["b2"] = _init_conv3x3(k2, cout, cout)
    p["emb_w"], p["emb_b"] = _init_linear(k3, TIME_EMB_DIM, cout)
    if cin != cout:
        p["skip_w"], p["skip_b"] = _init_linear(k4, cin, cout)   # 1x1 conv
    return p


def init_params(key):
    B = BASE_CHANNELS
    ks = jax.random.split(key, 10)
    p = {}
    p["tw1"], p["tb1"] = _init_linear(ks[0], TIME_EMB_DIM, TIME_EMB_DIM)
    p["tw2"], p["tb2"] = _init_linear(ks[1], TIME_EMB_DIM, TIME_EMB_DIM)
    p["res1"] = _init_res_block(ks[2], IN_CHANNELS, B)
    p["down1"] = _init_res_block(ks[3], B, 2 * B)
    p["down2"] = _init_res_block(ks[4], 2 * B, 4 * B)
    p["mid1"] = _init_res_block(ks[5], 4 * B, 4 * B)
    p["mid2"] = _init_res_block(ks[6], 4 * B, 4 * B)
    p["up2"] = _init_res_block(ks[7], 6 * B, 2 * B)
    p["up1"] = _init_res_block(ks[8], 3 * B, B)
    p["out_w"], p["out_b"] = _init_linear(ks[9], B, IN_CHANNELS)   # out_conv 1x1
    return p


def sinusoidal_pos_emb(t, dim):
    half = dim // 2
    freqs = jnp.exp(-jnp.log(10000.0) * jnp.arange(half, dtype=jnp.float32) / (half - 1))
    args = t.astype(jnp.float32)[:, None] * freqs[None, :]
    return jnp.concatenate([jnp.sin(args), jnp.cos(args)], axis=-1)


def _pack_activations(params, x_nchw, t, bt, n_pad):
    """Batch-folded input slab + per-tile, per-block time-embedding rows (in XLA)."""
    n = x_nchw.shape[0]
    f32 = jnp.float32
    xs = jnp.transpose(x_nchw, (0, 2, 3, 1)).reshape(n, 16, 16 * IN_CHANNELS).astype(f32)
    if n_pad > n:
        xs = jnp.pad(xs, ((0, n_pad - n), (0, 0), (0, 0)))
    xt = xs.reshape(n_pad // bt, bt * 16, 16 * IN_CHANNELS).astype(jnp.bfloat16)

    # time MLP + per-block projections hoisted out of the kernel (tiny XLA work)
    temb = sinusoidal_pos_emb(t, TIME_EMB_DIM)
    temb = jax.nn.silu(temb @ params["tw1"] + params["tb1"])
    temb = temb @ params["tw2"] + params["tb2"]
    if n_pad > n:
        temb = jnp.pad(temb, ((0, n_pad - n), (0, 0)))

    def bemb(name, sp):
        p = params[name]
        e = temb @ p["emb_w"] + p["emb_b"]          # (n_pad, cout)
        e = jnp.tile(e, (1, sp))                    # (n_pad, sp*cout) per-pixel tiled
        return jnp.repeat(e, sp, axis=0)            # (n_pad*sp, 128) per-row expanded

    T = n_pad // bt
    e16 = jnp.concatenate([bemb("res1", 16), bemb("up1", 16)], axis=1).reshape(T, bt * 16, 256)
    e8 = jnp.concatenate([bemb("down1", 8), bemb("up2", 8)], axis=1).reshape(T, bt * 8, 256)
    e4 = jnp.concatenate([bemb("down2", 4), bemb("mid1", 4), bemb("mid2", 4)],
                         axis=1).reshape(T, bt * 4, 384)
    return xt, e16, e8, e4


def _const_spec(shape):
    nd = len(shape)
    return pl.BlockSpec(shape, lambda i: (0,) * nd)


# ================================ forward pass ================================
def atlas_forward(params, x_nchw, t, cond_dict=None, bt=None):
    cond_dict = cond_dict or {}
    # 'text'/'ehr'/'mask' absent and USE_CAUSAL_ROUTING/CFPG disabled -> prior net,
    # causal router and cross-attention context are no-ops (matches the reference).
    n, c, hh, ww = x_nchw.shape
    assert (c, hh, ww) == (IN_CHANNELS, 16, 16)

    if bt is None:
        # Bt samples per grid step; Bt*16 <= 128 rows works on v5e/v6e/v7x.
        # (For v7x with large N, a smaller Bt keeps >=2 tiles for the 2 TensorCores.)
        bt = max(1, min(n, 8))
    n_tiles = -(-n // bt)
    n_pad = n_tiles * bt

    wd, meta = _pack_weights(params, bt)
    xt, e16, e8, e4 = _pack_activations(params, x_nchw, t, bt, n_pad)

    in_specs = [
        pl.BlockSpec((1, bt * 16, 16 * IN_CHANNELS), lambda i: (i, 0, 0)),
        pl.BlockSpec((1, bt * 16, 256), lambda i: (i, 0, 0)),
        pl.BlockSpec((1, bt * 8, 256), lambda i: (i, 0, 0)),
        pl.BlockSpec((1, bt * 4, 384), lambda i: (i, 0, 0)),
        _const_spec(wd["wk64"].shape),
        _const_spec(wd["wk128"].shape),
        _const_spec(wd["wk256"].shape),
        _const_spec(wd["bias"].shape),
        _const_spec(wd["p1r"].shape),
        _const_spec(wd["p2r"].shape),
        _const_spec(wd["uar"].shape),
        _const_spec(wd["ubr"].shape),
    ]

    out = pl.pallas_call(
        functools.partial(_fused_unet_kernel, meta=meta),
        out_shape=jax.ShapeDtypeStruct((n_tiles, bt * 16, 128), jnp.float32),
        grid=(n_tiles,),
        in_specs=in_specs,
        out_specs=pl.BlockSpec((1, bt * 16, 128), lambda i: (i, 0, 0)),
        compiler_params=pltpu.CompilerParams(
            dimension_semantics=("parallel",),       # batch tiles across TensorCores
            vmem_limit_bytes=32 * 1024 * 1024,
        ),
    )(xt, e16, e8, e4, wd["wk64"], wd["wk128"], wd["wk256"], wd["bias"],
      wd["p1r"], wd["p2r"], wd["uar"], wd["ubr"])

    # lane-dense (rows, 128) slab -> NCHW (drop the zero-padded channels 4..7)
    y = out.reshape(n_pad, 16, 16, 8)[:n, :, :, :IN_CHANNELS]
    return jnp.transpose(y, (0, 3, 1, 2))


# ==================================== main ====================================
if __name__ == "__main__":
    key = jax.random.PRNGKey(0)
    pkey, xkey, tkey = jax.random.split(key, 3)
    params = init_params(pkey)

    x = jax.random.normal(xkey, (2, IN_CHANNELS, 16, 16), jnp.float32)   # NCHW
    t = jax.random.randint(tkey, (2,), 0, 1000)
    cond_dict = {}   # no text / ehr / mask conditioning

    fwd = jax.jit(atlas_forward)
    out = fwd(params, x, t)
    out = jax.block_until_ready(out)
    assert out.shape == (2, IN_CHANNELS, 16, 16), out.shape
    assert out.dtype == jnp.float32
    assert bool(jnp.all(jnp.isfinite(out)))
    print("KERNEL_OK")
</pallas_src>

<mosaic_0001>
module attributes {stable_mosaic.version = 11 : i64} {
  func.func @_fused_unet_kernel(%arg0: i32, %arg1: memref<1x32x64xbf16, #tpu.memory_space<vmem>>, %arg2: memref<1x32x256xf32, #tpu.memory_space<vmem>>, %arg3: memref<1x16x256xf32, #tpu.memory_space<vmem>>, %arg4: memref<1x8x384xf32, #tpu.memory_space<vmem>>, %arg5: memref<64x1536xbf16, #tpu.memory_space<vmem>>, %arg6: memref<128x5376xbf16, #tpu.memory_space<vmem>>, %arg7: memref<256x1024xbf16, #tpu.memory_space<vmem>>, %arg8: memref<1x2560xf32, #tpu.memory_space<vmem>>, %arg9: memref<16x32xbf16, #tpu.memory_space<vmem>>, %arg10: memref<8x16xbf16, #tpu.memory_space<vmem>>, %arg11: memref<16x8xbf16, #tpu.memory_space<vmem>>, %arg12: memref<32x16xbf16, #tpu.memory_space<vmem>>, %arg13: memref<1x32x128xf32, #tpu.memory_space<vmem>>) attributes {dimension_semantics = [#tpu.dimension_semantics<parallel>], iteration_bounds = array<i64: 1>, scalar_prefetch = 0 : i64, scratch_operands = 0 : i64, tpu.core_type = #tpu.core_type<tc>, window_params = [{transform_indices = @transform_0, window_bounds = array<i64: 1, 32, 64>}, {transform_indices = @transform_1, window_bounds = array<i64: 1, 32, 256>}, {transform_indices = @transform_2, window_bounds = array<i64: 1, 16, 256>}, {transform_indices = @transform_3, window_bounds = array<i64: 1, 8, 384>}, {pipeline_mode = #tpu.pipeline_mode<synchronous>, transform_indices = @transform_4, window_bounds = array<i64: 64, 1536>}, {pipeline_mode = #tpu.pipeline_mode<synchronous>, transform_indices = @transform_5, window_bounds = array<i64: 128, 5376>}, {pipeline_mode = #tpu.pipeline_mode<synchronous>, transform_indices = @transform_6, window_bounds = array<i64: 256, 1024>}, {pipeline_mode = #tpu.pipeline_mode<synchronous>, transform_indices = @transform_7, window_bounds = array<i64: 1, 2560>}, {pipeline_mode = #tpu.pipeline_mode<synchronous>, transform_indices = @transform_8, window_bounds = array<i64: 16, 32>}, {pipeline_mode = #tpu.pipeline_mode<synchronous>, transform_indices = @transform_9, window_bounds = array<i64: 8, 16>}, {pipeline_mode = #tpu.pipeline_mode<synchronous>, transform_indices = @transform_10, window_bounds = array<i64: 16, 8>}, {pipeline_mode = #tpu.pipeline_mode<synchronous>, transform_indices = @transform_11, window_bounds = array<i64: 32, 16>}, {transform_indices = @transform_12, window_bounds = array<i64: 1, 32, 128>}]} {
    %0 = tpu.iota {dimensions = array<i32: 0>} : vector<32x128xi32>
    %c16_i32 = arith.constant 16 : i32
    %c0_i32 = arith.constant 0 : i32
    %1 = arith.cmpi eq, %c16_i32, %c0_i32 : i32
    %c1_i32 = arith.constant 1 : i32
    %2 = arith.select %1, %c1_i32, %c16_i32 : i32
    %3 = vector.broadcast %2 : i32 to vector<32x128xi32>
    %4 = arith.remsi %0, %3 : vector<32x128xi32>
    %c0_i32_0 = arith.constant 0 : i32
    %5 = vector.broadcast %c0_i32_0 : i32 to vector<32x128xi32>
    %6 = arith.cmpi ne, %4, %5 : vector<32x128xi32>
    %c0_i32_1 = arith.constant 0 : i32
    %7 = vector.broadcast %c0_i32_1 : i32 to vector<32x128xi32>
    %8 = arith.cmpi slt, %4, %7 : vector<32x128xi32>
    %c0_i32_2 = arith.constant 0 : i32
    %9 = arith.cmpi slt, %2, %c0_i32_2 : i32
    %10 = vector.broadcast %9 : i1 to vector<32x128xi1>
    %11 = vector.broadcast %10 : vector<32x128xi1> to vector<32x128xi1>
    %12 = arith.xori %8, %11 : vector<32x128xi1>
    %13 = arith.andi %12, %6 : vector<32x128xi1>
    %14 = vector.broadcast %2 : i32 to vector<32x128xi32>
    %15 = arith.addi %4, %14 : vector<32x128xi32>
    %16 = arith.select %13, %15, %4 : vector<32x128xi1>, vector<32x128xi32>
    %c0_i32_3 = arith.constant 0 : i32
    %17 = vector.broadcast %c0_i32_3 : i32 to vector<32x128xi32>
    %18 = arith.cmpi ne, %16, %17 : vector<32x128xi32>
    %19 = arith.extui %18 : vector<32x128xi1> to vector<32x128xi32>
    %20 = arith.sitofp %19 : vector<32x128xi32> to vector<32x128xf32>
    %c15_i32 = arith.constant 15 : i32
    %21 = vector.broadcast %c15_i32 : i32 to vector<32x128xi32>
    %22 = arith.cmpi ne, %16, %21 : vector<32x128xi32>
    %23 = arith.extui %22 : vector<32x128xi1> to vector<32x128xi32>
    %24 = arith.sitofp %23 : vector<32x128xi32> to vector<32x128xf32>
    %25 = tpu.iota {dimensions = array<i32: 0>} : vector<16x128xi32>
    %c8_i32 = arith.constant 8 : i32
    %c0_i32_4 = arith.constant 0 : i32
    %26 = arith.cmpi eq, %c8_i32, %c0_i32_4 : i32
    %c1_i32_5 = arith.constant 1 : i32
    %27 = arith.select %26, %c1_i32_5, %c8_i32 : i32
    %28 = vector.broadcast %27 : i32 to vector<16x128xi32>
    %29 = arith.remsi %25, %28 : vector<16x128xi32>
    %c0_i32_6 = arith.constant 0 : i32
    %30 = vector.broadcast %c0_i32_6 : i32 to vector<16x128xi32>
    %31 = arith.cmpi ne, %29, %30 : vector<16x128xi32>
    %c0_i32_7 = arith.constant 0 : i32
    %32 = vector.broadcast %c0_i32_7 : i32 to vector<16x128xi32>
    %33 = arith.cmpi slt, %29, %32 : vector<16x128xi32>
    %c0_i32_8 = arith.constant 0 : i32
    %34 = arith.cmpi slt, %27, %c0_i32_8 : i32
    %35 = vector.broadcast %34 : i1 to vector<16x128xi1>
    %36 = vector.broadcast %35 : vector<16x128xi1> to vector<16x128xi1>
    %37 = arith.xori %33, %36 : vector<16x128xi1>
    %38 = arith.andi %37, %31 : vector<16x128xi1>
    %39 = vector.broadcast %27 : i32 to vector<16x128xi32>
    %40 = arith.addi %29, %39 : vector<16x128xi32>
    %41 = arith.select %38, %40, %29 : vector<16x128xi1>, vector<16x128xi32>
    %c0_i32_9 = arith.constant 0 : i32
    %42 = vector.broadcast %c0_i32_9 : i32 to vector<16x128xi32>
    %43 = arith.cmpi ne, %41, %42 : vector<16x128xi32>
    %44 = arith.extui %43 : vector<16x128xi1> to vector<16x128xi32>
    %45 = arith.sitofp %44 : vector<16x128xi32> to vector<16x128xf32>
    %c7_i32 = arith.constant 7 : i32
    %46 = vector.broadcast %c7_i32 : i32 to vector<16x128xi32>
    %47 = arith.cmpi ne, %41, %46 : vector<16x128xi32>
    %48 = arith.extui %47 : vector<16x128xi1> to vector<16x128xi32>
    %49 = arith.sitofp %48 : vector<16x128xi32> to vector<16x128xf32>
    %50 = tpu.iota {dimensions = array<i32: 0>} : vector<8x128xi32>
    %c4_i32 = arith.constant 4 : i32
    %c0_i32_10 = arith.constant 0 : i32
    %51 = arith.cmpi eq, %c4_i32, %c0_i32_10 : i32
    %c1_i32_11 = arith.constant 1 : i32
    %52 = arith.select %51, %c1_i32_11, %c4_i32 : i32
    %53 = vector.broadcast %52 : i32 to vector<8x128xi32>
    %54 = arith.remsi %50, %53 : vector<8x128xi32>
    %c0_i32_12 = arith.constant 0 : i32
    %55 = vector.broadcast %c0_i32_12 : i32 to vector<8x128xi32>
    %56 = arith.cmpi ne, %54, %55 : vector<8x128xi32>
    %c0_i32_13 = arith.constant 0 : i32
    %57 = vector.broadcast %c0_i32_13 : i32 to vector<8x128xi32>
    %58 = arith.cmpi slt, %54, %57 : vector<8x128xi32>
    %c0_i32_14 = arith.constant 0 : i32
    %59 = arith.cmpi slt, %52, %c0_i32_14 : i32
    %60 = vector.broadcast %59 : i1 to vector<8x128xi1>
    %61 = vector.broadcast %60 : vector<8x128xi1> to vector<8x128xi1>
    %62 = arith.xori %58, %61 : vector<8x128xi1>
    %63 = arith.andi %62, %56 : vector<8x128xi1>
    %64 = vector.broadcast %52 : i32 to vector<8x128xi32>
    %65 = arith.addi %54, %64 : vector<8x128xi32>
    %66 = arith.select %63, %65, %54 : vector<8x128xi1>, vector<8x128xi32>
    %c0_i32_15 = arith.constant 0 : i32
    %67 = vector.broadcast %c0_i32_15 : i32 to vector<8x128xi32>
    %68 = arith.cmpi ne, %66, %67 : vector<8x128xi32>
    %69 = arith.extui %68 : vector<8x128xi1> to vector<8x128xi32>
    %70 = arith.sitofp %69 : vector<8x128xi32> to vector<8x128xf32>
    %c3_i32 = arith.constant 3 : i32
    %71 = vector.broadcast %c3_i32 : i32 to vector<8x128xi32>
    %72 = arith.cmpi ne, %66, %71 : vector<8x128xi32>
    %73 = arith.extui %72 : vector<8x128xi1> to vector<8x128xi32>
    %74 = arith.sitofp %73 : vector<8x128xi32> to vector<8x128xf32>
    %c0 = arith.constant 0 : index
    %c0_16 = arith.constant 0 : index
    %c0_17 = arith.constant 0 : index
    %75 = vector.load %arg1[%c0, %c0_16, %c0_17] : memref<1x32x64xbf16, #tpu.memory_space<vmem>>, vector<1x32x64xbf16>
    %76 = vector.shape_cast %75 : vector<1x32x64xbf16> to vector<32x64xbf16>
    %c0_18 = arith.constant 0 : index
    %c0_19 = arith.constant 0 : index
    %c0_20 = arith.constant 0 : index
    %77 = vector.load %arg2[%c0_18, %c0_19, %c0_20] : memref<1x32x256xf32, #tpu.memory_space<vmem>>, vector<1x32x256xf32>
    %78 = vector.shape_cast %77 : vector<1x32x256xf32> to vector<32x256xf32>
    %c0_21 = arith.constant 0 : index
    %c0_22 = arith.constant 0 : index
    %c0_23 = arith.constant 0 : index
    %79 = vector.load %arg3[%c0_21, %c0_22, %c0_23] : memref<1x16x256xf32, #tpu.memory_space<vmem>>, vector<1x16x256xf32>
    %80 = vector.shape_cast %79 : vector<1x16x256xf32> to vector<16x256xf32>
    %c0_24 = arith.constant 0 : index
    %c0_25 = arith.constant 0 : index
    %c0_26 = arith.constant 0 : index
    %81 = vector.load %arg4[%c0_24, %c0_25, %c0_26] : memref<1x8x384xf32, #tpu.memory_space<vmem>>, vector<1x8x384xf32>
    %82 = vector.shape_cast %81 : vector<1x8x384xf32> to vector<8x384xf32>
    %83 = vector.extract_strided_slice %78 {offsets = [0, 0], sizes = [32, 128], strides = [1, 1]} : vector<32x256xf32> to vector<32x128xf32>
    %c0_27 = arith.constant 0 : index
    %c0_28 = arith.constant 0 : index
    %84 = vector.load %arg5[%c0_27, %c0_28] : memref<64x1536xbf16, #tpu.memory_space<vmem>>, vector<64x512xbf16>
    %cst = arith.constant dense<0.000000e+00> : vector<32x512xf32>
    %85 = tpu.matmul %76, %84, %cst {dimension_numbers = #tpu.dot_dimension_numbers<[1], [0], [0], [1], [0, 0, 1, 1], [], []>} : vector<32x64xbf16>, vector<64x512xbf16>, vector<32x512xf32> -> vector<32x512xf32>
    %c0_29 = arith.constant 0 : index
    %c0_30 = arith.constant 0 : index
    %86 = vector.load %arg8[%c0_29, %c0_30] : memref<1x2560xf32, #tpu.memory_space<vmem>>, vector<1x128xf32>
    %87 = vector.extract_strided_slice %85 {offsets = [0, 0], sizes = [32, 128], strides = [1, 1]} : vector<32x512xf32> to vector<32x128xf32>
    %c1_i32_31 = arith.constant 1 : i32
    %88 = tpu.dynamic_rotate %87 by %c1_i32_31 dim 0 : vector<32x128xf32>, i32 -> vector<32x128xf32>
    %89 = arith.mulf %88, %20 : vector<32x128xf32>
    %90 = vector.extract_strided_slice %85 {offsets = [0, 256], sizes = [32, 128], strides = [1, 1]} : vector<32x512xf32> to vector<32x128xf32>
    %c31_i32 = arith.constant 31 : i32
    %91 = tpu.dynamic_rotate %90 by %c31_i32 dim 0 : vector<32x128xf32>, i32 -> vector<32x128xf32>
    %92 = arith.mulf %91, %24 : vector<32x128xf32>
    %93 = vector.extract_strided_slice %85 {offsets = [0, 128], sizes = [32, 128], strides = [1, 1]} : vector<32x512xf32> to vector<32x128xf32>
    %94 = arith.addf %89, %93 : vector<32x128xf32>
    %95 = arith.addf %94, %92 : vector<32x128xf32>
    %96 = vector.broadcast %86 : vector<1x128xf32> to vector<32x128xf32>
    %97 = arith.addf %95, %96 : vector<32x128xf32>
    %98 = arith.negf %97 : vector<32x128xf32>
    %99 = math.exp %98 : vector<32x128xf32>
    %cst_32 = arith.constant 1.000000e+00 : f32
    %100 = vector.broadcast %cst_32 : f32 to vector<32x128xf32>
    %101 = arith.addf %100, %99 : vector<32x128xf32>
    %102 = arith.divf %100, %101 : vector<32x128xf32>
    %103 = arith.mulf %97, %102 : vector<32x128xf32>
    %104 = arith.addf %103, %83 : vector<32x128xf32>
    %c0_33 = arith.constant 0 : index
    %c0_34 = arith.constant 0 : index
    %105 = vector.load %arg6[%c0_33, %c0_34] : memref<128x5376xbf16, #tpu.memory_space<vmem>>, vector<128x384xbf16>
    %106 = arith.truncf %104 : vector<32x128xf32> to vector<32x128xbf16>
    %cst_35 = arith.constant dense<0.000000e+00> : vector<32x384xf32>
    %107 = tpu.matmul %106, %105, %cst_35 {dimension_numbers = #tpu.dot_dimension_numbers<[1], [0], [0], [1], [0, 0, 1, 1], [], []>} : vector<32x128xbf16>, vector<128x384xbf16>, vector<32x384xf32> -> vector<32x384xf32>
    %c0_36 = arith.constant 0 : index
    %c128 = arith.constant 128 : index
    %108 = vector.load %arg8[%c0_36, %c128] : memref<1x2560xf32, #tpu.memory_space<vmem>>, vector<1x128xf32>
    %109 = vector.extract_strided_slice %107 {offsets = [0, 0], sizes = [32, 128], strides = [1, 1]} : vector<32x384xf32> to vector<32x128xf32>
    %c1_i32_37 = arith.constant 1 : i32
    %110 = tpu.dynamic_rotate %109 by %c1_i32_37 dim 0 : vector<32x128xf32>, i32 -> vector<32x128xf32>
    %111 = arith.mulf %110, %20 : vector<32x128xf32>
    %112 = vector.extract_strided_slice %107 {offsets = [0, 256], sizes = [32, 128], strides = [1, 1]} : vector<32x384xf32> to vector<32x128xf32>
    %c31_i32_38 = arith.constant 31 : i32
    %113 = tpu.dynamic_rotate %112 by %c31_i32_38 dim 0 : vector<32x128xf32>, i32 -> vector<32x128xf32>
    %114 = arith.mulf %113, %24 : vector<32x128xf32>
    %115 = vector.extract_strided_slice %107 {offsets = [0, 128], sizes = [32, 128], strides = [1, 1]} : vector<32x384xf32> to vector<32x128xf32>
    %116 = arith.addf %111, %115 : vector<32x128xf32>
    %117 = arith.addf %116, %114 : vector<32x128xf32>
    %118 = vector.broadcast %108 : vector<1x128xf32> to vector<32x128xf32>
    %119 = arith.addf %117, %118 : vector<32x128xf32>
    %120 = arith.negf %119 : vector<32x128xf32>
    %121 = math.exp %120 : vector<32x128xf32>
    %cst_39 = arith.constant 1.000000e+00 : f32
    %122 = vector.broadcast %cst_39 : f32 to vector<32x128xf32>
    %123 = arith.addf %122, %121 : vector<32x128xf32>
    %124 = arith.divf %122, %123 : vector<32x128xf32>
    %125 = arith.mulf %119, %124 : vector<32x128xf32>
    %126 = vector.extract_strided_slice %85 {offsets = [0, 384], sizes = [32, 128], strides = [1, 1]} : vector<32x512xf32> to vector<32x128xf32>
    %127 = arith.addf %125, %126 : vector<32x128xf32>
    %c0_40 = arith.constant 0 : index
    %c256 = arith.constant 256 : index
    %128 = vector.load %arg8[%c0_40, %c256] : memref<1x2560xf32, #tpu.memory_space<vmem>>, vector<1x128xf32>
    %129 = vector.broadcast %128 : vector<1x128xf32> to vector<32x128xf32>
    %130 = arith.addf %127, %129 : vector<32x128xf32>
    %c0_41 = arith.constant 0 : index
    %c4480 = arith.constant 4480 : index
    %131 = vector.load %arg6[%c0_41, %c4480] : memref<128x5376xbf16, #tpu.memory_space<vmem>>, vector<128x128xbf16>
    %132 = arith.truncf %130 : vector<32x128xf32> to vector<32x128xbf16>
    %cst_42 = arith.constant dense<0.000000e+00> : vector<32x128xf32>
    %133 = tpu.matmul %132, %131, %cst_42 {dimension_numbers = #tpu.dot_dimension_numbers<[1], [0], [0], [1], [0, 0, 1, 1], [], []>} : vector<32x128xbf16>, vector<128x128xbf16>, vector<32x128xf32> -> vector<32x128xf32>
    %134 = vector.extract_strided_slice %133 {offsets = [0, 0], sizes = [32, 64], strides = [1, 1]} : vector<32x128xf32> to vector<32x64xf32>
    %135 = vector.extract_strided_slice %133 {offsets = [0, 64], sizes = [32, 64], strides = [1, 1]} : vector<32x128xf32> to vector<32x64xf32>
    %136 = arith.maximumf %134, %135 : vector<32x64xf32>
    %c31_i32_43 = arith.constant 31 : i32
    %137 = tpu.dynamic_rotate %136 by %c31_i32_43 dim 0 : vector<32x64xf32>, i32 -> vector<32x64xf32>
    %138 = arith.maximumf %136, %137 : vector<32x64xf32>
    %c0_44 = arith.constant 0 : index
    %c0_45 = arith.constant 0 : index
    %139 = vector.load %arg9[%c0_44, %c0_45] : memref<16x32xbf16, #tpu.memory_space<vmem>>, vector<16x32xbf16>
    %140 = arith.truncf %138 : vector<32x64xf32> to vector<32x64xbf16>
    %cst_46 = arith.constant dense<0.000000e+00> : vector<16x64xf32>
    %141 = tpu.matmul %139, %140, %cst_46 {dimension_numbers = #tpu.dot_dimension_numbers<[1], [0], [0], [1], [0, 0, 1, 1], [], []>} : vector<16x32xbf16>, vector<32x64xbf16>, vector<16x64xf32> -> vector<16x64xf32>
    %142 = vector.extract_strided_slice %80 {offsets = [0, 0], sizes = [16, 128], strides = [1, 1]} : vector<16x256xf32> to vector<16x128xf32>
    %c0_47 = arith.constant 0 : index
    %c512 = arith.constant 512 : index
    %143 = vector.load %arg5[%c0_47, %c512] : memref<64x1536xbf16, #tpu.memory_space<vmem>>, vector<64x512xbf16>
    %144 = arith.truncf %141 : vector<16x64xf32> to vector<16x64xbf16>
    %cst_48 = arith.constant dense<0.000000e+00> : vector<16x512xf32>
    %145 = tpu.matmul %144, %143, %cst_48 {dimension_numbers = #tpu.dot_dimension_numbers<[1], [0], [0], [1], [0, 0, 1, 1], [], []>} : vector<16x64xbf16>, vector<64x512xbf16>, vector<16x512xf32> -> vector<16x512xf32>
    %c0_49 = arith.constant 0 : index
    %c384 = arith.constant 384 : index
    %146 = vector.load %arg8[%c0_49, %c384] : memref<1x2560xf32, #tpu.memory_space<vmem>>, vector<1x128xf32>
    %147 = vector.extract_strided_slice %145 {offsets = [0, 0], sizes = [16, 128], strides = [1, 1]} : vector<16x512xf32> to vector<16x128xf32>
    %c1_i32_50 = arith.constant 1 : i32
    %148 = tpu.dynamic_rotate %147 by %c1_i32_50 dim 0 : vector<16x128xf32>, i32 -> vector<16x128xf32>
    %149 = arith.mulf %148, %45 : vector<16x128xf32>
    %150 = vector.extract_strided_slice %145 {offsets = [0, 256], sizes = [16, 128], strides = [1, 1]} : vector<16x512xf32> to vector<16x128xf32>
    %c15_i32_51 = arith.constant 15 : i32
    %151 = tpu.dynamic_rotate %150 by %c15_i32_51 dim 0 : vector<16x128xf32>, i32 -> vector<16x128xf32>
    %152 = arith.mulf %151, %49 : vector<16x128xf32>
    %153 = vector.extract_strided_slice %145 {offsets = [0, 128], sizes = [16, 128], strides = [1, 1]} : vector<16x512xf32> to vector<16x128xf32>
    %154 = arith.addf %149, %153 : vector<16x128xf32>
    %155 = arith.addf %154, %152 : vector<16x128xf32>
    %156 = vector.broadcast %146 : vector<1x128xf32> to vector<16x128xf32>
    %157 = arith.addf %155, %156 : vector<16x128xf32>
    %158 = arith.negf %157 : vector<16x128xf32>
    %159 = math.exp %158 : vector<16x128xf32>
    %cst_52 = arith.constant 1.000000e+00 : f32
    %160 = vector.broadcast %cst_52 : f32 to vector<16x128xf32>
    %161 = arith.addf %160, %159 : vector<16x128xf32>
    %162 = arith.divf %160, %161 : vector<16x128xf32>
    %163 = arith.mulf %157, %162 : vector<16x128xf32>
    %164 = arith.addf %163, %142 : vector<16x128xf32>
    %c0_53 = arith.constant 0 : index
    %c384_54 = arith.constant 384 : index
    %165 = vector.load %arg6[%c0_53, %c384_54] : memref<128x5376xbf16, #tpu.memory_space<vmem>>, vector<128x384xbf16>
    %166 = arith.truncf %164 : vector<16x128xf32> to vector<16x128xbf16>
    %cst_55 = arith.constant dense<0.000000e+00> : vector<16x384xf32>
    %167 = tpu.matmul %166, %165, %cst_55 {dimension_numbers = #tpu.dot_dimension_numbers<[1], [0], [0], [1], [0, 0, 1, 1], [], []>} : vector<16x128xbf16>, vector<128x384xbf16>, vector<16x384xf32> -> vector<16x384xf32>
    %c0_56 = arith.constant 0 : index
    %c512_57 = arith.constant 512 : index
    %168 = vector.load %arg8[%c0_56, %c512_57] : memref<1x2560xf32, #tpu.memory_space<vmem>>, vector<1x128xf32>
    %169 = vector.extract_strided_slice %167 {offsets = [0, 0], sizes = [16, 128], strides = [1, 1]} : vector<16x384xf32> to vector<16x128xf32>
    %c1_i32_58 = arith.constant 1 : i32
    %170 = tpu.dynamic_rotate %169 by %c1_i32_58 dim 0 : vector<16x128xf32>, i32 -> vector<16x128xf32>
    %171 = arith.mulf %170, %45 : vector<16x128xf32>
    %172 = vector.extract_strided_slice %167 {offsets = [0, 256], sizes = [16, 128], strides = [1, 1]} : vector<16x384xf32> to vector<16x128xf32>
    %c15_i32_59 = arith.constant 15 : i32
    %173 = tpu.dynamic_rotate %172 by %c15_i32_59 dim 0 : vector<16x128xf32>, i32 -> vector<16x128xf32>
    %174 = arith.mulf %173, %49 : vector<16x128xf32>
    %175 = vector.extract_strided_slice %167 {offsets = [0, 128], sizes = [16, 128], strides = [1, 1]} : vector<16x384xf32> to vector<16x128xf32>
    %176 = arith.addf %171, %175 : vector<16x128xf32>
    %177 = arith.addf %176, %174 : vector<16x128xf32>
    %178 = vector.broadcast %168 : vector<1x128xf32> to vector<16x128xf32>
    %179 = arith.addf %177, %178 : vector<16x128xf32>
    %180 = arith.negf %179 : vector<16x128xf32>
    %181 = math.exp %180 : vector<16x128xf32>
    %cst_60 = arith.constant 1.000000e+00 : f32
    %182 = vector.broadcast %cst_60 : f32 to vector<16x128xf32>
    %183 = arith.addf %182, %181 : vector<16x128xf32>
    %184 = arith.divf %182, %183 : vector<16x128xf32>
    %185 = arith.mulf %179, %184 : vector<16x128xf32>
    %186 = vector.extract_strided_slice %145 {offsets = [0, 384], sizes = [16, 128], strides = [1, 1]} : vector<16x512xf32> to vector<16x128xf32>
    %187 = arith.addf %185, %186 : vector<16x128xf32>
    %c0_61 = arith.constant 0 : index
    %c640 = arith.constant 640 : index
    %188 = vector.load %arg8[%c0_61, %c640] : memref<1x2560xf32, #tpu.memory_space<vmem>>, vector<1x128xf32>
    %189 = vector.broadcast %188 : vector<1x128xf32> to vector<16x128xf32>
    %190 = arith.addf %187, %189 : vector<16x128xf32>
    %c0_62 = arith.constant 0 : index
    %c4608 = arith.constant 4608 : index
    %191 = vector.load %arg6[%c0_62, %c4608] : memref<128x5376xbf16, #tpu.memory_space<vmem>>, vector<128x128xbf16>
    %192 = arith.truncf %190 : vector<16x128xf32> to vector<16x128xbf16>
    %cst_63 = arith.constant dense<0.000000e+00> : vector<16x128xf32>
    %193 = tpu.matmul %192, %191, %cst_63 {dimension_numbers = #tpu.dot_dimension_numbers<[1], [0], [0], [1], [0, 0, 1, 1], [], []>} : vector<16x128xbf16>, vector<128x128xbf16>, vector<16x128xf32> -> vector<16x128xf32>
    %194 = vector.extract_strided_slice %193 {offsets = [0, 0], sizes = [16, 64], strides = [1, 1]} : vector<16x128xf32> to vector<16x64xf32>
    %195 = vector.extract_strided_slice %193 {offsets = [0, 64], sizes = [16, 64], strides = [1, 1]} : vector<16x128xf32> to vector<16x64xf32>
    %196 = arith.maximumf %194, %195 : vector<16x64xf32>
    %c15_i32_64 = arith.constant 15 : i32
    %197 = tpu.dynamic_rotate %196 by %c15_i32_64 dim 0 : vector<16x64xf32>, i32 -> vector<16x64xf32>
    %198 = arith.maximumf %196, %197 : vector<16x64xf32>
    %c0_65 = arith.constant 0 : index
    %c0_66 = arith.constant 0 : index
    %199 = vector.load %arg10[%c0_65, %c0_66] : memref<8x16xbf16, #tpu.memory_space<vmem>>, vector<8x16xbf16>
    %200 = arith.truncf %198 : vector<16x64xf32> to vector<16x64xbf16>
    %cst_67 = arith.constant dense<0.000000e+00> : vector<8x64xf32>
    %201 = tpu.matmul %199, %200, %cst_67 {dimension_numbers = #tpu.dot_dimension_numbers<[1], [0], [0], [1], [0, 0, 1, 1], [], []>} : vector<8x16xbf16>, vector<16x64xbf16>, vector<8x64xf32> -> vector<8x64xf32>
    %202 = vector.extract_strided_slice %82 {offsets = [0, 0], sizes = [8, 128], strides = [1, 1]} : vector<8x384xf32> to vector<8x128xf32>
    %c0_68 = arith.constant 0 : index
    %c1024 = arith.constant 1024 : index
    %203 = vector.load %arg5[%c0_68, %c1024] : memref<64x1536xbf16, #tpu.memory_space<vmem>>, vector<64x512xbf16>
    %204 = arith.truncf %201 : vector<8x64xf32> to vector<8x64xbf16>
    %cst_69 = arith.constant dense<0.000000e+00> : vector<8x512xf32>
    %205 = tpu.matmul %204, %203, %cst_69 {dimension_numbers = #tpu.dot_dimension_numbers<[1], [0], [0], [1], [0, 0, 1, 1], [], []>} : vector<8x64xbf16>, vector<64x512xbf16>, vector<8x512xf32> -> vector<8x512xf32>
    %c0_70 = arith.constant 0 : index
    %c768 = arith.constant 768 : index
    %206 = vector.load %arg8[%c0_70, %c768] : memref<1x2560xf32, #tpu.memory_space<vmem>>, vector<1x128xf32>
    %207 = vector.extract_strided_slice %205 {offsets = [0, 0], sizes = [8, 128], strides = [1, 1]} : vector<8x512xf32> to vector<8x128xf32>
    %c1_i32_71 = arith.constant 1 : i32
    %208 = tpu.dynamic_rotate %207 by %c1_i32_71 dim 0 : vector<8x128xf32>, i32 -> vector<8x128xf32>
    %209 = arith.mulf %208, %70 : vector<8x128xf32>
    %210 = vector.extract_strided_slice %205 {offsets = [0, 256], sizes = [8, 128], strides = [1, 1]} : vector<8x512xf32> to vector<8x128xf32>
    %c7_i32_72 = arith.constant 7 : i32
    %211 = tpu.dynamic_rotate %210 by %c7_i32_72 dim 0 : vector<8x128xf32>, i32 -> vector<8x128xf32>
    %212 = arith.mulf %211, %74 : vector<8x128xf32>
    %213 = vector.extract_strided_slice %205 {offsets = [0, 128], sizes = [8, 128], strides = [1, 1]} : vector<8x512xf32> to vector<8x128xf32>
    %214 = arith.addf %209, %213 : vector<8x128xf32>
    %215 = arith.addf %214, %212 : vector<8x128xf32>
    %216 = vector.broadcast %206 : vector<1x128xf32> to vector<8x128xf32>
    %217 = arith.addf %215, %216 : vector<8x128xf32>
    %218 = arith.negf %217 : vector<8x128xf32>
    %219 = math.exp %218 : vector<8x128xf32>
    %cst_73 = arith.constant 1.000000e+00 : f32
    %220 = vector.broadcast %cst_73 : f32 to vector<8x128xf32>
    %221 = arith.addf %220, %219 : vector<8x128xf32>
    %222 = arith.divf %220, %221 : vector<8x128xf32>
    %223 = arith.mulf %217, %222 : vector<8x128xf32>
    %224 = arith.addf %223, %202 : vector<8x128xf32>
    %c0_74 = arith.constant 0 : index
    %c768_75 = arith.constant 768 : index
    %225 = vector.load %arg6[%c0_74, %c768_75] : memref<128x5376xbf16, #tpu.memory_space<vmem>>, vector<128x384xbf16>
    %226 = arith.truncf %224 : vector<8x128xf32> to vector<8x128xbf16>
    %cst_76 = arith.constant dense<0.000000e+00> : vector<8x384xf32>
    %227 = tpu.matmul %226, %225, %cst_76 {dimension_numbers = #tpu.dot_dimension_numbers<[1], [0], [0], [1], [0, 0, 1, 1], [], []>} : vector<8x128xbf16>, vector<128x384xbf16>, vector<8x384xf32> -> vector<8x384xf32>
    %c0_77 = arith.constant 0 : index
    %c896 = arith.constant 896 : index
    %228 = vector.load %arg8[%c0_77, %c896] : memref<1x2560xf32, #tpu.memory_space<vmem>>, vector<1x128xf32>
    %229 = vector.extract_strided_slice %227 {offsets = [0, 0], sizes = [8, 128], strides = [1, 1]} : vector<8x384xf32> to vector<8x128xf32>
    %c1_i32_78 = arith.constant 1 : i32
    %230 = tpu.dynamic_rotate %229 by %c1_i32_78 dim 0 : vector<8x128xf32>, i32 -> vector<8x128xf32>
    %231 = arith.mulf %230, %70 : vector<8x128xf32>
    %232 = vector.extract_strided_slice %227 {offsets = [0, 256], sizes = [8, 128], strides = [1, 1]} : vector<8x384xf32> to vector<8x128xf32>
    %c7_i32_79 = arith.constant 7 : i32
    %233 = tpu.dynamic_rotate %232 by %c7_i32_79 dim 0 : vector<8x128xf32>, i32 -> vector<8x128xf32>
    %234 = arith.mulf %233, %74 : vector<8x128xf32>
    %235 = vector.extract_strided_slice %227 {offsets = [0, 128], sizes = [8, 128], strides = [1, 1]} : vector<8x384xf32> to vector<8x128xf32>
    %236 = arith.addf %231, %235 : vector<8x128xf32>
    %237 = arith.addf %236, %234 : vector<8x128xf32>
    %238 = vector.broadcast %228 : vector<1x128xf32> to vector<8x128xf32>
    %239 = arith.addf %237, %238 : vector<8x128xf32>
    %240 = arith.negf %239 : vector<8x128xf32>
    %241 = math.exp %240 : vector<8x128xf32>
    %cst_80 = arith.constant 1.000000e+00 : f32
    %242 = vector.broadcast %cst_80 : f32 to vector<8x128xf32>
    %243 = arith.addf %242, %241 : vector<8x128xf32>
    %244 = arith.divf %242, %243 : vector<8x128xf32>
    %245 = arith.mulf %239, %244 : vector<8x128xf32>
    %246 = vector.extract_strided_slice %205 {offsets = [0, 384], sizes = [8, 128], strides = [1, 1]} : vector<8x512xf32> to vector<8x128xf32>
    %247 = arith.addf %245, %246 : vector<8x128xf32>
    %c0_81 = arith.constant 0 : index
    %c1024_82 = arith.constant 1024 : index
    %248 = vector.load %arg8[%c0_81, %c1024_82] : memref<1x2560xf32, #tpu.memory_space<vmem>>, vector<1x128xf32>
    %249 = vector.broadcast %248 : vector<1x128xf32> to vector<8x128xf32>
    %250 = arith.addf %247, %249 : vector<8x128xf32>
    %251 = vector.extract_strided_slice %82 {offsets = [0, 128], sizes = [8, 128], strides = [1, 1]} : vector<8x384xf32> to vector<8x128xf32>
    %c0_83 = arith.constant 0 : index
    %c1152 = arith.constant 1152 : index
    %252 = vector.load %arg6[%c0_83, %c1152] : memref<128x5376xbf16, #tpu.memory_space<vmem>>, vector<128x384xbf16>
    %253 = arith.truncf %250 : vector<8x128xf32> to vector<8x128xbf16>
    %cst_84 = arith.constant dense<0.000000e+00> : vector<8x384xf32>
    %254 = tpu.matmul %253, %252, %cst_84 {dimension_numbers = #tpu.dot_dimension_numbers<[1], [0], [0], [1], [0, 0, 1, 1], [], []>} : vector<8x128xbf16>, vector<128x384xbf16>, vector<8x384xf32> -> vector<8x384xf32>
    %c0_85 = arith.constant 0 : index
    %c1152_86 = arith.constant 1152 : index
    %255 = vector.load %arg8[%c0_85, %c1152_86] : memref<1x2560xf32, #tpu.memory_space<vmem>>, vector<1x128xf32>
    %256 = vector.extract_strided_slice %254 {offsets = [0, 0], sizes = [8, 128], strides = [1, 1]} : vector<8x384xf32> to vector<8x128xf32>
    %c1_i32_87 = arith.constant 1 : i32
    %257 = tpu.dynamic_rotate %256 by %c1_i32_87 dim 0 : vector<8x128xf32>, i32 -> vector<8x128xf32>
    %258 = arith.mulf %257, %70 : vector<8x128xf32>
    %259 = vector.extract_strided_slice %254 {offsets = [0, 256], sizes = [8, 128], strides = [1, 1]} : vector<8x384xf32> to vector<8x128xf32>
    %c7_i32_88 = arith.constant 7 : i32
    %260 = tpu.dynamic_rotate %259 by %c7_i32_88 dim 0 : vector<8x128xf32>, i32 -> vector<8x128xf32>
    %261 = arith.mulf %260, %74 : vector<8x128xf32>
    %262 = vector.extract_strided_slice %254 {offsets = [0, 128], sizes = [8, 128], strides = [1, 1]} : vector<8x384xf32> to vector<8x128xf32>
    %263 = arith.addf %258, %262 : vector<8x128xf32>
    %264 = arith.addf %263, %261 : vector<8x128xf32>
    %265 = vector.broadcast %255 : vector<1x128xf32> to vector<8x128xf32>
    %266 = arith.addf %264, %265 : vector<8x128xf32>
    %267 = arith.negf %266 : vector<8x128xf32>
    %268 = math.exp %267 : vector<8x128xf32>
    %cst_89 = arith.constant 1.000000e+00 : f32
    %269 = vector.broadcast %cst_89 : f32 to vector<8x128xf32>
    %270 = arith.addf %269, %268 : vector<8x128xf32>
    %271 = arith.divf %269, %270 : vector<8x128xf32>
    %272 = arith.mulf %266, %271 : vector<8x128xf32>
    %273 = arith.addf %272, %251 : vector<8x128xf32>
    %c0_90 = arith.constant 0 : index
    %c1536 = arith.constant 1536 : index
    %274 = vector.load %arg6[%c0_90, %c1536] : memref<128x5376xbf16, #tpu.memory_space<vmem>>, vector<128x384xbf16>
    %275 = arith.truncf %273 : vector<8x128xf32> to vector<8x128xbf16>
    %cst_91 = arith.constant dense<0.000000e+00> : vector<8x384xf32>
    %276 = tpu.matmul %275, %274, %cst_91 {dimension_numbers = #tpu.dot_dimension_numbers<[1], [0], [0], [1], [0, 0, 1, 1], [], []>} : vector<8x128xbf16>, vector<128x384xbf16>, vector<8x384xf32> -> vector<8x384xf32>
    %c0_92 = arith.constant 0 : index
    %c1280 = arith.constant 1280 : index
    %277 = vector.load %arg8[%c0_92, %c1280] : memref<1x2560xf32, #tpu.memory_space<vmem>>, vector<1x128xf32>
    %278 = vector.extract_strided_slice %276 {offsets = [0, 0], sizes = [8, 128], strides = [1, 1]} : vector<8x384xf32> to vector<8x128xf32>
    %c1_i32_93 = arith.constant 1 : i32
    %279 = tpu.dynamic_rotate %278 by %c1_i32_93 dim 0 : vector<8x128xf32>, i32 -> vector<8x128xf32>
    %280 = arith.mulf %279, %70 : vector<8x128xf32>
    %281 = vector.extract_strided_slice %276 {offsets = [0, 256], sizes = [8, 128], strides = [1, 1]} : vector<8x384xf32> to vector<8x128xf32>
    %c7_i32_94 = arith.constant 7 : i32
    %282 = tpu.dynamic_rotate %281 by %c7_i32_94 dim 0 : vector<8x128xf32>, i32 -> vector<8x128xf32>
    %283 = arith.mulf %282, %74 : vector<8x128xf32>
    %284 = vector.extract_strided_slice %276 {offsets = [0, 128], sizes = [8, 128], strides = [1, 1]} : vector<8x384xf32> to vector<8x128xf32>
    %285 = arith.addf %280, %284 : vector<8x128xf32>
    %286 = arith.addf %285, %283 : vector<8x128xf32>
    %287 = vector.broadcast %277 : vector<1x128xf32> to vector<8x128xf32>
    %288 = arith.addf %286, %287 : vector<8x128xf32>
    %289 = arith.negf %288 : vector<8x128xf32>
    %290 = math.exp %289 : vector<8x128xf32>
    %cst_95 = arith.constant 1.000000e+00 : f32
    %291 = vector.broadcast %cst_95 : f32 to vector<8x128xf32>
    %292 = arith.addf %291, %290 : vector<8x128xf32>
    %293 = arith.divf %291, %292 : vector<8x128xf32>
    %294 = arith.mulf %288, %293 : vector<8x128xf32>
    %295 = arith.addf %294, %250 : vector<8x128xf32>
    %296 = vector.extract_strided_slice %82 {offsets = [0, 256], sizes = [8, 128], strides = [1, 1]} : vector<8x384xf32> to vector<8x128xf32>
    %c0_96 = arith.constant 0 : index
    %c1920 = arith.constant 1920 : index
    %297 = vector.load %arg6[%c0_96, %c1920] : memref<128x5376xbf16, #tpu.memory_space<vmem>>, vector<128x384xbf16>
    %298 = arith.truncf %295 : vector<8x128xf32> to vector<8x128xbf16>
    %cst_97 = arith.constant dense<0.000000e+00> : vector<8x384xf32>
    %299 = tpu.matmul %298, %297, %cst_97 {dimension_numbers = #tpu.dot_dimension_numbers<[1], [0], [0], [1], [0, 0, 1, 1], [], []>} : vector<8x128xbf16>, vector<128x384xbf16>, vector<8x384xf32> -> vector<8x384xf32>
    %c0_98 = arith.constant 0 : index
    %c1408 = arith.constant 1408 : index
    %300 = vector.load %arg8[%c0_98, %c1408] : memref<1x2560xf32, #tpu.memory_space<vmem>>, vector<1x128xf32>
    %301 = vector.extract_strided_slice %299 {offsets = [0, 0], sizes = [8, 128], strides = [1, 1]} : vector<8x384xf32> to vector<8x128xf32>
    %c1_i32_99 = arith.constant 1 : i32
    %302 = tpu.dynamic_rotate %301 by %c1_i32_99 dim 0 : vector<8x128xf32>, i32 -> vector<8x128xf32>
    %303 = arith.mulf %302, %70 : vector<8x128xf32>
    %304 = vector.extract_strided_slice %299 {offsets = [0, 256], sizes = [8, 128], strides = [1, 1]} : vector<8x384xf32> to vector<8x128xf32>
    %c7_i32_100 = arith.constant 7 : i32
    %305 = tpu.dynamic_rotate %304 by %c7_i32_100 dim 0 : vector<8x128xf32>, i32 -> vector<8x128xf32>
    %306 = arith.mulf %305, %74 : vector<8x128xf32>
    %307 = vector.extract_strided_slice %299 {offsets = [0, 128], sizes = [8, 128], strides = [1, 1]} : vector<8x384xf32> to vector<8x128xf32>
    %308 = arith.addf %303, %307 : vector<8x128xf32>
    %309 = arith.addf %308, %306 : vector<8x128xf32>
    %310 = vector.broadcast %300 : vector<1x128xf32> to vector<8x128xf32>
    %311 = arith.addf %309, %310 : vector<8x128xf32>
    %312 = arith.negf %311 : vector<8x128xf32>
    %313 = math.exp %312 : vector<8x128xf32>
    %cst_101 = arith.constant 1.000000e+00 : f32
    %314 = vector.broadcast %cst_101 : f32 to vector<8x128xf32>
    %315 = arith.addf %314, %313 : vector<8x128xf32>
    %316 = arith.divf %314, %315 : vector<8x128xf32>
    %317 = arith.mulf %311, %316 : vector<8x128xf32>
    %318 = arith.addf %317, %296 : vector<8x128xf32>
    %c0_102 = arith.constant 0 : index
    %c2304 = arith.constant 2304 : index
    %319 = vector.load %arg6[%c0_102, %c2304] : memref<128x5376xbf16, #tpu.memory_space<vmem>>, vector<128x384xbf16>
    %320 = arith.truncf %318 : vector<8x128xf32> to vector<8x128xbf16>
    %cst_103 = arith.constant dense<0.000000e+00> : vector<8x384xf32>
    %321 = tpu.matmul %320, %319, %cst_103 {dimension_numbers = #tpu.dot_dimension_numbers<[1], [0], [0], [1], [0, 0, 1, 1], [], []>} : vector<8x128xbf16>, vector<128x384xbf16>, vector<8x384xf32> -> vector<8x384xf32>
    %c0_104 = arith.constant 0 : index
    %c1536_105 = arith.constant 1536 : index
    %322 = vector.load %arg8[%c0_104, %c1536_105] : memref<1x2560xf32, #tpu.memory_space<vmem>>, vector<1x128xf32>
    %323 = vector.extract_strided_slice %321 {offsets = [0, 0], sizes = [8, 128], strides = [1, 1]} : vector<8x384xf32> to vector<8x128xf32>
    %c1_i32_106 = arith.constant 1 : i32
    %324 = tpu.dynamic_rotate %323 by %c1_i32_106 dim 0 : vector<8x128xf32>, i32 -> vector<8x128xf32>
    %325 = arith.mulf %324, %70 : vector<8x128xf32>
    %326 = vector.extract_strided_slice %321 {offsets = [0, 256], sizes = [8, 128], strides = [1, 1]} : vector<8x384xf32> to vector<8x128xf32>
    %c7_i32_107 = arith.constant 7 : i32
    %327 = tpu.dynamic_rotate %326 by %c7_i32_107 dim 0 : vector<8x128xf32>, i32 -> vector<8x128xf32>
    %328 = arith.mulf %327, %74 : vector<8x128xf32>
    %329 = vector.extract_strided_slice %321 {offsets = [0, 128], sizes = [8, 128], strides = [1, 1]} : vector<8x384xf32> to vector<8x128xf32>
    %330 = arith.addf %325, %329 : vector<8x128xf32>
    %331 = arith.addf %330, %328 : vector<8x128xf32>
    %332 = vector.broadcast %322 : vector<1x128xf32> to vector<8x128xf32>
    %333 = arith.addf %331, %332 : vector<8x128xf32>
    %334 = arith.negf %333 : vector<8x128xf32>
    %335 = math.exp %334 : vector<8x128xf32>
    %cst_108 = arith.constant 1.000000e+00 : f32
    %336 = vector.broadcast %cst_108 : f32 to vector<8x128xf32>
    %337 = arith.addf %336, %335 : vector<8x128xf32>
    %338 = arith.divf %336, %337 : vector<8x128xf32>
    %339 = arith.mulf %333, %338 : vector<8x128xf32>
    %340 = arith.addf %339, %295 : vector<8x128xf32>
    %c0_109 = arith.constant 0 : index
    %c4736 = arith.constant 4736 : index
    %341 = vector.load %arg6[%c0_109, %c4736] : memref<128x5376xbf16, #tpu.memory_space<vmem>>, vector<128x256xbf16>
    %342 = arith.truncf %340 : vector<8x128xf32> to vector<8x128xbf16>
    %cst_110 = arith.constant dense<0.000000e+00> : vector<8x256xf32>
    %343 = tpu.matmul %342, %341, %cst_110 {dimension_numbers = #tpu.dot_dimension_numbers<[1], [0], [0], [1], [0, 0, 1, 1], [], []>} : vector<8x128xbf16>, vector<128x256xbf16>, vector<8x256xf32> -> vector<8x256xf32>
    %c0_111 = arith.constant 0 : index
    %c0_112 = arith.constant 0 : index
    %344 = vector.load %arg11[%c0_111, %c0_112] : memref<16x8xbf16, #tpu.memory_space<vmem>>, vector<16x8xbf16>
    %345 = arith.truncf %343 : vector<8x256xf32> to vector<8x256xbf16>
    %cst_113 = arith.constant dense<0.000000e+00> : vector<16x256xf32>
    %346 = tpu.matmul %344, %345, %cst_113 {dimension_numbers = #tpu.dot_dimension_numbers<[1], [0], [0], [1], [0, 0, 1, 1], [], []>} : vector<16x8xbf16>, vector<8x256xbf16>, vector<16x256xf32> -> vector<16x256xf32>
    %347 = vector.extract_strided_slice %80 {offsets = [0, 128], sizes = [16, 128], strides = [1, 1]} : vector<16x256xf32> to vector<16x128xf32>
    %c0_114 = arith.constant 0 : index
    %c0_115 = arith.constant 0 : index
    %348 = vector.load %arg7[%c0_114, %c0_115] : memref<256x1024xbf16, #tpu.memory_space<vmem>>, vector<256x512xbf16>
    %349 = arith.truncf %346 : vector<16x256xf32> to vector<16x256xbf16>
    %cst_116 = arith.constant dense<0.000000e+00> : vector<16x512xf32>
    %350 = tpu.matmul %349, %348, %cst_116 {dimension_numbers = #tpu.dot_dimension_numbers<[1], [0], [0], [1], [0, 0, 1, 1], [], []>} : vector<16x256xbf16>, vector<256x512xbf16>, vector<16x512xf32> -> vector<16x512xf32>
    %c0_117 = arith.constant 0 : index
    %c2688 = arith.constant 2688 : index
    %351 = vector.load %arg6[%c0_117, %c2688] : memref<128x5376xbf16, #tpu.memory_space<vmem>>, vector<128x512xbf16>
    %352 = arith.truncf %190 : vector<16x128xf32> to vector<16x128xbf16>
    %cst_118 = arith.constant dense<0.000000e+00> : vector<16x512xf32>
    %353 = tpu.matmul %352, %351, %cst_118 {dimension_numbers = #tpu.dot_dimension_numbers<[1], [0], [0], [1], [0, 0, 1, 1], [], []>} : vector<16x128xbf16>, vector<128x512xbf16>, vector<16x512xf32> -> vector<16x512xf32>
    %354 = arith.addf %350, %353 : vector<16x512xf32>
    %c0_119 = arith.constant 0 : index
    %c1664 = arith.constant 1664 : index
    %355 = vector.load %arg8[%c0_119, %c1664] : memref<1x2560xf32, #tpu.memory_space<vmem>>, vector<1x128xf32>
    %356 = vector.extract_strided_slice %354 {offsets = [0, 0], sizes = [16, 128], strides = [1, 1]} : vector<16x512xf32> to vector<16x128xf32>
    %c1_i32_120 = arith.constant 1 : i32
    %357 = tpu.dynamic_rotate %356 by %c1_i32_120 dim 0 : vector<16x128xf32>, i32 -> vector<16x128xf32>
    %358 = arith.mulf %357, %45 : vector<16x128xf32>
    %359 = vector.extract_strided_slice %354 {offsets = [0, 256], sizes = [16, 128], strides = [1, 1]} : vector<16x512xf32> to vector<16x128xf32>
    %c15_i32_121 = arith.constant 15 : i32
    %360 = tpu.dynamic_rotate %359 by %c15_i32_121 dim 0 : vector<16x128xf32>, i32 -> vector<16x128xf32>
    %361 = arith.mulf %360, %49 : vector<16x128xf32>
    %362 = vector.extract_strided_slice %354 {offsets = [0, 128], sizes = [16, 128], strides = [1, 1]} : vector<16x512xf32> to vector<16x128xf32>
    %363 = arith.addf %358, %362 : vector<16x128xf32>
    %364 = arith.addf %363, %361 : vector<16x128xf32>
    %365 = vector.broadcast %355 : vector<1x128xf32> to vector<16x128xf32>
    %366 = arith.addf %364, %365 : vector<16x128xf32>
    %367 = arith.negf %366 : vector<16x128xf32>
    %368 = math.exp %367 : vector<16x128xf32>
    %cst_122 = arith.constant 1.000000e+00 : f32
    %369 = vector.broadcast %cst_122 : f32 to vector<16x128xf32>
    %370 = arith.addf %369, %368 : vector<16x128xf32>
    %371 = arith.divf %369, %370 : vector<16x128xf32>
    %372 = arith.mulf %366, %371 : vector<16x128xf32>
    %373 = arith.addf %372, %347 : vector<16x128xf32>
    %c0_123 = arith.constant 0 : index
    %c3200 = arith.constant 3200 : index
    %374 = vector.load %arg6[%c0_123, %c3200] : memref<128x5376xbf16, #tpu.memory_space<vmem>>, vector<128x384xbf16>
    %375 = arith.truncf %373 : vector<16x128xf32> to vector<16x128xbf16>
    %cst_124 = arith.constant dense<0.000000e+00> : vector<16x384xf32>
    %376 = tpu.matmul %375, %374, %cst_124 {dimension_numbers = #tpu.dot_dimension_numbers<[1], [0], [0], [1], [0, 0, 1, 1], [], []>} : vector<16x128xbf16>, vector<128x384xbf16>, vector<16x384xf32> -> vector<16x384xf32>
    %c0_125 = arith.constant 0 : index
    %c1792 = arith.constant 1792 : index
    %377 = vector.load %arg8[%c0_125, %c1792] : memref<1x2560xf32, #tpu.memory_space<vmem>>, vector<1x128xf32>
    %378 = vector.extract_strided_slice %376 {offsets = [0, 0], sizes = [16, 128], strides = [1, 1]} : vector<16x384xf32> to vector<16x128xf32>
    %c1_i32_126 = arith.constant 1 : i32
    %379 = tpu.dynamic_rotate %378 by %c1_i32_126 dim 0 : vector<16x128xf32>, i32 -> vector<16x128xf32>
    %380 = arith.mulf %379, %45 : vector<16x128xf32>
    %381 = vector.extract_strided_slice %376 {offsets = [0, 256], sizes = [16, 128], strides = [1, 1]} : vector<16x384xf32> to vector<16x128xf32>
    %c15_i32_127 = arith.constant 15 : i32
    %382 = tpu.dynamic_rotate %381 by %c15_i32_127 dim 0 : vector<16x128xf32>, i32 -> vector<16x128xf32>
    %383 = arith.mulf %382, %49 : vector<16x128xf32>
    %384 = vector.extract_strided_slice %376 {offsets = [0, 128], sizes = [16, 128], strides = [1, 1]} : vector<16x384xf32> to vector<16x128xf32>
    %385 = arith.addf %380, %384 : vector<16x128xf32>
    %386 = arith.addf %385, %383 : vector<16x128xf32>
    %387 = vector.broadcast %377 : vector<1x128xf32> to vector<16x128xf32>
    %388 = arith.addf %386, %387 : vector<16x128xf32>
    %389 = arith.negf %388 : vector<16x128xf32>
    %390 = math.exp %389 : vector<16x128xf32>
    %cst_128 = arith.constant 1.000000e+00 : f32
    %391 = vector.broadcast %cst_128 : f32 to vector<16x128xf32>
    %392 = arith.addf %391, %390 : vector<16x128xf32>
    %393 = arith.divf %391, %392 : vector<16x128xf32>
    %394 = arith.mulf %388, %393 : vector<16x128xf32>
    %395 = vector.extract_strided_slice %354 {offsets = [0, 384], sizes = [16, 128], strides = [1, 1]} : vector<16x512xf32> to vector<16x128xf32>
    %396 = arith.addf %394, %395 : vector<16x128xf32>
    %c0_129 = arith.constant 0 : index
    %c1920_130 = arith.constant 1920 : index
    %397 = vector.load %arg8[%c0_129, %c1920_130] : memref<1x2560xf32, #tpu.memory_space<vmem>>, vector<1x128xf32>
    %398 = vector.broadcast %397 : vector<1x128xf32> to vector<16x128xf32>
    %399 = arith.addf %396, %398 : vector<16x128xf32>
    %c0_131 = arith.constant 0 : index
    %c4992 = arith.constant 4992 : index
    %400 = vector.load %arg6[%c0_131, %c4992] : memref<128x5376xbf16, #tpu.memory_space<vmem>>, vector<128x256xbf16>
    %401 = arith.truncf %399 : vector<16x128xf32> to vector<16x128xbf16>
    %cst_132 = arith.constant dense<0.000000e+00> : vector<16x256xf32>
    %402 = tpu.matmul %401, %400, %cst_132 {dimension_numbers = #tpu.dot_dimension_numbers<[1], [0], [0], [1], [0, 0, 1, 1], [], []>} : vector<16x128xbf16>, vector<128x256xbf16>, vector<16x256xf32> -> vector<16x256xf32>
    %c0_133 = arith.constant 0 : index
    %c0_134 = arith.constant 0 : index
    %403 = vector.load %arg12[%c0_133, %c0_134] : memref<32x16xbf16, #tpu.memory_space<vmem>>, vector<32x16xbf16>
    %404 = arith.truncf %402 : vector<16x256xf32> to vector<16x256xbf16>
    %cst_135 = arith.constant dense<0.000000e+00> : vector<32x256xf32>
    %405 = tpu.matmul %403, %404, %cst_135 {dimension_numbers = #tpu.dot_dimension_numbers<[1], [0], [0], [1], [0, 0, 1, 1], [], []>} : vector<32x16xbf16>, vector<16x256xbf16>, vector<32x256xf32> -> vector<32x256xf32>
    %406 = vector.extract_strided_slice %78 {offsets = [0, 128], sizes = [32, 128], strides = [1, 1]} : vector<32x256xf32> to vector<32x128xf32>
    %c0_136 = arith.constant 0 : index
    %c512_137 = arith.constant 512 : index
    %407 = vector.load %arg7[%c0_136, %c512_137] : memref<256x1024xbf16, #tpu.memory_space<vmem>>, vector<256x512xbf16>
    %408 = arith.truncf %405 : vector<32x256xf32> to vector<32x256xbf16>
    %cst_138 = arith.constant dense<0.000000e+00> : vector<32x512xf32>
    %409 = tpu.matmul %408, %407, %cst_138 {dimension_numbers = #tpu.dot_dimension_numbers<[1], [0], [0], [1], [0, 0, 1, 1], [], []>} : vector<32x256xbf16>, vector<256x512xbf16>, vector<32x512xf32> -> vector<32x512xf32>
    %c0_139 = arith.constant 0 : index
    %c3584 = arith.constant 3584 : index
    %410 = vector.load %arg6[%c0_139, %c3584] : memref<128x5376xbf16, #tpu.memory_space<vmem>>, vector<128x512xbf16>
    %411 = arith.truncf %130 : vector<32x128xf32> to vector<32x128xbf16>
    %cst_140 = arith.constant dense<0.000000e+00> : vector<32x512xf32>
    %412 = tpu.matmul %411, %410, %cst_140 {dimension_numbers = #tpu.dot_dimension_numbers<[1], [0], [0], [1], [0, 0, 1, 1], [], []>} : vector<32x128xbf16>, vector<128x512xbf16>, vector<32x512xf32> -> vector<32x512xf32>
    %413 = arith.addf %409, %412 : vector<32x512xf32>
    %c0_141 = arith.constant 0 : index
    %c2048 = arith.constant 2048 : index
    %414 = vector.load %arg8[%c0_141, %c2048] : memref<1x2560xf32, #tpu.memory_space<vmem>>, vector<1x128xf32>
    %415 = vector.extract_strided_slice %413 {offsets = [0, 0], sizes = [32, 128], strides = [1, 1]} : vector<32x512xf32> to vector<32x128xf32>
    %c1_i32_142 = arith.constant 1 : i32
    %416 = tpu.dynamic_rotate %415 by %c1_i32_142 dim 0 : vector<32x128xf32>, i32 -> vector<32x128xf32>
    %417 = arith.mulf %416, %20 : vector<32x128xf32>
    %418 = vector.extract_strided_slice %413 {offsets = [0, 256], sizes = [32, 128], strides = [1, 1]} : vector<32x512xf32> to vector<32x128xf32>
    %c31_i32_143 = arith.constant 31 : i32
    %419 = tpu.dynamic_rotate %418 by %c31_i32_143 dim 0 : vector<32x128xf32>, i32 -> vector<32x128xf32>
    %420 = arith.mulf %419, %24 : vector<32x128xf32>
    %421 = vector.extract_strided_slice %413 {offsets = [0, 128], sizes = [32, 128], strides = [1, 1]} : vector<32x512xf32> to vector<32x128xf32>
    %422 = arith.addf %417, %421 : vector<32x128xf32>
    %423 = arith.addf %422, %420 : vector<32x128xf32>
    %424 = vector.broadcast %414 : vector<1x128xf32> to vector<32x128xf32>
    %425 = arith.addf %423, %424 : vector<32x128xf32>
    %426 = arith.negf %425 : vector<32x128xf32>
    %427 = math.exp %426 : vector<32x128xf32>
    %cst_144 = arith.constant 1.000000e+00 : f32
    %428 = vector.broadcast %cst_144 : f32 to vector<32x128xf32>
    %429 = arith.addf %428, %427 : vector<32x128xf32>
    %430 = arith.divf %428, %429 : vector<32x128xf32>
    %431 = arith.mulf %425, %430 : vector<32x128xf32>
    %432 = arith.addf %431, %406 : vector<32x128xf32>
    %c0_145 = arith.constant 0 : index
    %c4096 = arith.constant 4096 : index
    %433 = vector.load %arg6[%c0_145, %c4096] : memref<128x5376xbf16, #tpu.memory_space<vmem>>, vector<128x384xbf16>
    %434 = arith.truncf %432 : vector<32x128xf32> to vector<32x128xbf16>
    %cst_146 = arith.constant dense<0.000000e+00> : vector<32x384xf32>
    %435 = tpu.matmul %434, %433, %cst_146 {dimension_numbers = #tpu.dot_dimension_numbers<[1], [0], [0], [1], [0, 0, 1, 1], [], []>} : vector<32x128xbf16>, vector<128x384xbf16>, vector<32x384xf32> -> vector<32x384xf32>
    %c0_147 = arith.constant 0 : index
    %c2176 = arith.constant 2176 : index
    %436 = vector.load %arg8[%c0_147, %c2176] : memref<1x2560xf32, #tpu.memory_space<vmem>>, vector<1x128xf32>
    %437 = vector.extract_strided_slice %435 {offsets = [0, 0], sizes = [32, 128], strides = [1, 1]} : vector<32x384xf32> to vector<32x128xf32>
    %c1_i32_148 = arith.constant 1 : i32
    %438 = tpu.dynamic_rotate %437 by %c1_i32_148 dim 0 : vector<32x128xf32>, i32 -> vector<32x128xf32>
    %439 = arith.mulf %438, %20 : vector<32x128xf32>
    %440 = vector.extract_strided_slice %435 {offsets = [0, 256], sizes = [32, 128], strides = [1, 1]} : vector<32x384xf32> to vector<32x128xf32>
    %c31_i32_149 = arith.constant 31 : i32
    %441 = tpu.dynamic_rotate %440 by %c31_i32_149 dim 0 : vector<32x128xf32>, i32 -> vector<32x128xf32>
    %442 = arith.mulf %441, %24 : vector<32x128xf32>
    %443 = vector.extract_strided_slice %435 {offsets = [0, 128], sizes = [32, 128], strides = [1, 1]} : vector<32x384xf32> to vector<32x128xf32>
    %444 = arith.addf %439, %443 : vector<32x128xf32>
    %445 = arith.addf %444, %442 : vector<32x128xf32>
    %446 = vector.broadcast %436 : vector<1x128xf32> to vector<32x128xf32>
    %447 = arith.addf %445, %446 : vector<32x128xf32>
    %448 = arith.negf %447 : vector<32x128xf32>
    %449 = math.exp %448 : vector<32x128xf32>
    %cst_150 = arith.constant 1.000000e+00 : f32
    %450 = vector.broadcast %cst_150 : f32 to vector<32x128xf32>
    %451 = arith.addf %450, %449 : vector<32x128xf32>
    %452 = arith.divf %450, %451 : vector<32x128xf32>
    %453 = arith.mulf %447, %452 : vector<32x128xf32>
    %454 = vector.extract_strided_slice %413 {offsets = [0, 384], sizes = [32, 128], strides = [1, 1]} : vector<32x512xf32> to vector<32x128xf32>
    %455 = arith.addf %453, %454 : vector<32x128xf32>
    %c0_151 = arith.constant 0 : index
    %c2304_152 = arith.constant 2304 : index
    %456 = vector.load %arg8[%c0_151, %c2304_152] : memref<1x2560xf32, #tpu.memory_space<vmem>>, vector<1x128xf32>
    %457 = vector.broadcast %456 : vector<1x128xf32> to vector<32x128xf32>
    %458 = arith.addf %455, %457 : vector<32x128xf32>
    %c0_153 = arith.constant 0 : index
    %c5248 = arith.constant 5248 : index
    %459 = vector.load %arg6[%c0_153, %c5248] : memref<128x5376xbf16, #tpu.memory_space<vmem>>, vector<128x128xbf16>
    %460 = arith.truncf %458 : vector<32x128xf32> to vector<32x128xbf16>
    %cst_154 = arith.constant dense<0.000000e+00> : vector<32x128xf32>
    %461 = tpu.matmul %460, %459, %cst_154 {dimension_numbers = #tpu.dot_dimension_numbers<[1], [0], [0], [1], [0, 0, 1, 1], [], []>} : vector<32x128xbf16>, vector<128x128xbf16>, vector<32x128xf32> -> vector<32x128xf32>
    %c0_155 = arith.constant 0 : index
    %c2432 = arith.constant 2432 : index
    %462 = vector.load %arg8[%c0_155, %c2432] : memref<1x2560xf32, #tpu.memory_space<vmem>>, vector<1x128xf32>
    %463 = vector.broadcast %462 : vector<1x128xf32> to vector<32x128xf32>
    %464 = arith.addf %461, %463 : vector<32x128xf32>
    %c0_156 = arith.constant 0 : index
    %c0_157 = arith.constant 0 : index
    %c0_158 = arith.constant 0 : index
    %465 = vector.load %arg13[%c0_156, %c0_157, %c0_158] : memref<1x32x128xf32, #tpu.memory_space<vmem>>, vector<1x32x128xf32>
    %466 = vector.shape_cast %465 : vector<1x32x128xf32> to vector<32x128xf32>
    %467 = vector.shape_cast %464 : vector<32x128xf32> to vector<1x32x128xf32>
    tpu.vector_store %arg13[%c0_156, %c0_157, %c0_158], %467 {strides = array<i32>} : memref<1x32x128xf32, #tpu.memory_space<vmem>>, vector<1x32x128xf32>,
    return
  }
  func.func @transform_0(%arg0: i32) -> (i32, i32, i32) {
    %c0_i32 = arith.constant 0 : i32
    %c0_i32_0 = arith.constant 0 : i32
    %c0_i32_1 = arith.constant 0 : i32
    return %arg0, %c0_i32, %c0_i32_0 : i32, i32, i32
  }
  func.func @transform_1(%arg0: i32) -> (i32, i32, i32) {
    %c0_i32 = arith.constant 0 : i32
    %c0_i32_0 = arith.constant 0 : i32
    %c0_i32_1 = arith.constant 0 : i32
    return %arg0, %c0_i32, %c0_i32_0 : i32, i32, i32
  }
  func.func @transform_2(%arg0: i32) -> (i32, i32, i32) {
    %c0_i32 = arith.constant 0 : i32
    %c0_i32_0 = arith.constant 0 : i32
    %c0_i32_1 = arith.constant 0 : i32
    return %arg0, %c0_i32, %c0_i32_0 : i32, i32, i32
  }
  func.func @transform_3(%arg0: i32) -> (i32, i32, i32) {
    %c0_i32 = arith.constant 0 : i32
    %c0_i32_0 = arith.constant 0 : i32
    %c0_i32_1 = arith.constant 0 : i32
    return %arg0, %c0_i32, %c0_i32_0 : i32, i32, i32
  }
  func.func @transform_4(%arg0: i32) -> (i32, i32) {
    %c0_i32 = arith.constant 0 : i32
    %c0_i32_0 = arith.constant 0 : i32
    %c0_i32_1 = arith.constant 0 : i32
    return %c0_i32, %c0_i32_0 : i32, i32
  }
  func.func @transform_5(%arg0: i32) -> (i32, i32) {
    %c0_i32 = arith.constant 0 : i32
    %c0_i32_0 = arith.constant 0 : i32
    %c0_i32_1 = arith.constant 0 : i32
    return %c0_i32, %c0_i32_0 : i32, i32
  }
  func.func @transform_6(%arg0: i32) -> (i32, i32) {
    %c0_i32 = arith.constant 0 : i32
    %c0_i32_0 = arith.constant 0 : i32
    %c0_i32_1 = arith.constant 0 : i32
    return %c0_i32, %c0_i32_0 : i32, i32
  }
  func.func @transform_7(%arg0: i32) -> (i32, i32) {
    %c0_i32 = arith.constant 0 : i32
    %c0_i32_0 = arith.constant 0 : i32
    %c0_i32_1 = arith.constant 0 : i32
    return %c0_i32, %c0_i32_0 : i32, i32
  }
  func.func @transform_8(%arg0: i32) -> (i32, i32) {
    %c0_i32 = arith.constant 0 : i32
    %c0_i32_0 = arith.constant 0 : i32
    %c0_i32_1 = arith.constant 0 : i32
    return %c0_i32, %c0_i32_0 : i32, i32
  }
  func.func @transform_9(%arg0: i32) -> (i32, i32) {
    %c0_i32 = arith.constant 0 : i32
    %c0_i32_0 = arith.constant 0 : i32
    %c0_i32_1 = arith.constant 0 : i32
    return %c0_i32, %c0_i32_0 : i32, i32
  }
  func.func @transform_10(%arg0: i32) -> (i32, i32) {
    %c0_i32 = arith.constant 0 : i32
    %c0_i32_0 = arith.constant 0 : i32
    %c0_i32_1 = arith.constant 0 : i32
    return %c0_i32, %c0_i32_0 : i32, i32
  }
  func.func @transform_11(%arg0: i32) -> (i32, i32) {
    %c0_i32 = arith.constant 0 : i32
    %c0_i32_0 = arith.constant 0 : i32
    %c0_i32_1 = arith.constant 0 : i32
    return %c0_i32, %c0_i32_0 : i32, i32
  }
  func.func @transform_12(%arg0: i32) -> (i32, i32, i32) {
    %c0_i32 = arith.constant 0 : i32
    %c0_i32_0 = arith.constant 0 : i32
    %c0_i32_1 = arith.constant 0 : i32
    return %arg0, %c0_i32, %c0_i32_0 : i32, i32, i32
  }
}

</mosaic_0001>

<bundles_post_ra>
// kernel: tile.209
= control target key start
LH: loop header
LB: loop body
LE: loop exit
PB: predicated region body
PF: predicated region fallthrough
CT: control target
= control target key end

     0   :  { %s7_s6 = smov 3  ;;  %s21_s9 = smov 3  ;;  %vm4_vm0 = vcmask 130048   ;;  %vm11_vm1 = vcmask 1048448   ;;  %vm18_vm2 = vcmask 917248   ;;  %vm25_vm3 = vcmask 786048   ;;  %s119_s0 = inlined_call_operand.vmem [shape: f32[2,8,16], index: 0, kind: input, shape index: {}]   ;;  %s120_s1 = inlined_call_operand.vmem [shape: f32[2,128], index: 1, kind: output, shape index: {}]  }
   0x1   :  { %v61_v0 = vld [vmem:[%s119_s0 + $0x7] ss:$8 sm:%s7_s6]   ;;  %s75_s10 = smov 112   ;;  %v63_v1 = vld [vmem:[%s119_s0 + $0x5] ss:$8 sm:%s21_s9]   ;;  %s14_s13 = smov 3 }
   0x2   :  { %9 = vrot.lane.b32.xlu0 %v61_v0, %s75_s10  ;;  %s76_s14 = smov 80   ;;  %v62_v2 = vld [vmem:[%s119_s0 + $0x6] ss:$8 sm:%s14_s13]   ;;  %s28_s17 = smov 3  ;;  %vm32_vm4 = vcmask 654848   ;;  %vm39_vm5 = vcmask 523648  }
   0x3   :  { %23 = vrot.lane.b32.xlu1 %v63_v1, %s76_s14  ;;  %v64_v3 = vld [vmem:[%s119_s0 + $0x4] ss:$8 sm:%s28_s17]   ;;  %s35_s20 = smov 3  ;;  %s42_s21 = smov 3  ;;  %vm46_vm6 = vcmask 392448   ;;  %vm53_vm7 = vcmask 261248  }
   0x4   :  { %s77_s22 = smov 96   ;;  %s78_s23 = smov 64   ;;  %v65_v4 = vld [vmem:[%s119_s0 + $0x3] ss:$8 sm:%s35_s20]   ;;  %v66_v5 = vld [vmem:[%s119_s0 + $0x2] ss:$8 sm:%s42_s21]  }
   0x5   :  { %s2_s26 = smov 3  ;;  %s49_s29 = smov 3 }
   0x6   :  { %16 = vrot.lane.b32.xlu0 %v62_v2, %s77_s22  ;;  %v3_v6 = vld [vmem:[%s119_s0] ss:$8 sm:%s2_s26]   ;;  %s79_s3 = smov 48   ;;  %s80_s4 = smov 32  }
   0x7   :  { %30 = vrot.lane.b32.xlu1 %v64_v3, %s78_s23  ;;  %5 = vst.msk [vmem:[#allocation0] sm:$0x3] %vm4_vm0, %v3_v6   ;;  %v67_v7 = vld [vmem:[%s119_s0 + $0x1] ss:$8 sm:%s49_s29]   ;;  %s81_s0 = smov 16  }
   0xa   :  { %37 = vrot.lane.b32.xlu0 %v65_v4, %s79_s3 }
   0xb   :  { %44 = vrot.lane.b32.xlu1 %v66_v5, %s80_s4 }
   0xe   :  { %51 = vrot.lane.b32.xlu0 %v67_v7, %s81_s0 }
  0x74   :  { %v10_v8 = vpop.permute.xlu0 %9  }
  0x75   :  { %12 = vst.msk [vmem:[#allocation0] sm:$0x3] %vm11_vm1, %v10_v8   ;;  %v24_v9 = vpop.permute.xlu1 %23  }
  0x78   :  { %v17_v10 = vpop.permute.xlu0 %16  }
  0x79   :  { %19 = vst.msk [vmem:[#allocation0] sm:$0x3] %vm18_vm2, %v17_v10   ;;  %v31_v11 = vpop.permute.xlu1 %30  }
  0x7a   :  { %26 = vst.msk [vmem:[#allocation0] sm:$0x3] %vm25_vm3, %v24_v9  }
  0x7b   :  { %33 = vst.msk [vmem:[#allocation0] sm:$0x3] %vm32_vm4, %v31_v11  }
  0x7c   :  { %v38_v12 = vpop.permute.xlu0 %37  }
  0x7d   :  { %40 = vst.msk [vmem:[#allocation0] sm:$0x3] %vm39_vm5, %v38_v12   ;;  %v45_v13 = vpop.permute.xlu1 %44  }
  0x7e   :  { %47 = vst.msk [vmem:[#allocation0] sm:$0x3] %vm46_vm6, %v45_v13  }
  0x80   :  { %v52_v14 = vpop.permute.xlu0 %51  }
  0x81   :  { %54 = vst.msk [vmem:[#allocation0] sm:$0x3] %vm53_vm7, %v52_v14  }
  0x88   :  { %v58_v15 = vld [vmem:[#allocation0] sm:$0x3] }
  0x89   :  { %60 = vst [vmem:[%s120_s1] sm:$0x3] %v58_v15 }

// kernel: tile.219
= control target key start
LH: loop header
LB: loop body
LE: loop exit
PB: predicated region body
PF: predicated region fallthrough
CT: control target
= control target key end

     0   :  { %s29_s10 = smov 3  ;;  %s10_s11 = smov 3  ;;  %vm12_vm0 = vcmask 261120   ;;  %vm19_vm1 = vcmask 1048320   ;;  %vm26_vm2 = vcmask 785920   ;;  %vm33_vm3 = vcmask 523520   ;;  %s67_s0 = inlined_call_operand.vmem [shape: f32[2,4,32], index: 0, kind: input, shape index: {}]   ;;  %s68_s1 = inlined_call_operand.vmem [shape: f32[2,128], index: 1, kind: output, shape index: {}]  }
   0x1   :  { %v41_v0 = vld [vmem:[%s67_s0 + $0x4] sm:$0xf]  ;;  %v8_v1 = vld [vmem:[%s67_s0] sm:$0xf]  ;;  %s15_s0 = smov 3  ;;  %s22_s12 = smov 3 }
   0x2   :  { %7 = vst [vmem:[#allocation1 + $0x8] sm:$0xf] %v41_v0  ;;  %9 = vst [vmem:[#allocation1] sm:$0xf] %v8_v1  ;;  %s45_s13 = smov 96   ;;  %s46_s14 = smov 32  }
   0x3   :  { %s47_s15 = smov 64  }
   0x9   :  { %v16_v2 = vld [vmem:[#allocation1 + $0x3] ss:$8 sm:%s15_s0]   ;;  %v30_v3 = vld [vmem:[#allocation1 + $0x1] ss:$8 sm:%s29_s10]   ;;  %v11_v4 = vld [vmem:[#allocation1] ss:$8 sm:%s10_s11]  }
   0xa   :  { %17 = vrot.lane.b32.xlu0 %v16_v2, %s45_s13  ;;  %31 = vrot.lane.b32.xlu1 %v30_v3, %s46_s14  ;;  %v23_v5 = vld [vmem:[#allocation1 + $0x2] ss:$8 sm:%s22_s12]   ;;  %13 = vst.msk [vmem:[#allocation0] sm:$0x3] %vm12_vm0, %v11_v4  }
   0xe   :  { %24 = vrot.lane.b32.xlu0 %v23_v5, %s47_s15 }
  0x7c   :  { %v18_v6 = vpop.permute.xlu0 %17   ;;  %v32_v7 = vpop.permute.xlu1 %31  }
  0x7d   :  { %20 = vst.msk [vmem:[#allocation0] sm:$0x3] %vm19_vm1, %v18_v6  }
  0x80   :  { %v25_v8 = vpop.permute.xlu0 %24  }
  0x81   :  { %27 = vst.msk [vmem:[#allocation0] sm:$0x3] %vm26_vm2, %v25_v8  }
  0x82   :  { %34 = vst.msk [vmem:[#allocation0] sm:$0x3] %vm33_vm3, %v32_v7  }
  0x89   :  { %v38_v9 = vld [vmem:[#allocation0] sm:$0x3] }
  0x8a   :  { %40 = vst [vmem:[%s68_s1] sm:$0x3] %v38_v9 }

// kernel: tile.199
= control target key start
LH: loop header
LB: loop body
LE: loop exit
PB: predicated region body
PF: predicated region fallthrough
CT: control target
= control target key end

     0   :  { %s7_s6 = smov 3  ;;  %s21_s9 = smov 3  ;;  %vm4_vm0 = vcmask 64512   ;;  %vm11_vm1 = vcmask 1048512   ;;  %vm18_vm2 = vcmask 982912   ;;  %vm25_vm3 = vcmask 917312   ;;  %s223_s0 = inlined_call_operand.vmem [shape: f32[2,16,8], index: 0, kind: input, shape index: {}]   ;;  %s224_s1 = inlined_call_operand.vmem [shape: f32[2,128], index: 1, kind: output, shape index: {}]  }
   0x1   :  { %v117_v0 = vld [vmem:[%s223_s0 + $0xf] ss:$16 sm:%s7_s6]   ;;  %s147_s10 = smov 120   ;;  %v119_v1 = vld [vmem:[%s223_s0 + $0xd] ss:$16 sm:%s21_s9]   ;;  %s14_s13 = smov 3 }
   0x2   :  { %9 = vrot.lane.b32.xlu0 %v117_v0, %s147_s10  ;;  %s148_s14 = smov 104   ;;  %v118_v2 = vld [vmem:[%s223_s0 + $0xe] ss:$16 sm:%s14_s13]   ;;  %s28_s17 = smov 3  ;;  %vm32_vm4 = vcmask 851712   ;;  %vm39_vm5 = vcmask 786112  }
   0x3   :  { %23 = vrot.lane.b32.xlu1 %v119_v1, %s148_s14  ;;  %v120_v3 = vld [vmem:[%s223_s0 + $0xc] ss:$16 sm:%s28_s17]   ;;  %s35_s20 = smov 3  ;;  %s42_s21 = smov 3  ;;  %vm46_vm6 = vcmask 720512   ;;  %vm53_vm7 = vcmask 654912  }
   0x4   :  { %s149_s22 = smov 112   ;;  %s150_s23 = smov 96   ;;  %v121_v4 = vld [vmem:[%s223_s0 + $0xb] ss:$16 sm:%s35_s20]   ;;  %v122_v5 = vld [vmem:[%s223_s0 + $0xa] ss:$16 sm:%s42_s21]  }
   0x5   :  { %s49_s28 = smov 3  ;;  %s56_s29 = smov 3  ;;  %vm60_vm8 = vcmask 589312   ;;  %vm67_vm9 = vcmask 523712   ;;  %vm74_vm10 = vcmask 458112   ;;  %vm81_vm11 = vcmask 392512  }
   0x6   :  { %16 = vrot.lane.b32.xlu0 %v118_v2, %s149_s22  ;;  %s151_s30 = smov 88   ;;  %s152_s2 = smov 80   ;;  %v123_v6 = vld [vmem:[%s223_s0 + $0x9] ss:$16 sm:%s49_s28]   ;;  %vm88_vm12 = vcmask 326912   ;;  %vm95_vm13 = vcmask 261312  }
   0x7   :  { %30 = vrot.lane.b32.xlu1 %v120_v3, %s150_s23  ;;  %v124_v7 = vld [vmem:[%s223_s0 + $0x8] ss:$16 sm:%s56_s29]   ;;  %s63_s7 = smov 3  ;;  %s70_s8 = smov 3  ;;  %vm102_vm14 = vcmask 195712   ;;  %vm109_vm15 = vcmask 130112  }
   0x8   :  { %s153_s9 = smov 72   ;;  %s154_s10 = smov 64   ;;  %v125_v8 = vld [vmem:[%s223_s0 + $0x7] ss:$16 sm:%s63_s7]   ;;  %v126_v9 = vld [vmem:[%s223_s0 + $0x6] ss:$16 sm:%s70_s8]  }
   0x9   :  { %s2_s13 = smov 3  ;;  %s77_s16 = smov 3 }
   0xa   :  { %37 = vrot.lane.b32.xlu0 %v121_v4, %s151_s30  ;;  %v3_v10 = vld [vmem:[%s223_s0] ss:$16 sm:%s2_s13]   ;;  %s84_s19 = smov 3  ;;  %s155_s20 = smov 56  }
   0xb   :  { %44 = vrot.lane.b32.xlu1 %v122_v5, %s152_s2  ;;  %5 = vst.msk [vmem:[#allocation0] sm:$0x3] %vm4_vm0, %v3_v10   ;;  %s156_s21 = smov 48   ;;  %v127_v11 = vld [vmem:[%s223_s0 + $0x5] ss:$16 sm:%s77_s16]   ;;  %s91_s26 = smov 3 }
   0xc   :  { %v128_v12 = vld [vmem:[%s223_s0 + $0x4] ss:$16 sm:%s84_s19]   ;;  %s98_s27 = smov 3  ;;  %s157_s28 = smov 40   ;;  %v129_v13 = vld [vmem:[%s223_s0 + $0x3] ss:$16 sm:%s91_s26]  }
   0xd   :  { %s158_s29 = smov 32   ;;  %v130_v14 = vld [vmem:[%s223_s0 + $0x2] ss:$16 sm:%s98_s27]   ;;  %s105_s5 = smov 3 }
   0xe   :  { %51 = vrot.lane.b32.xlu0 %v123_v6, %s153_s9  ;;  %s159_s6 = smov 24   ;;  %s160_s7 = smov 16   ;;  %v131_v15 = vld [vmem:[%s223_s0 + $0x1] ss:$16 sm:%s105_s5]  }
   0xf   :  { %58 = vrot.lane.b32.xlu1 %v124_v7, %s154_s10  ;;  %s161_s0 = smov 8  }
  0x12   :  { %65 = vrot.lane.b32.xlu0 %v125_v8, %s155_s20 }
  0x13   :  { %72 = vrot.lane.b32.xlu1 %v126_v9, %s156_s21 }
  0x16   :  { %79 = vrot.lane.b32.xlu0 %v127_v11, %s157_s28 }
  0x17   :  { %86 = vrot.lane.b32.xlu1 %v128_v12, %s158_s29 }
  0x1a   :  { %93 = vrot.lane.b32.xlu0 %v129_v13, %s159_s6 }
  0x1b   :  { %100 = vrot.lane.b32.xlu1 %v130_v14, %s160_s7 }
  0x1e   :  { %107 = vrot.lane.b32.xlu0 %v131_v15, %s161_s0 }
  0x74   :  { %v10_v16 = vpop.permute.xlu0 %9  }
  0x75   :  { %12 = vst.msk [vmem:[#allocation0] sm:$0x3] %vm11_vm1, %v10_v16   ;;  %v24_v17 = vpop.permute.xlu1 %23  }
  0x78   :  { %v17_v18 = vpop.permute.xlu0 %16  }
  0x79   :  { %19 = vst.msk [vmem:[#allocation0] sm:$0x3] %vm18_vm2, %v17_v18   ;;  %v31_v19 = vpop.permute.xlu1 %30  }
  0x7a   :  { %26 = vst.msk [vmem:[#allocation0] sm:$0x3] %vm25_vm3, %v24_v17  }
  0x7b   :  { %33 = vst.msk [vmem:[#allocation0] sm:$0x3] %vm32_vm4, %v31_v19  }
  0x7c   :  { %v38_v20 = vpop.permute.xlu0 %37  }
  0x7d   :  { %40 = vst.msk [vmem:[#allocation0] sm:$0x3] %vm39_vm5, %v38_v20   ;;  %v45_v21 = vpop.permute.xlu1 %44  }
  0x7e   :  { %47 = vst.msk [vmem:[#allocation0] sm:$0x3] %vm46_vm6, %v45_v21  }
  0x80   :  { %v52_v22 = vpop.permute.xlu0 %51  }
  0x81   :  { %54 = vst.msk [vmem:[#allocation0] sm:$0x3] %vm53_vm7, %v52_v22   ;;  %v59_v23 = vpop.permute.xlu1 %58  }
  0x82   :  { %61 = vst.msk [vmem:[#allocation0] sm:$0x3] %vm60_vm8, %v59_v23  }
  0x84   :  { %v66_v24 = vpop.permute.xlu0 %65  }
  0x85   :  { %68 = vst.msk [vmem:[#allocation0] sm:$0x3] %vm67_vm9, %v66_v24   ;;  %v73_v25 = vpop.permute.xlu1 %72  }
  0x86   :  { %75 = vst.msk [vmem:[#allocation0] sm:$0x3] %vm74_vm10, %v73_v25  }
  0x88   :  { %v80_v26 = vpop.permute.xlu0 %79  }
  0x89   :  { %82 = vst.msk [vmem:[#allocation0] sm:$0x3] %vm81_vm11, %v80_v26   ;;  %v87_v27 = vpop.permute.xlu1 %86  }
  0x8a   :  { %89 = vst.msk [vmem:[#allocation0] sm:$0x3] %vm88_vm12, %v87_v27  }
  0x8c   :  { %v94_v28 = vpop.permute.xlu0 %93  }
  0x8d   :  { %96 = vst.msk [vmem:[#allocation0] sm:$0x3] %vm95_vm13, %v94_v28   ;;  %v101_v29 = vpop.permute.xlu1 %100  }
  0x8e   :  { %103 = vst.msk [vmem:[#allocation0] sm:$0x3] %vm102_vm14, %v101_v29  }
  0x90   :  { %v108_v30 = vpop.permute.xlu0 %107  }
  0x91   :  { %110 = vst.msk [vmem:[#allocation0] sm:$0x3] %vm109_vm15, %v108_v30  }
  0x98   :  { %v114_v31 = vld [vmem:[#allocation0] sm:$0x3] }
  0x99   :  { %116 = vst [vmem:[%s224_s1] sm:$0x3] %v114_v31 }

// kernel: atlas_forward.1
= control target key start
LH: loop header
LB: loop body
LE: loop exit
PB: predicated region body
PF: predicated region fallthrough
CT: control target
= control target key end

     0   :  { %v7765_v1 = vmov 0   ;;  %vm298_vm0 = vcmask 523264   ;;  %v42_v43 = vlaneseq  ;;  %s7767_s23 = smov 64   ;;  %vm7768_vm7 = vmmov 0   ;;  %s9912_s4 = inlined_call_operand.vmem [shape: bf16[64,1536], index: 4, kind: input, shape index: {}]   ;;  %s9913_s0 = inlined_call_operand.vmem [shape: bf16[1,32,64], index: 0, kind: input, shape index: {}]   ;;  %s9914_s5 = inlined_call_operand.vmem [shape: bf16[128,5376], index: 5, kind: input, shape index: {}]   ;;  %s9915_s7 = inlined_call_operand.vmem [shape: f32[1,2560], index: 7, kind: input, shape index: {}]   ;;  %s9916_s1 = inlined_call_operand.vmem [shape: f32[1,32,256], index: 1, kind: input, shape index: {}]   ;;  %s9917_s8 = inlined_call_operand.vmem [shape: bf16[16,32], index: 8, kind: input, shape index: {}]   ;;  %s9918_s2 = inlined_call_operand.vmem [shape: f32[1,16,256], index: 2, kind: input, shape index: {}]   ;;  %s9919_s9 = inlined_call_operand.vmem [shape: bf16[8,16], index: 9, kind: input, shape index: {}]   ;;  %s9920_s3 = inlined_call_operand.vmem [shape: f32[1,8,384], index: 3, kind: input, shape index: {}]   ;;  %s9921_s10 = inlined_call_operand.vmem [shape: bf16[16,8], index: 10, kind: input, shape index: {}]   ;;  %s9922_s6 = inlined_call_operand.vmem [shape: bf16[256,1024], index: 6, kind: input, shape index: {}]   ;;  %s9923_s11 = inlined_call_operand.vmem [shape: bf16[32,16], index: 11, kind: input, shape index: {}]   ;;  %s9924_s12 = inlined_call_operand.vmem [shape: f32[1,32,128], index: 12, kind: output, shape index: {}]  }
   0x1   :  { %v7111_v0 = vld [vmem:[%s9912_s4 + $0x4] ss:$48 sps:$4 sm:$0xff]   ;;  %337 = vmatprep.mubr.bf16.mxu0 %v7765_v1  ;;  %390 = vmatprep.mubr.bf16.mxu1 %v7765_v1  ;;  %v7113_v2 = vld [vmem:[%s9912_s4 + $0xc] ss:$48 sps:$4 sm:$0xff]   ;;  %v7115_v3 = vld [vmem:[%s9912_s4] ss:$48 sps:$4 sm:$0xff]  }
   0x2   :  { %305 = vmatprep.subr.bf16.mxu0 %v7111_v0  ;;  %v7116_v4 = vld [vmem:[%s9912_s4 + $0x8] ss:$48 sps:$4 sm:$0xff]   ;;  %358 = vmatprep.subr.bf16.mxu1 %v7113_v2  ;;  %v7117_v5 = vld [vmem:[%s9912_s4 + $0x64] ss:$48 sps:$4 sm:$0xff]   ;;  %v7119_v6 = vld [vmem:[%s9912_s4 + $0x6c] ss:$48 sps:$4 sm:$0xff]  }
   0x3   :  { %306 = vmatpush1.bf16.msra.mxu0 %v7115_v3  ;;  %359 = vmatpush1.bf16.msra.mxu1 %v7116_v4  ;;  %v7121_v7 = vld [vmem:[%s9912_s4 + $0x60] ss:$48 sps:$4 sm:$0xff]   ;;  %v7122_v8 = vld [vmem:[%s9912_s4 + $0x68] ss:$48 sps:$4 sm:$0xff]   ;;  %v7123_v9 = vld [vmem:[%s9912_s4 + $0xc4] ss:$48 sps:$4 sm:$0xff]  }
   0x4   :  { %307 = vmatprep.subr.bf16.mxu0 %v7117_v5  ;;  %360 = vmatprep.subr.bf16.mxu1 %v7119_v6  ;;  %v7125_v10 = vld [vmem:[%s9912_s4 + $0xcc] ss:$48 sps:$4 sm:$0xff]   ;;  %v7127_v11 = vld [vmem:[%s9912_s4 + $0xc0] ss:$48 sps:$4 sm:$0xff]   ;;  %v7128_v12 = vld [vmem:[%s9912_s4 + $0xc8] ss:$48 sps:$4 sm:$0xff]  }
   0x5   :  { %v7129_v13 = vld [vmem:[%s9912_s4 + $0x124] ss:$48 sps:$4 sm:$0xff]   ;;  %v7131_v14 = vld [vmem:[%s9912_s4 + $0x12c] ss:$48 sps:$4 sm:$0xff]   ;;  %v7133_v15 = vld [vmem:[%s9912_s4 + $0x120] ss:$48 sps:$4 sm:$0xff]  }
   0x6   :  { %v7134_v16 = vld [vmem:[%s9912_s4 + $0x128] ss:$48 sps:$4 sm:$0xff]   ;;  %v7135_v17 = vld [vmem:[%s9913_s0] sm:$0xff]   ;;  %v7143_v22 = vld [vmem:[%s9914_s5 + $0x154] ss:$168 sps:$4 sm:$0xff]   ;;  %v7969_v44 = vshrl.u32 %v42_v43, 7 }
   0x7   :  { %308 = vmatpush1.bf16.msra.mxu0 %v7121_v7  ;;  %361 = vmatpush1.bf16.msra.mxu1 %v7122_v8  ;;  %v7136_v18 = vld [vmem:[%s9913_s0 + $0x8] sm:$0xff]   ;;  %v7141_v23 = vld [vmem:[%s9914_s5 + $0x150] ss:$168 sps:$4 sm:$0xff]   ;;  %v7151_v28 = vld [vmem:[%s9914_s5 + $0x3f4] ss:$168 sps:$4 sm:$0xff]   ;;  %v7766_v5 = vmov 0.0  }
   0x8   :  { %309 = vmatprep.subr.bf16.mxu0 %v7123_v9  ;;  %362 = vmatprep.subr.bf16.mxu1 %v7125_v10  ;;  %v7139_v19 = vld [vmem:[%s9914_s5 + $0x4] ss:$168 sps:$4 sm:$0xff]   ;;  %v7137_v20 = vld [vmem:[%s9914_s5] ss:$168 sps:$4 sm:$0xff]   ;;  %v7149_v29 = vld [vmem:[%s9914_s5 + $0x3f0] ss:$168 sps:$4 sm:$0xff]  }
   0x9   :  { %v7140_v21 = vld [vmem:[%s9914_s5 + $0x8] ss:$168 sps:$4 sm:$0xff]   ;;  %v7144_v24 = vld [vmem:[%s9914_s5 + $0x158] ss:$168 sps:$4 sm:$0xff]   ;;  %v7147_v25 = vld [vmem:[%s9914_s5 + $0x2a4] ss:$168 sps:$4 sm:$0xff]  }
   0xa   :  { %v7145_v26 = vld [vmem:[%s9914_s5 + $0x2a0] ss:$168 sps:$4 sm:$0xff]   ;;  %v7155_v31 = vld [vmem:[%s9914_s5 + $0x544] ss:$168 sps:$4 sm:$0xff]   ;;  %v7159_v34 = vld [vmem:[%s9914_s5 + $0x694] ss:$168 sps:$4 sm:$0xff]  }
   0xb   :  { %310 = vmatpush1.bf16.msra.mxu0 %v7127_v11  ;;  %363 = vmatpush1.bf16.msra.mxu1 %v7128_v12  ;;  %v7148_v27 = vld [vmem:[%s9914_s5 + $0x2a8] ss:$168 sps:$4 sm:$0xff]   ;;  %v7152_v30 = vld [vmem:[%s9914_s5 + $0x3f8] ss:$168 sps:$4 sm:$0xff]   ;;  %v7163_v37 = vld [vmem:[%s9914_s5 + $0x7e4] ss:$168 sps:$4 sm:$0xff]  }
   0xc   :  { %311 = vmatprep.subr.bf16.mxu0 %v7129_v13  ;;  %364 = vmatprep.subr.bf16.mxu1 %v7131_v14  ;;  %v7153_v32 = vld [vmem:[%s9914_s5 + $0x540] ss:$168 sps:$4 sm:$0xff]   ;;  %v7157_v35 = vld [vmem:[%s9914_s5 + $0x690] ss:$168 sps:$4 sm:$0xff]   ;;  %v7167_v40 = vld [vmem:[%s9914_s5 + $0x934] ss:$168 sps:$4 sm:$0xff]  }
   0xd   :  { %v7156_v33 = vld [vmem:[%s9914_s5 + $0x548] ss:$168 sps:$4 sm:$0xff]   ;;  %v7160_v36 = vld [vmem:[%s9914_s5 + $0x698] ss:$168 sps:$4 sm:$0xff]   ;;  %v7972_v45 = vadd.s32 8, %v7969_v44  ;;  %v45_v46 = vadd.s32 16, %v7969_v44 }
   0xe   :  { %v7161_v38 = vld [vmem:[%s9914_s5 + $0x7e0] ss:$168 sps:$4 sm:$0xff]   ;;  %v7165_v41 = vld [vmem:[%s9914_s5 + $0x930] ss:$168 sps:$4 sm:$0xff]   ;;  %v46_v49 = vadd.s32 24, %v7969_v44  ;;  %v51_v50 = vand.u32 15, %v7969_v44 }
   0xf   :  { %312 = vmatpush1.bf16.msra.mxu0 %v7133_v15  ;;  %365 = vmatpush1.bf16.msra.mxu1 %v7134_v16  ;;  %v7164_v39 = vld [vmem:[%s9914_s5 + $0x7e8] ss:$168 sps:$4 sm:$0xff]   ;;  %v7168_v42 = vld [vmem:[%s9914_s5 + $0x938] ss:$168 sps:$4 sm:$0xff]   ;;  %v58_v47 = vand.u32 15, %v7972_v45  ;;  %v65_v48 = vand.u32 15, %v45_v46 }
  0x10   :  { %650 = vmatprep.subr.bf16.mxu0 %v7139_v19  ;;  %6819 = vmatprep.subr.bf16.mxu1 %v7140_v21  ;;  %vm416_vm1 = vcmp.lt.s32.totalorder %v7969_v44, 1  ;;  %vm429_vm2 = vcmp.lt.s32.totalorder %v7969_v44, 7  ;;  %v72_v55 = vand.u32 15, %v46_v49  ;;  %vm95_vm5 = vcmp.ne.s32.totalorder %v51_v50, 0 }
  0x11   :  { %vm7980_vm3 = vcmp.ne.s32.totalorder %v58_v47, 15  ;;  %vm7984_vm4 = vcmp.ne.s32.totalorder %v65_v48, 0  ;;  %v8007_v9 = vsel %vm95_vm5, 1.0, %v7766_v5  ;;  %vm994_vm8 = vcmask 261120  }
  0x12   :  { %6138 = vmatmul.mubr.msk.bf16.vlgmr.msra.gmra.mrb[0].mxu0 %vm298_vm0, %v7135_v17  ;;  %6140 = vmatmul.mubr.msk.bf16.vlgmr.msra.gmra.mrb[0].mxu1 %vm298_vm0, %v7135_v17  ;;  %vm110_vm6 = vcmp.ne.s32.totalorder %v72_v55, 15  ;;  %v7999_v6 = vsel %vm7980_vm3, 1.0, %v7766_v5  ;;  %v8004_v7 = vsel %vm7984_vm4, 1.0, %v7766_v5  ;;  %vm1685_vm13 = vcmask 130048  }
  0x13   :  { %347 = vmatprep.mubr.bf16.mxu0 %v7765_v1  ;;  %400 = vmatprep.mubr.bf16.mxu1 %v7765_v1  ;;  %v8010_v10 = vsel %vm110_vm6, 1.0, %v7766_v5  ;;  %vm3408_vm3 = vcmask 64512  }
  0x14   :  { %651 = vmatpush1.bf16.msra.mxu0 %v7137_v20  ;;  %6820 = vmatpush3.bf16.msra.mxu1 %v7140_v21 }
  0x15   :  { %652 = vmatprep.subr.bf16.mxu0 %v7143_v22  ;;  %6821 = vmatprep.subr.bf16.mxu1 %v7144_v24  ;;  %v6142_v22 = vld [vmem:[%s9915_s7] ss:$0 sm:$0xff] }
  0x18   :  { %653 = vmatpush1.bf16.msra.mxu0 %v7141_v23  ;;  %6822 = vmatpush3.bf16.msra.mxu1 %v7144_v24 }
  0x19   :  { %654 = vmatprep.subr.bf16.mxu0 %v7147_v25  ;;  %6823 = vmatprep.subr.bf16.mxu1 %v7148_v27 }
  0x1a   :  { %6139 = vmatmul.mubr.msk.bf16.gmra.mrb[4].mxu0 %vm298_vm0, %v7136_v18  ;;  %6141 = vmatmul.mubr.msk.bf16.gmra.mrb[4].mxu1 %vm298_vm0, %v7136_v18 }
  0x1b   :  { %682 = vmatprep.mubr.bf16.mxu0 %v7765_v1 }
  0x1c   :  { %655 = vmatpush1.bf16.msra.mxu0 %v7145_v26  ;;  %6824 = vmatpush3.bf16.msra.mxu1 %v7148_v27 }
  0x1d   :  { %656 = vmatprep.subr.bf16.mxu0 %v7151_v28  ;;  %6825 = vmatprep.subr.bf16.mxu1 %v7152_v30 }
  0x20   :  { %657 = vmatpush1.bf16.msra.mxu0 %v7149_v29  ;;  %6826 = vmatpush3.bf16.msra.mxu1 %v7152_v30 }
  0x21   :  { %658 = vmatprep.subr.bf16.mxu0 %v7155_v31  ;;  %6827 = vmatprep.subr.bf16.mxu1 %v7156_v33 }
  0x24   :  { %659 = vmatpush1.bf16.msra.mxu0 %v7153_v32  ;;  %6828 = vmatpush3.bf16.msra.mxu1 %v7156_v33 }
  0x25   :  { %660 = vmatprep.subr.bf16.mxu0 %v7159_v34  ;;  %6829 = vmatprep.subr.bf16.mxu1 %v7160_v36 }
  0x28   :  { %661 = vmatpush1.bf16.msra.mxu0 %v7157_v35  ;;  %6830 = vmatpush3.bf16.msra.mxu1 %v7160_v36 }
  0x29   :  { %662 = vmatprep.subr.bf16.mxu0 %v7163_v37  ;;  %6831 = vmatprep.subr.bf16.mxu1 %v7164_v39 }
  0x2c   :  { %663 = vmatpush1.bf16.msra.mxu0 %v7161_v38  ;;  %6832 = vmatpush3.bf16.msra.mxu1 %v7164_v39 }
  0x2d   :  { %664 = vmatprep.subr.bf16.mxu0 %v7167_v40  ;;  %6833 = vmatprep.subr.bf16.mxu1 %v7168_v42 }
  0x30   :  { %665 = vmatpush1.bf16.msra.mxu0 %v7165_v41  ;;  %6834 = vmatpush3.bf16.msra.mxu1 %v7168_v42 }
  0xe5   :  { %v339_v53 = vpop.f32.mrb[0].mxu0  ;;  %v392_v54 = vpop.f32.mrb[0].mxu1 }
  0xe6   :  { %v341_v56 = vpop.f32.mrb[1].mxu0  ;;  %v425_v57 = vrot.slane %v392_v54, 1  ;;  %v7988_v58 = vpop.f32.mrb[1].mxu1  ;;  %v412_v59 = vrot.slane %v339_v53, 7 }
  0xe7   :  { %v343_v60 = vpop.f32.mrb[2].mxu0  ;;  %v396_v61 = vpop.f32.mrb[2].mxu1 }
  0xe8   :  { %v413_v62 = vrot.slane %v343_v60, 7  ;;  %v345_v63 = vpop.f32.mrb[3].mxu0  ;;  %v426_v0 = vrot.slane %v396_v61, 1  ;;  %v7990_v2 = vpop.f32.mrb[3].mxu1  ;;  %v181_v61 = vld [vmem:[%s9916_s1 + $0x20] sm:$0xff] }
  0xea   :  { %v419_v3 = vsel %vm416_vm1, %v412_v59, %v413_v62  ;;  %v432_v4 = vsel %vm429_vm2, %v425_v57, %v426_v0 }
  0xeb   :  { %v439_v8 = vadd.f32 %v419_v3, %v345_v63  ;;  %v179_v3 = vld [vmem:[%s9916_s1 + $0x10] sm:$0xff] }
  0xed   :  { %v349_v11 = vpop.f32.mrb[4].mxu0  ;;  %v402_v12 = vpop.f32.mrb[4].mxu1 }
  0xee   :  { %v414_v13 = vrot.slane %v349_v11, 7  ;;  %v427_v14 = vrot.slane %v402_v12, 1  ;;  %v351_v15 = vpop.f32.mrb[5].mxu0  ;;  %v8012_v16 = vpop.f32.mrb[5].mxu1 }
  0xef   :  { %v353_v17 = vpop.f32.mrb[6].mxu0  ;;  %v406_v18 = vpop.f32.mrb[6].mxu1 }
  0xf0   :  { %v431_v19 = vsel %vm429_vm2, %v426_v0, %v427_v14  ;;  %v418_v20 = vsel %vm416_vm1, %v413_v62, %v414_v13  ;;  %v415_v21 = vrot.slane %v353_v17, 7  ;;  %v428_v23 = vrot.slane %v406_v18, 1  ;;  %v355_v24 = vpop.f32.mrb[7].mxu0  ;;  %v8021_v25 = vpop.f32.mrb[7].mxu1  ;;  %v183_v62 = vld [vmem:[%s9916_s1 + $0x30] sm:$0xff]  ;;  %v177_v0 = vld [vmem:[%s9916_s1] sm:$0xff] }
  0xf1   :  { %v435_v26 = vmul.f32 %v7999_v6, %v431_v19  ;;  %v423_v27 = vmul.f32 %v8004_v7, %v418_v20 }
  0xf2   :  { %v420_v28 = vsel %vm416_vm1, %v415_v21, %v412_v59  ;;  %v430_v29 = vsel %vm429_vm2, %v427_v14, %v428_v23  ;;  %v433_v30 = vsel %vm429_vm2, %v428_v23, %v425_v57  ;;  %v417_v31 = vsel %vm416_vm1, %v414_v13, %v415_v21  ;;  %v7170_v23 = vld [vmem:[%s9914_s5 + $0x1dc] ss:$168 sps:$4 sm:$0xff]  }
  0xf3   :  { %v443_v32 = vadd.f32 %v439_v8, %v435_v26  ;;  %v440_v33 = vadd.f32 %v423_v27, %v351_v15  ;;  %v421_v34 = vmul.f32 %v8007_v9, %v420_v28  ;;  %v437_v35 = vmul.f32 %v8010_v10, %v433_v30  ;;  %v7172_v26 = vld [vmem:[%s9914_s5 + $0x47c] ss:$168 sps:$4 sm:$0xff]   ;;  %v7173_v27 = vld [vmem:[%s9914_s5 + $0x5cc] ss:$168 sps:$4 sm:$0xff]  }
  0xf4   :  { %v441_v36 = vadd.f32 %v417_v31, %v355_v24  ;;  %v7171_v24 = vld [vmem:[%s9914_s5 + $0x32c] ss:$168 sps:$4 sm:$0xff]   ;;  %v7174_v28 = vld [vmem:[%s9914_s5 + $0x71c] ss:$168 sps:$4 sm:$0xff]  }
  0xf5   :  { %v438_v37 = vadd.f32 %v421_v34, %v341_v56  ;;  %v444_v38 = vadd.f32 %v440_v33, %v430_v29  ;;  %v453_v39 = vadd.f32 %v6142_v22, %v443_v32  ;;  %v7175_v29 = vld [vmem:[%s9914_s5 + $0x86c] ss:$168 sps:$4 sm:$0xff]   ;;  %v7176_v30 = vld [vmem:[%s9914_s5 + $0x9bc] ss:$168 sps:$4 sm:$0xff]  }
  0xf6   :  { %v445_v40 = vadd.f32 %v441_v36, %v437_v35 }
  0xf7   :  { %v442_v41 = vadd.f32 %v438_v37, %v432_v4  ;;  %v454_v42 = vadd.f32 %v6142_v22, %v444_v38  ;;  %v6144_v43 = vmul.f32 -1.442695, %v453_v39 }
  0xf8   :  { %v455_v46 = vadd.f32 %v6142_v22, %v445_v40 }
  0xf9   :  { %v452_v47 = vadd.f32 %v6142_v22, %v442_v41  ;;  %7645 = vpow2.f32 %v6144_v43  ;;  %v6145_v48 = vmul.f32 -1.442695, %v454_v42  ;;  %v7169_v22 = vld [vmem:[%s9914_s5 + $0x8c] ss:$168 sps:$4 sm:$0xff]  }
  0xfa   :  { %v6146_v49 = vmul.f32 -1.442695, %v455_v46  ;;  %6839 = vmatprep.subr.bf16.mxu0 %v7169_v22 }
  0xfb   :  { %v6143_v50 = vmul.f32 -1.442695, %v452_v47  ;;  %7647 = vpow2.f32 %v6145_v48 }
  0xfc   :  { %7649 = vpow2.f32 %v6146_v49 }
  0xfd   :  { %7651 = vpow2.f32 %v6143_v50 }
 0x103   :  { %v7646_v51 = vpop.eup %7645 }
 0x104   :  { %v469_v52 = vadd.f32 1.0, %v7646_v51 }
 0x105   :  { %v7648_v53 = vpop.eup %7647 }
 0x106   :  { %v7650_v54 = vpop.eup %7649  ;;  %v470_v55 = vadd.f32 1.0, %v7648_v53  ;;  %7653 = vrcp.f32 %v469_v52 }
 0x107   :  { %v7652_v56 = vpop.eup %7651  ;;  %v471_v57 = vadd.f32 1.0, %v7650_v54 }
 0x108   :  { %v468_v59 = vadd.f32 1.0, %v7652_v56  ;;  %7655 = vrcp.f32 %v470_v55 }
 0x109   :  { %7657 = vrcp.f32 %v471_v57  ;;  %v6171_v57 = vld [vmem:[%s9915_s7 + $0x1] ss:$0 sm:$0xff] }
 0x10a   :  { %7659 = vrcp.f32 %v468_v59 }
 0x110   :  { %v7654_v60 = vpop.eup %7653 }
 0x111   :  { %v481_v11 = vmul.f32 %v7654_v60, %v453_v39 }
 0x112   :  { %v7656_v63 = vpop.eup %7655 }
 0x113   :  { %v7658_v4 = vpop.eup %7657  ;;  %v482_v8 = vmul.f32 %v7656_v63, %v454_v42  ;;  %v485_v19 = vadd.f32 %v481_v11, %v179_v3 }
 0x114   :  { %v7660_v12 = vpop.eup %7659  ;;  %v483_v13 = vmul.f32 %v7658_v4, %v455_v46 }
 0x115   :  { %v486_v14 = vadd.f32 %v482_v8, %v181_v61  ;;  %v480_v15 = vmul.f32 %v7660_v12, %v452_v47 }
 0x116   :  { %v487_v17 = vadd.f32 %v483_v13, %v183_v62 }
 0x117   :  { %v484_v18 = vadd.f32 %v480_v15, %v177_v0 }
 0x118   :  { %v521_v20 = vpack.c.bf16 %v487_v17, %v486_v14 }
 0x119   :  { %v520_v21 = vpack.c.bf16 %v485_v19, %v484_v18 }
 0x11b   :  { %683 = vmatmul.mubr.bf16.vlgmr.msra.gmra.mrb[8].mxu0 %v520_v21  ;;  %6835 = vmatprep.mubr.bf16.mxu1 %v520_v21 }
 0x11c   :  { %6836 = vmatmul.mubr.bf16.vlgmr.msra.gmra.mrb[8].mxu1 %v521_v20  ;;  %692 = vmatprep.mubr.bf16.mxu0 %v7765_v1 }
 0x11d   :  { %1171 = vmatprep.mubr.bf16.mxu1 %v7765_v1  ;;  %6840 = vmatpush3.bf16.msra.mxu0 %v7169_v22 }
 0x11e   :  { %6841 = vmatprep.subr.bf16.mxu0 %v7170_v23 }
 0x121   :  { %6842 = vmatpush3.bf16.msra.mxu0 %v7170_v23 }
 0x122   :  { %6843 = vmatprep.subr.bf16.mxu0 %v7171_v24 }
 0x123   :  { %693 = vmatmul.mubr.bf16.gmra.mrb[12].mxu0 %v521_v20 }
 0x125   :  { %6844 = vmatpush3.bf16.msra.mxu0 %v7171_v24 }
 0x126   :  { %6845 = vmatprep.subr.bf16.mxu0 %v7172_v26 }
 0x129   :  { %6846 = vmatpush3.bf16.msra.mxu0 %v7172_v26 }
 0x12a   :  { %6847 = vmatprep.subr.bf16.mxu0 %v7173_v27 }
 0x12d   :  { %6848 = vmatpush3.bf16.msra.mxu0 %v7173_v27 }
 0x12e   :  { %6849 = vmatprep.subr.bf16.mxu0 %v7174_v28 }
 0x131   :  { %6850 = vmatpush3.bf16.msra.mxu0 %v7174_v28 }
 0x132   :  { %6851 = vmatprep.subr.bf16.mxu0 %v7175_v29 }
 0x135   :  { %6852 = vmatpush3.bf16.msra.mxu0 %v7175_v29 }
 0x136   :  { %6853 = vmatprep.subr.bf16.mxu0 %v7176_v30 }
 0x139   :  { %6854 = vmatpush3.bf16.msra.mxu0 %v7176_v30 }
 0x13a   :  { %6859 = vmatprep.subr.bf16.mxu0 %v7766_v5 }
 0x1ee   :  { %v684_v31 = vpop.f32.mrb[8].mxu0 }
 0x1ef   :  { %v686_v32 = vpop.f32.mrb[9].mxu0  ;;  %v6837_v33 = vpop.f32.mrb[8].mxu1  ;;  %v753_v36 = vrot.slane %v684_v31, 7 }
 0x1f0   :  { %v688_v34 = vpop.f32.mrb[10].mxu0  ;;  %v737_v35 = vpop.f32.mrb[9].mxu1  ;;  %v767_v41 = vrot.slane %v6837_v33, 1 }
 0x1f1   :  { %v754_v37 = vrot.slane %v688_v34, 7  ;;  %v765_v38 = vrot.slane %v737_v35, 1  ;;  %v690_v39 = vpop.f32.mrb[11].mxu0  ;;  %v6838_v40 = vpop.f32.mrb[10].mxu1 }
 0x1f2   :  { %v768_v42 = vrot.slane %v6838_v40, 1  ;;  %v740_v43 = vpop.f32.mrb[11].mxu1 }
 0x1f3   :  { %v759_v46 = vsel %vm416_vm1, %v753_v36, %v754_v37  ;;  %v766_v47 = vrot.slane %v740_v43, 1 }
 0x1f4   :  { %v778_v48 = vadd.f32 %v759_v46, %v690_v39  ;;  %v772_v49 = vsel %vm429_vm2, %v768_v42, %v765_v38  ;;  %v769_v50 = vsel %vm429_vm2, %v767_v41, %v768_v42 }
 0x1f5   :  { %v770_v51 = vsel %vm429_vm2, %v766_v47, %v767_v41  ;;  %v771_v52 = vsel %vm429_vm2, %v765_v38, %v766_v47  ;;  %v776_v11 = vmul.f32 %v8010_v10, %v772_v49  ;;  %v6176_v49 = vld [vmem:[%s9915_s7 + $0x2] ss:$0 sm:$0xff] }
 0x1f6   :  { %v774_v53 = vmul.f32 %v7999_v6, %v770_v51  ;;  %v694_v54 = vpop.f32.mrb[12].mxu0 }
 0x1f7   :  { %v755_v55 = vrot.slane %v694_v54, 7  ;;  %v696_v56 = vpop.f32.mrb[13].mxu0 }
 0x1f8   :  { %v782_v59 = vadd.f32 %v778_v48, %v774_v53  ;;  %v698_v60 = vpop.f32.mrb[14].mxu0 }
 0x1f9   :  { %v758_v61 = vsel %vm416_vm1, %v754_v37, %v755_v55  ;;  %v756_v62 = vrot.slane %v698_v60, 7  ;;  %v700_v63 = vpop.f32.mrb[15].mxu0  ;;  %v7180_v60 = vld [vmem:[%s9912_s4 + $0x14] ss:$48 sps:$4 sm:$0xff]  }
 0x1fa   :  { %v763_v0 = vmul.f32 %v8004_v7, %v758_v61  ;;  %v792_v3 = vadd.f32 %v6171_v57, %v782_v59  ;;  %v7178_v59 = vld [vmem:[%s9912_s4 + $0x10] ss:$48 sps:$4 sm:$0xff]   ;;  %v7183_v61 = vld [vmem:[%s9912_s4 + $0x74] ss:$48 sps:$4 sm:$0xff]   ;;  %1139 = vmatprep.subr.bf16.mxu1 %v7180_v60 }
 0x1fb   :  { %v760_v4 = vsel %vm416_vm1, %v756_v62, %v753_v36  ;;  %v757_v8 = vsel %vm416_vm1, %v755_v55, %v756_v62  ;;  %1140 = vmatpush1.bf16.msra.mxu1 %v7178_v59  ;;  %v7181_v62 = vld [vmem:[%s9912_s4 + $0x70] ss:$48 sps:$4 sm:$0xff]   ;;  %v7214_v60 = vld [vmem:[%s9914_s5 + $0x3fc] ss:$168 sps:$4 sm:$0xff]  }
 0x1fc   :  { %v779_v12 = vadd.f32 %v763_v0, %v696_v56  ;;  %v761_v13 = vmul.f32 %v8007_v9, %v760_v4  ;;  %v780_v14 = vadd.f32 %v757_v8, %v700_v63  ;;  %v6173_v15 = vmul.f32 -1.442695, %v792_v3  ;;  %1141 = vmatprep.subr.bf16.mxu1 %v7183_v61  ;;  %v7186_v63 = vld [vmem:[%s9912_s4 + $0xd4] ss:$48 sps:$4 sm:$0xff]   ;;  %v7184_v0 = vld [vmem:[%s9912_s4 + $0xd0] ss:$48 sps:$4 sm:$0xff]  }
 0x1fd   :  { %v7216_v59 = vld [vmem:[%s9914_s5 + $0x400] ss:$168 sps:$4 sm:$0xff]   ;;  %v7217_v61 = vld [vmem:[%s9914_s5 + $0x404] ss:$168 sps:$4 sm:$0xff]  }
 0x1fe   :  { %v783_v17 = vadd.f32 %v779_v12, %v769_v50  ;;  %v777_v18 = vadd.f32 %v761_v13, %v686_v32  ;;  %v784_v19 = vadd.f32 %v780_v14, %v776_v11  ;;  %7661 = vpow2.f32 %v6173_v15 }
 0x1ff   :  { %1142 = vmatpush1.bf16.msra.mxu1 %v7181_v62  ;;  %v7220_v62 = vld [vmem:[%s9914_s5 + $0x550] ss:$168 sps:$4 sm:$0xff]  }
 0x200   :  { %v793_v20 = vadd.f32 %v6171_v57, %v783_v17  ;;  %v781_v21 = vadd.f32 %v777_v18, %v771_v52  ;;  %v794_v22 = vadd.f32 %v6171_v57, %v784_v19  ;;  %1143 = vmatprep.subr.bf16.mxu1 %v7186_v63  ;;  %v7218_v63 = vld [vmem:[%s9914_s5 + $0x54c] ss:$168 sps:$4 sm:$0xff]  }
 0x202   :  { %v6174_v23 = vmul.f32 -1.442695, %v793_v20  ;;  %v6175_v24 = vmul.f32 -1.442695, %v794_v22  ;;  %v791_v26 = vadd.f32 %v6171_v57, %v781_v21 }
 0x203   :  { %1144 = vmatpush1.bf16.msra.mxu1 %v7184_v0  ;;  %v7221_v0 = vld [vmem:[%s9914_s5 + $0x554] ss:$168 sps:$4 sm:$0xff]  }
 0x204   :  { %7663 = vpow2.f32 %v6174_v23  ;;  %v6172_v27 = vmul.f32 -1.442695, %v791_v26 }
 0x205   :  { %7665 = vpow2.f32 %v6175_v24 }
 0x206   :  { %7667 = vpow2.f32 %v6172_v27 }
 0x208   :  { %v7662_v28 = vpop.eup %7661 }
 0x209   :  { %v808_v29 = vadd.f32 1.0, %v7662_v28 }
 0x20b   :  { %7669 = vrcp.f32 %v808_v29 }
 0x20e   :  { %v7664_v30 = vpop.eup %7663 }
 0x20f   :  { %v7666_v31 = vpop.eup %7665  ;;  %v809_v33 = vadd.f32 1.0, %v7664_v30 }
 0x210   :  { %v7668_v34 = vpop.eup %7667  ;;  %v810_v32 = vadd.f32 1.0, %v7666_v31 }
 0x211   :  { %7671 = vrcp.f32 %v809_v33  ;;  %v807_v35 = vadd.f32 1.0, %v7668_v34  ;;  %v7177_v34 = vld [vmem:[%s9917_s8] sm:$0xff]  }
 0x212   :  { %7673 = vrcp.f32 %v810_v32  ;;  %v7189_v32 = vld [vmem:[%s9912_s4 + $0x134] ss:$48 sps:$4 sm:$0xff]  }
 0x213   :  { %7675 = vrcp.f32 %v807_v35  ;;  %v7187_v35 = vld [vmem:[%s9912_s4 + $0x130] ss:$48 sps:$4 sm:$0xff]   ;;  %1145 = vmatprep.subr.bf16.mxu1 %v7189_v32 }
 0x214   :  { %1146 = vmatpush1.bf16.msra.mxu1 %v7187_v35 }
 0x215   :  { %v7670_v36 = vpop.eup %7669 }
 0x216   :  { %v820_v37 = vmul.f32 %v7670_v36, %v792_v3  ;;  %v7192_v36 = vld [vmem:[%s9912_s4 + $0x1c] ss:$48 sps:$4 sm:$0xff]  }
 0x217   :  { %1182 = vmatprep.subr.bf16.mxu1 %v7192_v36 }
 0x218   :  { %v824_v38 = vadd.f32 %v820_v37, %v7990_v2 }
 0x21a   :  { %v835_v2 = vadd.f32 %v6176_v49, %v824_v38 }
 0x21b   :  { %v7672_v39 = vpop.eup %7671 }
 0x21c   :  { %v7674_v40 = vpop.eup %7673  ;;  %v821_v41 = vmul.f32 %v7672_v39, %v793_v20 }
 0x21d   :  { %v7676_v42 = vpop.eup %7675  ;;  %v822_v43 = vmul.f32 %v7674_v40, %v794_v22  ;;  %v7190_v40 = vld [vmem:[%s9912_s4 + $0x18] ss:$48 sps:$4 sm:$0xff]  }
 0x21e   :  { %v825_v46 = vadd.f32 %v821_v41, %v8012_v16  ;;  %v819_v47 = vmul.f32 %v7676_v42, %v791_v26 }
 0x21f   :  { %v826_v48 = vadd.f32 %v822_v43, %v8021_v25  ;;  %v7195_v43 = vld [vmem:[%s9912_s4 + $0x7c] ss:$48 sps:$4 sm:$0xff]  }
 0x220   :  { %v823_v50 = vadd.f32 %v819_v47, %v7988_v58  ;;  %v836_v51 = vadd.f32 %v6176_v49, %v825_v46  ;;  %v7193_v46 = vld [vmem:[%s9912_s4 + $0x78] ss:$48 sps:$4 sm:$0xff]   ;;  %v7198_v47 = vld [vmem:[%s9912_s4 + $0xdc] ss:$48 sps:$4 sm:$0xff]  }
 0x221   :  { %v837_v52 = vadd.f32 %v6176_v49, %v826_v48  ;;  %v7196_v48 = vld [vmem:[%s9912_s4 + $0xd8] ss:$48 sps:$4 sm:$0xff]  }
 0x222   :  { %v834_v53 = vadd.f32 %v6176_v49, %v823_v50  ;;  %v7201_v49 = vld [vmem:[%s9912_s4 + $0x13c] ss:$48 sps:$4 sm:$0xff]   ;;  %v7199_v50 = vld [vmem:[%s9912_s4 + $0x138] ss:$48 sps:$4 sm:$0xff]  }
 0x223   :  { %v8104_v54 = vpack.c.bf16 %v837_v52, %v836_v51  ;;  %v7204_v51 = vld [vmem:[%s9914_s5 + $0x10] ss:$168 sps:$4 sm:$0xff]   ;;  %v7202_v52 = vld [vmem:[%s9914_s5 + $0xc] ss:$168 sps:$4 sm:$0xff]  }
 0x224   :  { %v8106_v55 = vpack.c.bf16 %v835_v2, %v834_v53  ;;  %v7205_v53 = vld [vmem:[%s9914_s5 + $0x14] ss:$168 sps:$4 sm:$0xff]   ;;  %v7208_v2 = vld [vmem:[%s9914_s5 + $0x160] ss:$168 sps:$4 sm:$0xff]  }
 0x226   :  { %6855 = vmatprep.mubr.bf16.mxu0 %v8106_v55 }
 0x227   :  { %6856 = vmatmul.mubr.bf16.vlgmr.msra.gmra.mrb[16].mxu0 %v8104_v54 }
 0x228   :  { %6863 = vmatprep.mubr.msk.bf16.mxu0 %vm7768_vm7, %v7766_v5 }
 0x2fa   :  { %v6857_v16 = vpop.f32.mrb[16].mxu0 }
 0x2fb   :  { %v938_v25 = vpop.f32.mrb[17].mxu0 }
 0x2fc   :  { %v6858_v56 = vpop.f32.mrb[18].mxu0 }
 0x2fd   :  { %963 = vrot.lane.b32.xlu1 %v6858_v56, %s7767_s23  ;;  %v941_v57 = vpop.f32.mrb[19].mxu0 }
 0x2fe   :  { %v7101_v58 = vpack.i.bf16 %v941_v57, %v938_v25 }
 0x300   :  { %7102 = vrot.lane.b32.xlu0 %v7101_v58, %s7767_s23  ;;  %v7213_v58 = vld [vmem:[%s9914_s5 + $0x2b4] ss:$168 sps:$4 sm:$0xff]  }
 0x304   :  { %961 = vrot.lane.b32.xlu0 %v6857_v16, %s7767_s23 }
 0x36f   :  { %v964_v3 = vpop.permute.xlu1 %963 }
 0x370   :  { %v972_v8 = vmax.f32 %v6858_v56, %v964_v3  ;;  %v7212_v56 = vld [vmem:[%s9914_s5 + $0x2b0] ss:$168 sps:$4 sm:$0xff]   ;;  %v7224_v3 = vld [vmem:[%s9914_s5 + $0x6a0] ss:$168 sps:$4 sm:$0xff]  }
 0x372   :  { %v7103_v4 = vpop.permute.xlu0 %7102  ;;  %v976_v17 = vrot.slane %v972_v8, 1 }
 0x373   :  { %v7105_v11 = vunpack.i.h.bf16 %v7103_v4  ;;  %v7104_v12 = vunpack.i.l.bf16 %v7103_v4  ;;  %v7222_v4 = vld [vmem:[%s9914_s5 + $0x69c] ss:$168 sps:$4 sm:$0xff]  }
 0x375   :  { %v970_v13 = vmax.f32 %v941_v57, %v7105_v11  ;;  %v969_v14 = vmax.f32 %v938_v25, %v7104_v12  ;;  %v7209_v25 = vld [vmem:[%s9914_s5 + $0x164] ss:$168 sps:$4 sm:$0xff]   ;;  %v7228_v11 = vld [vmem:[%s9914_s5 + $0x7f0] ss:$168 sps:$4 sm:$0xff]  }
 0x376   :  { %v962_v15 = vpop.permute.xlu0 %961  ;;  %v7210_v57 = vld [vmem:[%s9914_s5 + $0x2ac] ss:$168 sps:$4 sm:$0xff]  }
 0x377   :  { %v974_v18 = vrot.slane %v970_v13, 1  ;;  %v973_v19 = vrot.slane %v969_v14, 1  ;;  %v971_v20 = vmax.f32 %v6857_v16, %v962_v15  ;;  %v7206_v16 = vld [vmem:[%s9914_s5 + $0x15c] ss:$168 sps:$4 sm:$0xff]   ;;  %v7226_v12 = vld [vmem:[%s9914_s5 + $0x7ec] ss:$168 sps:$4 sm:$0xff]  }
 0x378   :  { %v7230_v15 = vld [vmem:[%s9914_s5 + $0x93c] ss:$168 sps:$4 sm:$0xff]  }
 0x379   :  { %v979_v21 = vsel %vm429_vm2, %v973_v19, %v974_v18  ;;  %v975_v22 = vrot.slane %v971_v20, 1  ;;  %v980_v23 = vsel %vm429_vm2, %v976_v17, %v973_v19  ;;  %v130_v19 = vand.u32 7, %v7972_v45 }
 0x37a   :  { %v981_v24 = vmax.f32 %v969_v14, %v979_v21  ;;  %v984_v26 = vmax.f32 %v972_v8, %v980_v23  ;;  %v7225_v8 = vld [vmem:[%s9914_s5 + $0x6a4] ss:$168 sps:$4 sm:$0xff]   ;;  %v7232_v14 = vld [vmem:[%s9914_s5 + $0x940] ss:$168 sps:$4 sm:$0xff]  }
 0x37b   :  { %v977_v27 = vsel %vm429_vm2, %v975_v22, %v976_v17  ;;  %v978_v28 = vsel %vm429_vm2, %v974_v18, %v975_v22  ;;  %v7233_v17 = vld [vmem:[%s9914_s5 + $0x944] ss:$168 sps:$4 sm:$0xff]   ;;  %v123_v18 = vand.u32 7, %v7969_v44  ;;  %vm144_vm10 = vcmp.ne.s32.totalorder %v130_v19, 0 }
 0x37c   :  { %v982_v29 = vmax.f32 %v970_v13, %v978_v28  ;;  %v983_v30 = vmax.f32 %v971_v20, %v977_v27  ;;  %v7229_v13 = vld [vmem:[%s9914_s5 + $0x7f4] ss:$168 sps:$4 sm:$0xff]   ;;  %v8269_v27 = vsel %vm144_vm10, 1.0, %v7766_v5  ;;  %vm150_vm12 = vcmp.ne.s32.totalorder %v130_v19, 7 }
 0x37d   :  { %vm143_vm9 = vcmp.ne.s32.totalorder %v123_v18, 0  ;;  %vm149_vm11 = vcmp.ne.s32.totalorder %v123_v18, 7  ;;  %v7241_v18 = vld [vmem:[%s9914_s5 + $0x9c0] ss:$168 sps:$4 sm:$0xff]  }
 0x37e   :  { %v988_v31 = vpack.c.bf16 %v984_v26, %v983_v30  ;;  %v987_v33 = vpack.c.bf16 %v982_v29, %v981_v24  ;;  %v8266_v24 = vsel %vm143_vm9, 1.0, %v7766_v5 }
 0x380   :  { %6860 = vmatpush3.bf16.msra.mxu0 %v987_v33 }
 0x381   :  { %6861 = vmatprep.subr.bf16.mxu0 %v7766_v5 }
 0x384   :  { %6862 = vmatpush3.bf16.msra.mxu0 %v988_v31 }
 0x385   :  { %1427 = vmatprep.subr.bf16.mxu0 %v7204_v51 }
 0x387   :  { %6864 = vmatmul.mubr.msk.bf16.vlgmr.msra.gmra.mrb[20].mxu0 %vm994_vm8, %v7177_v34 }
 0x388   :  { %1459 = vmatprep.mubr.bf16.mxu0 %v7765_v1  ;;  %1428 = vmatpush1.bf16.msra.mxu0 %v7202_v52 }
 0x389   :  { %1429 = vmatprep.subr.bf16.mxu0 %v7208_v2 }
 0x38c   :  { %1430 = vmatpush1.bf16.msra.mxu0 %v7206_v16 }
 0x38d   :  { %1431 = vmatprep.subr.bf16.mxu0 %v7212_v56 }
 0x390   :  { %1432 = vmatpush1.bf16.msra.mxu0 %v7210_v57 }
 0x391   :  { %1433 = vmatprep.subr.bf16.mxu0 %v7216_v59  ;;  %v185_v59 = vld [vmem:[%s9918_s2] sm:$0xff] }
 0x394   :  { %1434 = vmatpush1.bf16.msra.mxu0 %v7214_v60 }
 0x395   :  { %1435 = vmatprep.subr.bf16.mxu0 %v7220_v62 }
 0x398   :  { %1436 = vmatpush1.bf16.msra.mxu0 %v7218_v63 }
 0x399   :  { %1437 = vmatprep.subr.bf16.mxu0 %v7224_v3 }
 0x39c   :  { %1438 = vmatpush1.bf16.msra.mxu0 %v7222_v4 }
 0x39d   :  { %1439 = vmatprep.subr.bf16.mxu0 %v7228_v11  ;;  %v7235_v11 = vld [vmem:[%s9914_s5 + $0x1e0] ss:$168 sps:$4 sm:$0xff]  }
 0x3a0   :  { %1440 = vmatpush1.bf16.msra.mxu0 %v7226_v12  ;;  %v7236_v12 = vld [vmem:[%s9914_s5 + $0x330] ss:$168 sps:$4 sm:$0xff]  }
 0x3a1   :  { %1441 = vmatprep.subr.bf16.mxu0 %v7232_v14  ;;  %v7238_v14 = vld [vmem:[%s9914_s5 + $0x5d0] ss:$168 sps:$4 sm:$0xff]  }
 0x3a4   :  { %1442 = vmatpush1.bf16.msra.mxu0 %v7230_v15  ;;  %v7239_v15 = vld [vmem:[%s9914_s5 + $0x720] ss:$168 sps:$4 sm:$0xff]  }
 0x3a5   :  { %6887 = vmatprep.subr.bf16.mxu0 %v7766_v5 }
 0x45a   :  { %v1032_v37 = vpop.f32.mrb[20].mxu0 }
 0x45b   :  { %v6865_v38 = vpop.f32.mrb[21].mxu0 }
 0x45c   :  { %v1035_v39 = vpop.f32.mrb[22].mxu0  ;;  %v8280_v38 = vsel %vm149_vm11, 1.0, %v7766_v5 }
 0x45d   :  { %v1055_v41 = vpack.c.bf16 %v1035_v39, %v1032_v37  ;;  %v6866_v42 = vpop.f32.mrb[23].mxu0  ;;  %v8283_v39 = vsel %vm150_vm12, 1.0, %v7766_v5 }
 0x45f   :  { %6203 = vmatmul.mubr.msk.bf16.vlgmr.msra.gmra.mrb[12].mxu1 %vm298_vm0, %v1055_v41 }
 0x460   :  { %1183 = vmatpush1.bf16.msra.mxu1 %v7190_v40  ;;  %1214 = vmatprep.mubr.bf16.mxu1 %v7765_v1 }
 0x461   :  { %1184 = vmatprep.subr.bf16.mxu1 %v7195_v43 }
 0x464   :  { %1185 = vmatpush1.bf16.msra.mxu1 %v7193_v46 }
 0x465   :  { %1186 = vmatprep.subr.bf16.mxu1 %v7198_v47 }
 0x468   :  { %1187 = vmatpush1.bf16.msra.mxu1 %v7196_v48  ;;  %v6205_v48 = vld [vmem:[%s9915_s7 + $0x3] ss:$0 sm:$0xff] }
 0x469   :  { %1188 = vmatprep.subr.bf16.mxu1 %v7201_v49 }
 0x46c   :  { %1189 = vmatpush1.bf16.msra.mxu1 %v7199_v50 }
 0x46d   :  { %6867 = vmatprep.subr.bf16.mxu1 %v7766_v5 }
 0x46f   :  { %6204 = vmatmul.mubr.msk.bf16.vlgmr.msra.gmra.mrb[16].mxu1 %vm298_vm0, %v1055_v41 }
 0x470   :  { %6883 = vmatprep.mubr.msk.bf16.mxu1 %vm7768_vm7, %v7766_v5  ;;  %6868 = vmatpush3.bf16.msra.mxu1 %v7205_v53 }
 0x471   :  { %6869 = vmatprep.subr.bf16.mxu1 %v7766_v5 }
 0x474   :  { %6870 = vmatpush3.bf16.msra.mxu1 %v7209_v25 }
 0x475   :  { %6871 = vmatprep.subr.bf16.mxu1 %v7766_v5 }
 0x478   :  { %6872 = vmatpush3.bf16.msra.mxu1 %v7213_v58 }
 0x479   :  { %6873 = vmatprep.subr.bf16.mxu1 %v7766_v5 }
 0x47c   :  { %6874 = vmatpush3.bf16.msra.mxu1 %v7217_v61  ;;  %v187_v61 = vld [vmem:[%s9918_s2 + $0x10] sm:$0xff] }
 0x47d   :  { %6875 = vmatprep.subr.bf16.mxu1 %v7766_v5 }
 0x480   :  { %6876 = vmatpush3.bf16.msra.mxu1 %v7221_v0 }
 0x481   :  { %6877 = vmatprep.subr.bf16.mxu1 %v7766_v5 }
 0x484   :  { %6878 = vmatpush3.bf16.msra.mxu1 %v7225_v8  ;;  %v7234_v8 = vld [vmem:[%s9914_s5 + $0x90] ss:$168 sps:$4 sm:$0xff]  }
 0x485   :  { %6879 = vmatprep.subr.bf16.mxu1 %v7766_v5 }
 0x488   :  { %6880 = vmatpush3.bf16.msra.mxu1 %v7229_v13  ;;  %v7237_v13 = vld [vmem:[%s9914_s5 + $0x480] ss:$168 sps:$4 sm:$0xff]  }
 0x489   :  { %6881 = vmatprep.subr.bf16.mxu1 %v7766_v5 }
 0x48c   :  { %6882 = vmatpush3.bf16.msra.mxu1 %v7233_v17  ;;  %v7240_v17 = vld [vmem:[%s9914_s5 + $0x870] ss:$168 sps:$4 sm:$0xff]  }
 0x48d   :  { %6907 = vmatprep.subr.bf16.mxu1 %v7766_v5 }
 0x532   :  { %v1173_v20 = vpop.f32.mrb[12].mxu1 }
 0x533   :  { %v1175_v21 = vpop.f32.mrb[13].mxu1  ;;  %v1226_v23 = vrot.slane %v1173_v20, 7 }
 0x534   :  { %v1177_v22 = vpop.f32.mrb[14].mxu1 }
 0x535   :  { %v1227_v26 = vrot.slane %v1177_v22, 7  ;;  %v1179_v28 = vpop.f32.mrb[15].mxu1 }
 0x537   :  { %v1229_v29 = vsel %vm416_vm1, %v1227_v26, %v1226_v23  ;;  %v1228_v45 = vsel %vm416_vm1, %v1226_v23, %v1227_v26 }
 0x538   :  { %v1230_v30 = vmul.f32 %v8266_v24, %v1229_v29  ;;  %v1231_v31 = vmul.f32 %v8269_v27, %v1228_v45 }
 0x53a   :  { %v1238_v33 = vadd.f32 %v1230_v30, %v1175_v21  ;;  %v1239_v34 = vadd.f32 %v1231_v31, %v1179_v28 }
 0x542   :  { %v1216_v32 = vpop.f32.mrb[16].mxu1 }
 0x543   :  { %v8277_v35 = vpop.f32.mrb[17].mxu1  ;;  %v1232_v37 = vrot.slane %v1216_v32, 1 }
 0x544   :  { %v1220_v36 = vpop.f32.mrb[18].mxu1 }
 0x545   :  { %v1233_v40 = vrot.slane %v1220_v36, 1  ;;  %v8285_v41 = vpop.f32.mrb[19].mxu1 }
 0x547   :  { %v1234_v42 = vsel %vm429_vm2, %v1232_v37, %v1233_v40  ;;  %v1235_v43 = vsel %vm429_vm2, %v1233_v40, %v1232_v37 }
 0x548   :  { %v1236_v46 = vmul.f32 %v8280_v38, %v1234_v42  ;;  %v1237_v47 = vmul.f32 %v8283_v39, %v1235_v43 }
 0x54a   :  { %v1240_v49 = vadd.f32 %v1238_v33, %v1236_v46  ;;  %v1241_v50 = vadd.f32 %v1239_v34, %v1237_v47 }
 0x54c   :  { %v1248_v51 = vadd.f32 %v6205_v48, %v1240_v49  ;;  %v1249_v52 = vadd.f32 %v6205_v48, %v1241_v50  ;;  %v6232_v49 = vld [vmem:[%s9915_s7 + $0x4] ss:$0 sm:$0xff] }
 0x54e   :  { %v6206_v53 = vmul.f32 -1.442695, %v1248_v51  ;;  %v6207_v2 = vmul.f32 -1.442695, %v1249_v52 }
 0x550   :  { %7677 = vpow2.f32 %v6206_v53 }
 0x551   :  { %7679 = vpow2.f32 %v6207_v2 }
 0x55a   :  { %v7678_v16 = vpop.eup %7677 }
 0x55b   :  { %v7680_v25 = vpop.eup %7679  ;;  %v1256_v56 = vadd.f32 1.0, %v7678_v16 }
 0x55c   :  { %v1257_v57 = vadd.f32 1.0, %v7680_v25 }
 0x55d   :  { %7681 = vrcp.f32 %v1256_v56 }
 0x55e   :  { %7683 = vrcp.f32 %v1257_v57 }
 0x567   :  { %v7682_v58 = vpop.eup %7681 }
 0x568   :  { %v7684_v60 = vpop.eup %7683  ;;  %v1262_v62 = vmul.f32 %v7682_v58, %v1248_v51 }
 0x569   :  { %v1263_v63 = vmul.f32 %v7684_v60, %v1249_v52 }
 0x56a   :  { %v1264_v0 = vadd.f32 %v1262_v62, %v185_v59 }
 0x56b   :  { %v1265_v3 = vadd.f32 %v1263_v63, %v187_v61  ;;  %v6235_v63 = vld [vmem:[%s9915_s7 + $0x5] ss:$0 sm:$0xff] }
 0x56d   :  { %v1298_v4 = vpack.c.bf16 %v1265_v3, %v1264_v0 }
 0x56f   :  { %1460 = vmatmul.mubr.bf16.vlgmr.msra.gmra.mrb[24].mxu0 %v1298_v4  ;;  %6884 = vmatmul.mubr.bf16.vlgmr.msra.gmra.mrb[20].mxu1 %v1298_v4 }
 0x570   :  { %6903 = vmatprep.mubr.msk.bf16.mxu0 %vm7768_vm7, %v7766_v5  ;;  %6909 = vmatprep.mubr.msk.bf16.mxu1 %vm7768_vm7, %v7766_v5 }
 0x571   :  { %6888 = vmatpush3.bf16.msra.mxu0 %v7234_v8 }
 0x572   :  { %6889 = vmatprep.subr.bf16.mxu0 %v7766_v5 }
 0x575   :  { %6890 = vmatpush3.bf16.msra.mxu0 %v7235_v11 }
 0x576   :  { %6891 = vmatprep.subr.bf16.mxu0 %v7766_v5 }
 0x579   :  { %6892 = vmatpush3.bf16.msra.mxu0 %v7236_v12 }
 0x57a   :  { %6893 = vmatprep.subr.bf16.mxu0 %v7766_v5 }
 0x57d   :  { %6894 = vmatpush3.bf16.msra.mxu0 %v7237_v13 }
 0x57e   :  { %6895 = vmatprep.subr.bf16.mxu0 %v7766_v5 }
 0x581   :  { %6896 = vmatpush3.bf16.msra.mxu0 %v7238_v14 }
 0x582   :  { %6897 = vmatprep.subr.bf16.mxu0 %v7766_v5 }
 0x585   :  { %6898 = vmatpush3.bf16.msra.mxu0 %v7239_v15 }
 0x586   :  { %6899 = vmatprep.subr.bf16.mxu0 %v7766_v5 }
 0x589   :  { %6900 = vmatpush3.bf16.msra.mxu0 %v7240_v17 }
 0x58a   :  { %6901 = vmatprep.subr.bf16.mxu0 %v7766_v5 }
 0x58d   :  { %6902 = vmatpush3.bf16.msra.mxu0 %v7241_v18  ;;  %v7253_v18 = vld [vmem:[%s9912_s4 + $0x8c] ss:$48 sps:$4 sm:$0xff]  }
 0x642   :  { %v1461_v19 = vpop.f32.mrb[24].mxu0  ;;  %v1504_v20 = vpop.f32.mrb[20].mxu1 }
 0x643   :  { %v1463_v21 = vpop.f32.mrb[25].mxu0  ;;  %v6885_v22 = vpop.f32.mrb[21].mxu1  ;;  %v1512_v28 = vrot.slane %v1461_v19, 7  ;;  %v1518_v29 = vrot.slane %v1504_v20, 1  ;;  %v7251_v19 = vld [vmem:[%s9912_s4 + $0x88] ss:$48 sps:$4 sm:$0xff]  }
 0x644   :  { %v1465_v23 = vpop.f32.mrb[26].mxu0  ;;  %v1507_v26 = vpop.f32.mrb[22].mxu1  ;;  %v7259_v20 = vld [vmem:[%s9912_s4 + $0xec] ss:$48 sps:$4 sm:$0xff]  }
 0x645   :  { %v1513_v45 = vrot.slane %v1465_v23, 7  ;;  %v1519_v30 = vrot.slane %v1507_v26, 1  ;;  %v1467_v31 = vpop.f32.mrb[27].mxu0  ;;  %v6886_v33 = vpop.f32.mrb[23].mxu1  ;;  %v7265_v22 = vld [vmem:[%s9912_s4 + $0x14c] ss:$48 sps:$4 sm:$0xff]  }
 0x646   :  { %v7263_v23 = vld [vmem:[%s9912_s4 + $0x148] ss:$48 sps:$4 sm:$0xff]  }
 0x647   :  { %v1515_v34 = vsel %vm416_vm1, %v1513_v45, %v1512_v28  ;;  %v1520_v32 = vsel %vm429_vm2, %v1518_v29, %v1519_v30  ;;  %v1521_v36 = vsel %vm429_vm2, %v1519_v30, %v1518_v29  ;;  %v1514_v37 = vsel %vm416_vm1, %v1512_v28, %v1513_v45 }
 0x648   :  { %v1516_v40 = vmul.f32 %v8266_v24, %v1515_v34  ;;  %v1517_v42 = vmul.f32 %v8269_v27, %v1514_v37  ;;  %v1522_v46 = vmul.f32 %v8280_v38, %v1520_v32  ;;  %v1523_v47 = vmul.f32 %v8283_v39, %v1521_v36 }
 0x64a   :  { %v1524_v43 = vadd.f32 %v1516_v40, %v1463_v21  ;;  %v1525_v48 = vadd.f32 %v1517_v42, %v1467_v31  ;;  %v7257_v21 = vld [vmem:[%s9912_s4 + $0xe8] ss:$48 sps:$4 sm:$0xff]   ;;  %v7244_v40 = vld [vmem:[%s9912_s4 + $0x24] ss:$48 sps:$4 sm:$0xff]  }
 0x64c   :  { %v1526_v50 = vadd.f32 %v1524_v43, %v1522_v46  ;;  %v1527_v51 = vadd.f32 %v1525_v48, %v1523_v47  ;;  %v1683_v43 = vld [vmem:[%s9919_s9] sm:$0xf]  ;;  %v7250_v47 = vld [vmem:[%s9912_s4 + $0x84] ss:$48 sps:$4 sm:$0xff]  }
 0x64d   :  { %v7242_v46 = vld [vmem:[%s9912_s4 + $0x20] ss:$48 sps:$4 sm:$0xff]  }
 0x64e   :  { %v1534_v52 = vadd.f32 %v6232_v49, %v1526_v50  ;;  %v1535_v53 = vadd.f32 %v6232_v49, %v1527_v51  ;;  %v7248_v48 = vld [vmem:[%s9912_s4 + $0x80] ss:$48 sps:$4 sm:$0xff]   ;;  %v7256_v49 = vld [vmem:[%s9912_s4 + $0xe4] ss:$48 sps:$4 sm:$0xff]  }
 0x64f   :  { %v7254_v50 = vld [vmem:[%s9912_s4 + $0xe0] ss:$48 sps:$4 sm:$0xff]   ;;  %v7262_v51 = vld [vmem:[%s9912_s4 + $0x144] ss:$48 sps:$4 sm:$0xff]  }
 0x650   :  { %v6233_v2 = vmul.f32 -1.442695, %v1534_v52  ;;  %v6234_v16 = vmul.f32 -1.442695, %v1535_v53 }
 0x652   :  { %7685 = vpow2.f32 %v6233_v2 }
 0x653   :  { %7687 = vpow2.f32 %v6234_v16 }
 0x65c   :  { %v7686_v25 = vpop.eup %7685 }
 0x65d   :  { %v7688_v56 = vpop.eup %7687  ;;  %v1542_v57 = vadd.f32 1.0, %v7686_v25 }
 0x65e   :  { %v1543_v58 = vadd.f32 1.0, %v7688_v56 }
 0x65f   :  { %7689 = vrcp.f32 %v1542_v57  ;;  %v7268_v57 = vld [vmem:[%s9914_s5 + $0x1c] ss:$168 sps:$4 sm:$0xff]  }
 0x660   :  { %7691 = vrcp.f32 %v1543_v58  ;;  %v7266_v58 = vld [vmem:[%s9914_s5 + $0x18] ss:$168 sps:$4 sm:$0xff]  }
 0x669   :  { %v7690_v59 = vpop.eup %7689 }
 0x66a   :  { %v7692_v60 = vpop.eup %7691  ;;  %v1548_v61 = vmul.f32 %v7690_v59, %v1534_v52  ;;  %v7260_v52 = vld [vmem:[%s9912_s4 + $0x140] ss:$48 sps:$4 sm:$0xff]  }
 0x66b   :  { %v1549_v62 = vmul.f32 %v7692_v60, %v1535_v53  ;;  %v7269_v59 = vld [vmem:[%s9914_s5 + $0x20] ss:$168 sps:$4 sm:$0xff]   ;;  %v7272_v60 = vld [vmem:[%s9914_s5 + $0x16c] ss:$168 sps:$4 sm:$0xff]  }
 0x66c   :  { %v1550_v0 = vadd.f32 %v1548_v61, %v8277_v35  ;;  %v7245_v35 = vld [vmem:[%s9912_s4 + $0x28] ss:$48 sps:$4 sm:$0xff]  }
 0x66d   :  { %v1551_v3 = vadd.f32 %v1549_v62, %v8285_v41  ;;  %v7247_v41 = vld [vmem:[%s9912_s4 + $0x2c] ss:$48 sps:$4 sm:$0xff]   ;;  %v7270_v61 = vld [vmem:[%s9914_s5 + $0x168] ss:$168 sps:$4 sm:$0xff]  }
 0x66e   :  { %v1559_v4 = vadd.f32 %v6235_v63, %v1550_v0  ;;  %1870 = vmatprep.subr.bf16.mxu0 %v7247_v41  ;;  %v7273_v62 = vld [vmem:[%s9914_s5 + $0x170] ss:$168 sps:$4 sm:$0xff]  }
 0x66f   :  { %v1560_v8 = vadd.f32 %v6235_v63, %v1551_v3  ;;  %v7276_v63 = vld [vmem:[%s9914_s5 + $0x2bc] ss:$168 sps:$4 sm:$0xff]   ;;  %v7274_v0 = vld [vmem:[%s9914_s5 + $0x2b8] ss:$168 sps:$4 sm:$0xff]  }
 0x670   :  { %v7277_v3 = vld [vmem:[%s9914_s5 + $0x2c0] ss:$168 sps:$4 sm:$0xff]   ;;  %v7289_v41 = vld [vmem:[%s9914_s5 + $0x6b0] ss:$168 sps:$4 sm:$0xff]  }
 0x671   :  { %v8357_v11 = vpack.c.bf16 %v1560_v8, %v1559_v4  ;;  %v7280_v4 = vld [vmem:[%s9914_s5 + $0x40c] ss:$168 sps:$4 sm:$0xff]   ;;  %v7278_v8 = vld [vmem:[%s9914_s5 + $0x408] ss:$168 sps:$4 sm:$0xff]  }
 0x673   :  { %6904 = vmatmul.mubr.bf16.vlgmr.msra.gmra.mrb[28].mxu0 %v8357_v11 }
 0x674   :  { %1902 = vmatprep.mubr.bf16.mxu0 %v7765_v1  ;;  %1871 = vmatpush1.bf16.msra.mxu0 %v7245_v35  ;;  %v7286_v35 = vld [vmem:[%s9914_s5 + $0x6a8] ss:$168 sps:$4 sm:$0xff]  }
 0x675   :  { %1872 = vmatprep.subr.bf16.mxu0 %v7253_v18  ;;  %v7292_v18 = vld [vmem:[%s9914_s5 + $0x7fc] ss:$168 sps:$4 sm:$0xff]  }
 0x678   :  { %1873 = vmatpush1.bf16.msra.mxu0 %v7251_v19  ;;  %v7290_v19 = vld [vmem:[%s9914_s5 + $0x7f8] ss:$168 sps:$4 sm:$0xff]  }
 0x679   :  { %1874 = vmatprep.subr.bf16.mxu0 %v7259_v20  ;;  %v7293_v20 = vld [vmem:[%s9914_s5 + $0x800] ss:$168 sps:$4 sm:$0xff]  }
 0x67c   :  { %1875 = vmatpush1.bf16.msra.mxu0 %v7257_v21  ;;  %v7294_v21 = vld [vmem:[%s9914_s5 + $0x948] ss:$168 sps:$4 sm:$0xff]  }
 0x67d   :  { %1876 = vmatprep.subr.bf16.mxu0 %v7265_v22  ;;  %v7296_v22 = vld [vmem:[%s9914_s5 + $0x94c] ss:$168 sps:$4 sm:$0xff]  }
 0x680   :  { %1877 = vmatpush1.bf16.msra.mxu0 %v7263_v23  ;;  %v7297_v23 = vld [vmem:[%s9914_s5 + $0x950] ss:$168 sps:$4 sm:$0xff]  }
 0x681   :  { %6913 = vmatprep.subr.bf16.mxu0 %v7766_v5 }
 0x746   :  { %v1660_v12 = vpop.f32.mrb[28].mxu0 }
 0x747   :  { %v6905_v13 = vpop.f32.mrb[29].mxu0 }
 0x748   :  { %v1663_v14 = vpop.f32.mrb[30].mxu0  ;;  %v7284_v13 = vld [vmem:[%s9914_s5 + $0x55c] ss:$168 sps:$4 sm:$0xff]  }
 0x749   :  { %v7106_v15 = vpack.i.bf16 %v1663_v14, %v1660_v12  ;;  %v6906_v17 = vpop.f32.mrb[31].mxu0 }
 0x74a   :  { %v7288_v17 = vld [vmem:[%s9914_s5 + $0x6ac] ss:$168 sps:$4 sm:$0xff]  }
 0x74b   :  { %7107 = vrot.lane.b32.xlu1 %v7106_v15, %s7767_s23  ;;  %v7285_v15 = vld [vmem:[%s9914_s5 + $0x560] ss:$168 sps:$4 sm:$0xff]  }
 0x7bd   :  { %v7108_v26 = vpop.permute.xlu1 %7107 }
 0x7be   :  { %v7110_v28 = vunpack.i.h.bf16 %v7108_v26  ;;  %v7109_v29 = vunpack.i.l.bf16 %v7108_v26  ;;  %v159_v26 = vand.u32 3, %v7969_v44 }
 0x7c0   :  { %v1676_v45 = vmax.f32 %v1663_v14, %v7110_v28  ;;  %v1675_v30 = vmax.f32 %v1660_v12, %v7109_v29  ;;  %v7281_v12 = vld [vmem:[%s9914_s5 + $0x410] ss:$168 sps:$4 sm:$0xff]   ;;  %vm167_vm14 = vcmp.ne.s32.totalorder %v159_v26, 0  ;;  %vm170_vm15 = vcmp.ne.s32.totalorder %v159_v26, 3  ;;  %v7329_v26 = vld [vmem:[%s9914_s5 + $0x95c] ss:$168 sps:$4 sm:$0xff]  }
 0x7c1   :  { %v7282_v14 = vld [vmem:[%s9914_s5 + $0x558] ss:$168 sps:$4 sm:$0xff]  }
 0x7c2   :  { %v1678_v31 = vrot.slane %v1676_v45, 1  ;;  %v1677_v33 = vrot.slane %v1675_v30, 1 }
 0x7c4   :  { %v1679_v34 = vsel %vm429_vm2, %v1677_v33, %v1678_v31  ;;  %v1680_v32 = vsel %vm429_vm2, %v1678_v31, %v1677_v33 }
 0x7c5   :  { %v1681_v36 = vmax.f32 %v1675_v30, %v1679_v34  ;;  %v1682_v37 = vmax.f32 %v1676_v45, %v1680_v32  ;;  %v8507_v45 = vsel %vm167_vm14, 1.0, %v7766_v5  ;;  %v8512_v32 = vsel %vm170_vm15, 1.0, %v7766_v5 }
 0x7c7   :  { %v1684_v42 = vpack.c.bf16 %v1682_v37, %v1681_v36 }
 0x7c9   :  { %6908 = vmatpush3.bf16.msra.mxu1 %v1684_v42 }
 0x7ca   :  { %1829 = vmatprep.subr.bf16.mxu1 %v7244_v40 }
 0x7cc   :  { %6910 = vmatmul.mubr.msk.bf16.vlgmr.msra.gmra.mrb[24].mxu1 %vm1685_vm13, %v1683_v43 }
 0x7cd   :  { %1830 = vmatpush1.bf16.msra.mxu1 %v7242_v46  ;;  %1861 = vmatprep.mubr.bf16.mxu1 %v7765_v1 }
 0x7ce   :  { %1831 = vmatprep.subr.bf16.mxu1 %v7250_v47 }
 0x7d1   :  { %1832 = vmatpush1.bf16.msra.mxu1 %v7248_v48  ;;  %v6263_v48 = vld [vmem:[%s9915_s7 + $0x6] ss:$0 sm:$0xff] }
 0x7d2   :  { %1833 = vmatprep.subr.bf16.mxu1 %v7256_v49 }
 0x7d5   :  { %1834 = vmatpush1.bf16.msra.mxu1 %v7254_v50 }
 0x7d6   :  { %1835 = vmatprep.subr.bf16.mxu1 %v7262_v51 }
 0x7d9   :  { %1836 = vmatpush1.bf16.msra.mxu1 %v7260_v52 }
 0x7da   :  { %2094 = vmatprep.subr.bf16.mxu1 %v7268_v57 }
 0x89f   :  { %v1723_v53 = vpop.f32.mrb[24].mxu1 }
 0x8a0   :  { %v1745_v2 = vpack.c.bf16 %v1723_v53, %v1723_v53  ;;  %v6911_v16 = vpop.f32.mrb[25].mxu1 }
 0x8a1   :  { %v1726_v25 = vpop.f32.mrb[26].mxu1  ;;  %v189_v16 = vld [vmem:[%s9920_s3] sm:$0xff] }
 0x8a2   :  { %v6912_v56 = vpop.f32.mrb[27].mxu1  ;;  %6261 = vmatmul.mubr.msk.bf16.vlgmr.msra.gmra.mrb[28].mxu1 %vm298_vm0, %v1745_v2  ;;  %6262 = vmatmul.mubr.msk.bf16.vlgmr.msra.gmra.mrb[32].mxu0 %vm298_vm0, %v1745_v2  ;;  %vm3412_vm0 = vcmask 1043456  }
 0x8a3   :  { %2126 = vmatprep.mubr.bf16.mxu1 %v7765_v1  ;;  %6929 = vmatprep.mubr.msk.bf16.mxu0 %vm7768_vm7, %v7766_v5 }
 0x8a4   :  { %2095 = vmatpush1.bf16.msra.mxu1 %v7266_v58  ;;  %6914 = vmatpush3.bf16.msra.mxu0 %v7269_v59  ;;  %v7300_v58 = vld [vmem:[%s9914_s5 + $0x28] ss:$168 sps:$4 sm:$0xff]   ;;  %v7298_v59 = vld [vmem:[%s9914_s5 + $0x24] ss:$168 sps:$4 sm:$0xff]  }
 0x8a5   :  { %6915 = vmatprep.subr.bf16.mxu0 %v7766_v5  ;;  %2096 = vmatprep.subr.bf16.mxu1 %v7272_v60  ;;  %v7301_v60 = vld [vmem:[%s9914_s5 + $0x2c] ss:$168 sps:$4 sm:$0xff]  }
 0x8a8   :  { %2097 = vmatpush1.bf16.msra.mxu1 %v7270_v61  ;;  %6916 = vmatpush3.bf16.msra.mxu0 %v7273_v62  ;;  %v7304_v61 = vld [vmem:[%s9914_s5 + $0x178] ss:$168 sps:$4 sm:$0xff]   ;;  %v7302_v62 = vld [vmem:[%s9914_s5 + $0x174] ss:$168 sps:$4 sm:$0xff]  }
 0x8a9   :  { %6917 = vmatprep.subr.bf16.mxu0 %v7766_v5  ;;  %2098 = vmatprep.subr.bf16.mxu1 %v7276_v63  ;;  %v7305_v63 = vld [vmem:[%s9914_s5 + $0x17c] ss:$168 sps:$4 sm:$0xff]  }
 0x8ac   :  { %2099 = vmatpush1.bf16.msra.mxu1 %v7274_v0  ;;  %6918 = vmatpush3.bf16.msra.mxu0 %v7277_v3  ;;  %v7308_v0 = vld [vmem:[%s9914_s5 + $0x2c8] ss:$168 sps:$4 sm:$0xff]   ;;  %v7306_v3 = vld [vmem:[%s9914_s5 + $0x2c4] ss:$168 sps:$4 sm:$0xff]  }
 0x8ad   :  { %6919 = vmatprep.subr.bf16.mxu0 %v7766_v5  ;;  %2100 = vmatprep.subr.bf16.mxu1 %v7280_v4  ;;  %v7309_v4 = vld [vmem:[%s9914_s5 + $0x2cc] ss:$168 sps:$4 sm:$0xff]  }
 0x8b0   :  { %2101 = vmatpush1.bf16.msra.mxu1 %v7278_v8  ;;  %6920 = vmatpush3.bf16.msra.mxu0 %v7281_v12  ;;  %v7312_v8 = vld [vmem:[%s9914_s5 + $0x418] ss:$168 sps:$4 sm:$0xff]   ;;  %v7310_v12 = vld [vmem:[%s9914_s5 + $0x414] ss:$168 sps:$4 sm:$0xff]  }
 0x8b1   :  { %6921 = vmatprep.subr.bf16.mxu0 %v7766_v5  ;;  %2102 = vmatprep.subr.bf16.mxu1 %v7284_v13  ;;  %v7313_v13 = vld [vmem:[%s9914_s5 + $0x41c] ss:$168 sps:$4 sm:$0xff]  }
 0x8b4   :  { %2103 = vmatpush1.bf16.msra.mxu1 %v7282_v14  ;;  %6922 = vmatpush3.bf16.msra.mxu0 %v7285_v15  ;;  %v7316_v14 = vld [vmem:[%s9914_s5 + $0x568] ss:$168 sps:$4 sm:$0xff]   ;;  %v7314_v15 = vld [vmem:[%s9914_s5 + $0x564] ss:$168 sps:$4 sm:$0xff]  }
 0x8b5   :  { %6923 = vmatprep.subr.bf16.mxu0 %v7766_v5  ;;  %2104 = vmatprep.subr.bf16.mxu1 %v7288_v17  ;;  %v7317_v17 = vld [vmem:[%s9914_s5 + $0x56c] ss:$168 sps:$4 sm:$0xff]  }
 0x8b8   :  { %2105 = vmatpush1.bf16.msra.mxu1 %v7286_v35  ;;  %6924 = vmatpush3.bf16.msra.mxu0 %v7289_v41  ;;  %v7320_v35 = vld [vmem:[%s9914_s5 + $0x6b8] ss:$168 sps:$4 sm:$0xff]   ;;  %v7318_v41 = vld [vmem:[%s9914_s5 + $0x6b4] ss:$168 sps:$4 sm:$0xff]  }
 0x8b9   :  { %6925 = vmatprep.subr.bf16.mxu0 %v7766_v5  ;;  %2106 = vmatprep.subr.bf16.mxu1 %v7292_v18  ;;  %v7321_v18 = vld [vmem:[%s9914_s5 + $0x6bc] ss:$168 sps:$4 sm:$0xff]  }
 0x8bc   :  { %2107 = vmatpush1.bf16.msra.mxu1 %v7290_v19  ;;  %6926 = vmatpush3.bf16.msra.mxu0 %v7293_v20  ;;  %v7324_v19 = vld [vmem:[%s9914_s5 + $0x808] ss:$168 sps:$4 sm:$0xff]   ;;  %v7322_v20 = vld [vmem:[%s9914_s5 + $0x804] ss:$168 sps:$4 sm:$0xff]  }
 0x8bd   :  { %6927 = vmatprep.subr.bf16.mxu0 %v7766_v5  ;;  %2108 = vmatprep.subr.bf16.mxu1 %v7296_v22  ;;  %v7326_v22 = vld [vmem:[%s9914_s5 + $0x954] ss:$168 sps:$4 sm:$0xff]  }
 0x8c0   :  { %2109 = vmatpush1.bf16.msra.mxu1 %v7294_v21  ;;  %6928 = vmatpush3.bf16.msra.mxu0 %v7297_v23  ;;  %v7325_v21 = vld [vmem:[%s9914_s5 + $0x80c] ss:$168 sps:$4 sm:$0xff]   ;;  %v7328_v23 = vld [vmem:[%s9914_s5 + $0x958] ss:$168 sps:$4 sm:$0xff]  }
 0x8c1   :  { %6933 = vmatprep.subr.bf16.mxu0 %v7766_v5  ;;  %2366 = vmatprep.subr.bf16.mxu1 %v7300_v58 }
 0x975   :  { %v1863_v28 = vpop.f32.mrb[28].mxu1  ;;  %v1904_v29 = vpop.f32.mrb[32].mxu0 }
 0x976   :  { %v1912_v30 = vrot.slane %v1863_v28, 7  ;;  %v1914_v31 = vrot.slane %v1904_v29, 1  ;;  %v1865_v33 = vpop.f32.mrb[29].mxu1  ;;  %v8509_v34 = vpop.f32.mrb[33].mxu0 }
 0x977   :  { %v1867_v36 = vpop.f32.mrb[30].mxu1  ;;  %v1908_v37 = vpop.f32.mrb[34].mxu0 }
 0x978   :  { %v1913_v40 = vmul.f32 %v8507_v45, %v1912_v30  ;;  %v1868_v42 = vpop.f32.mrb[31].mxu1  ;;  %v1909_v43 = vpop.f32.mrb[35].mxu0  ;;  %v1915_v46 = vmul.f32 %v8512_v32, %v1914_v31 }
 0x97a   :  { %v1916_v47 = vadd.f32 %v1913_v40, %v1865_v33 }
 0x97c   :  { %v1917_v49 = vadd.f32 %v1916_v47, %v1915_v46 }
 0x97e   :  { %v1924_v50 = vadd.f32 %v6263_v48, %v1917_v49  ;;  %v6289_v49 = vld [vmem:[%s9915_s7 + $0x7] ss:$0 sm:$0xff] }
 0x980   :  { %v6264_v51 = vmul.f32 -1.442695, %v1924_v50 }
 0x982   :  { %7693 = vpow2.f32 %v6264_v51 }
 0x98c   :  { %v7694_v52 = vpop.eup %7693 }
 0x98d   :  { %v1928_v53 = vadd.f32 1.0, %v7694_v52 }
 0x98f   :  { %7695 = vrcp.f32 %v1928_v53 }
 0x999   :  { %v7696_v2 = vpop.eup %7695 }
 0x99a   :  { %v1931_v25 = vmul.f32 %v7696_v2, %v1924_v50 }
 0x99c   :  { %v1932_v56 = vadd.f32 %v1931_v25, %v189_v16 }
 0x99e   :  { %v1965_v57 = vpack.c.bf16 %v1932_v56, %v1932_v56  ;;  %v6291_v56 = vld [vmem:[%s9915_s7 + $0x8] ss:$0 sm:$0xff] }
 0x9a0   :  { %2127 = vmatmul.mubr.bf16.vlgmr.msra.gmra.mrb[32].mxu1 %v1965_v57  ;;  %6930 = vmatmul.mubr.bf16.vlgmr.msra.gmra.mrb[36].mxu0 %v1965_v57 }
 0x9a1   :  { %2398 = vmatprep.mubr.bf16.mxu1 %v7765_v1  ;;  %6949 = vmatprep.mubr.msk.bf16.mxu0 %vm7768_vm7, %v7766_v5 }
 0x9a2   :  { %2367 = vmatpush1.bf16.msra.mxu1 %v7298_v59  ;;  %6934 = vmatpush3.bf16.msra.mxu0 %v7301_v60  ;;  %v7332_v60 = vld [vmem:[%s9914_s5 + $0x34] ss:$168 sps:$4 sm:$0xff]  }
 0x9a3   :  { %6935 = vmatprep.subr.bf16.mxu0 %v7766_v5  ;;  %2368 = vmatprep.subr.bf16.mxu1 %v7304_v61  ;;  %v7333_v61 = vld [vmem:[%s9914_s5 + $0x38] ss:$168 sps:$4 sm:$0xff]  }
 0x9a6   :  { %2369 = vmatpush1.bf16.msra.mxu1 %v7302_v62  ;;  %6936 = vmatpush3.bf16.msra.mxu0 %v7305_v63  ;;  %v7336_v62 = vld [vmem:[%s9914_s5 + $0x184] ss:$168 sps:$4 sm:$0xff]   ;;  %v7334_v63 = vld [vmem:[%s9914_s5 + $0x180] ss:$168 sps:$4 sm:$0xff]  }
 0x9a7   :  { %6937 = vmatprep.subr.bf16.mxu0 %v7766_v5  ;;  %2370 = vmatprep.subr.bf16.mxu1 %v7308_v0  ;;  %v7337_v0 = vld [vmem:[%s9914_s5 + $0x188] ss:$168 sps:$4 sm:$0xff]  }
 0x9aa   :  { %2371 = vmatpush1.bf16.msra.mxu1 %v7306_v3  ;;  %6938 = vmatpush3.bf16.msra.mxu0 %v7309_v4  ;;  %v7340_v3 = vld [vmem:[%s9914_s5 + $0x2d4] ss:$168 sps:$4 sm:$0xff]   ;;  %v7338_v4 = vld [vmem:[%s9914_s5 + $0x2d0] ss:$168 sps:$4 sm:$0xff]  }
 0x9ab   :  { %6939 = vmatprep.subr.bf16.mxu0 %v7766_v5  ;;  %2372 = vmatprep.subr.bf16.mxu1 %v7312_v8  ;;  %v7341_v8 = vld [vmem:[%s9914_s5 + $0x2d8] ss:$168 sps:$4 sm:$0xff]  }
 0x9ae   :  { %2373 = vmatpush1.bf16.msra.mxu1 %v7310_v12  ;;  %6940 = vmatpush3.bf16.msra.mxu0 %v7313_v13  ;;  %v7344_v12 = vld [vmem:[%s9914_s5 + $0x424] ss:$168 sps:$4 sm:$0xff]   ;;  %v7342_v13 = vld [vmem:[%s9914_s5 + $0x420] ss:$168 sps:$4 sm:$0xff]  }
 0x9af   :  { %6941 = vmatprep.subr.bf16.mxu0 %v7766_v5  ;;  %2374 = vmatprep.subr.bf16.mxu1 %v7316_v14  ;;  %v7345_v14 = vld [vmem:[%s9914_s5 + $0x428] ss:$168 sps:$4 sm:$0xff]  }
 0x9b2   :  { %2375 = vmatpush1.bf16.msra.mxu1 %v7314_v15  ;;  %6942 = vmatpush3.bf16.msra.mxu0 %v7317_v17  ;;  %v7348_v15 = vld [vmem:[%s9914_s5 + $0x574] ss:$168 sps:$4 sm:$0xff]   ;;  %v7346_v17 = vld [vmem:[%s9914_s5 + $0x570] ss:$168 sps:$4 sm:$0xff]  }
 0x9b3   :  { %6943 = vmatprep.subr.bf16.mxu0 %v7766_v5  ;;  %2376 = vmatprep.subr.bf16.mxu1 %v7320_v35  ;;  %v7349_v35 = vld [vmem:[%s9914_s5 + $0x578] ss:$168 sps:$4 sm:$0xff]  }
 0x9b6   :  { %2377 = vmatpush1.bf16.msra.mxu1 %v7318_v41  ;;  %6944 = vmatpush3.bf16.msra.mxu0 %v7321_v18  ;;  %v7352_v41 = vld [vmem:[%s9914_s5 + $0x6c4] ss:$168 sps:$4 sm:$0xff]   ;;  %v7350_v18 = vld [vmem:[%s9914_s5 + $0x6c0] ss:$168 sps:$4 sm:$0xff]  }
 0x9b7   :  { %6945 = vmatprep.subr.bf16.mxu0 %v7766_v5  ;;  %2378 = vmatprep.subr.bf16.mxu1 %v7324_v19  ;;  %v7353_v19 = vld [vmem:[%s9914_s5 + $0x6c8] ss:$168 sps:$4 sm:$0xff]  }
 0x9ba   :  { %2379 = vmatpush1.bf16.msra.mxu1 %v7322_v20  ;;  %6946 = vmatpush3.bf16.msra.mxu0 %v7325_v21  ;;  %v7356_v20 = vld [vmem:[%s9914_s5 + $0x814] ss:$168 sps:$4 sm:$0xff]   ;;  %v7354_v21 = vld [vmem:[%s9914_s5 + $0x810] ss:$168 sps:$4 sm:$0xff]  }
 0x9bb   :  { %6947 = vmatprep.subr.bf16.mxu0 %v7766_v5  ;;  %2380 = vmatprep.subr.bf16.mxu1 %v7328_v23  ;;  %v7358_v23 = vld [vmem:[%s9914_s5 + $0x960] ss:$168 sps:$4 sm:$0xff]  }
 0x9be   :  { %2381 = vmatpush1.bf16.msra.mxu1 %v7326_v22  ;;  %6948 = vmatpush3.bf16.msra.mxu0 %v7329_v26  ;;  %v7357_v22 = vld [vmem:[%s9914_s5 + $0x818] ss:$168 sps:$4 sm:$0xff]   ;;  %v7360_v26 = vld [vmem:[%s9914_s5 + $0x964] ss:$168 sps:$4 sm:$0xff]  }
 0x9bf   :  { %6953 = vmatprep.subr.bf16.mxu0 %v7766_v5  ;;  %2630 = vmatprep.subr.bf16.mxu1 %v7332_v60 }
 0xa73   :  { %v2128_v28 = vpop.f32.mrb[32].mxu1  ;;  %v2169_v29 = vpop.f32.mrb[36].mxu0 }
 0xa74   :  { %v2176_v30 = vrot.slane %v2128_v28, 7  ;;  %v2178_v31 = vrot.slane %v2169_v29, 1  ;;  %v2130_v33 = vpop.f32.mrb[33].mxu1  ;;  %v6931_v36 = vpop.f32.mrb[37].mxu0  ;;  %v7361_v28 = vld [vmem:[%s9914_s5 + $0x968] ss:$168 sps:$4 sm:$0xff]  }
 0xa75   :  { %v2132_v37 = vpop.f32.mrb[34].mxu1  ;;  %v2172_v40 = vpop.f32.mrb[38].mxu0 }
 0xa76   :  { %v2177_v42 = vmul.f32 %v8507_v45, %v2176_v30  ;;  %v2133_v43 = vpop.f32.mrb[35].mxu1  ;;  %v6932_v46 = vpop.f32.mrb[39].mxu0  ;;  %v2179_v47 = vmul.f32 %v8512_v32, %v2178_v31 }
 0xa78   :  { %v2180_v48 = vadd.f32 %v2177_v42, %v2130_v33 }
 0xa7a   :  { %v2181_v50 = vadd.f32 %v2180_v48, %v2179_v47 }
 0xa7c   :  { %v2188_v51 = vadd.f32 %v6289_v49, %v2181_v50  ;;  %v6316_v50 = vld [vmem:[%s9915_s7 + $0x9] ss:$0 sm:$0xff] }
 0xa7e   :  { %v6290_v52 = vmul.f32 -1.442695, %v2188_v51 }
 0xa80   :  { %7697 = vpow2.f32 %v6290_v52 }
 0xa8a   :  { %v7698_v53 = vpop.eup %7697 }
 0xa8b   :  { %v2192_v2 = vadd.f32 1.0, %v7698_v53 }
 0xa8d   :  { %7699 = vrcp.f32 %v2192_v2 }
 0xa97   :  { %v7700_v16 = vpop.eup %7699 }
 0xa98   :  { %v2195_v25 = vmul.f32 %v7700_v16, %v2188_v51 }
 0xa9a   :  { %v2196_v57 = vadd.f32 %v2195_v25, %v8509_v34  ;;  %v7330_v34 = vld [vmem:[%s9914_s5 + $0x30] ss:$168 sps:$4 sm:$0xff]  }
 0xa9c   :  { %v8614_v58 = vadd.f32 %v6291_v56, %v2196_v57  ;;  %v190_v56 = vld [vmem:[%s9920_s3 + $0x8] sm:$0xff] }
 0xa9e   :  { %v2237_v59 = vpack.c.bf16 %v8614_v58, %v8614_v58 }
 0xaa0   :  { %2399 = vmatmul.mubr.bf16.vlgmr.msra.gmra.mrb[36].mxu1 %v2237_v59  ;;  %6950 = vmatmul.mubr.bf16.vlgmr.msra.gmra.mrb[40].mxu0 %v2237_v59 }
 0xaa1   :  { %2662 = vmatprep.mubr.bf16.mxu1 %v7765_v1  ;;  %6969 = vmatprep.mubr.msk.bf16.mxu0 %vm7768_vm7, %v7766_v5 }
 0xaa2   :  { %2631 = vmatpush1.bf16.msra.mxu1 %v7330_v34  ;;  %6954 = vmatpush3.bf16.msra.mxu0 %v7333_v61  ;;  %v7364_v34 = vld [vmem:[%s9914_s5 + $0x40] ss:$168 sps:$4 sm:$0xff]   ;;  %v7362_v61 = vld [vmem:[%s9914_s5 + $0x3c] ss:$168 sps:$4 sm:$0xff]  }
 0xaa3   :  { %6955 = vmatprep.subr.bf16.mxu0 %v7766_v5  ;;  %2632 = vmatprep.subr.bf16.mxu1 %v7336_v62  ;;  %v7365_v62 = vld [vmem:[%s9914_s5 + $0x44] ss:$168 sps:$4 sm:$0xff]  }
 0xaa6   :  { %2633 = vmatpush1.bf16.msra.mxu1 %v7334_v63  ;;  %6956 = vmatpush3.bf16.msra.mxu0 %v7337_v0  ;;  %v7368_v63 = vld [vmem:[%s9914_s5 + $0x190] ss:$168 sps:$4 sm:$0xff]   ;;  %v7366_v0 = vld [vmem:[%s9914_s5 + $0x18c] ss:$168 sps:$4 sm:$0xff]  }
 0xaa7   :  { %6957 = vmatprep.subr.bf16.mxu0 %v7766_v5  ;;  %2634 = vmatprep.subr.bf16.mxu1 %v7340_v3  ;;  %v7369_v3 = vld [vmem:[%s9914_s5 + $0x194] ss:$168 sps:$4 sm:$0xff]  }
 0xaaa   :  { %2635 = vmatpush1.bf16.msra.mxu1 %v7338_v4  ;;  %6958 = vmatpush3.bf16.msra.mxu0 %v7341_v8  ;;  %v7372_v4 = vld [vmem:[%s9914_s5 + $0x2e0] ss:$168 sps:$4 sm:$0xff]   ;;  %v7370_v8 = vld [vmem:[%s9914_s5 + $0x2dc] ss:$168 sps:$4 sm:$0xff]  }
 0xaab   :  { %6959 = vmatprep.subr.bf16.mxu0 %v7766_v5  ;;  %2636 = vmatprep.subr.bf16.mxu1 %v7344_v12  ;;  %v7373_v12 = vld [vmem:[%s9914_s5 + $0x2e4] ss:$168 sps:$4 sm:$0xff]  }
 0xaae   :  { %2637 = vmatpush1.bf16.msra.mxu1 %v7342_v13  ;;  %6960 = vmatpush3.bf16.msra.mxu0 %v7345_v14  ;;  %v7376_v13 = vld [vmem:[%s9914_s5 + $0x430] ss:$168 sps:$4 sm:$0xff]   ;;  %v7374_v14 = vld [vmem:[%s9914_s5 + $0x42c] ss:$168 sps:$4 sm:$0xff]  }
 0xaaf   :  { %6961 = vmatprep.subr.bf16.mxu0 %v7766_v5  ;;  %2638 = vmatprep.subr.bf16.mxu1 %v7348_v15  ;;  %v7377_v15 = vld [vmem:[%s9914_s5 + $0x434] ss:$168 sps:$4 sm:$0xff]  }
 0xab2   :  { %2639 = vmatpush1.bf16.msra.mxu1 %v7346_v17  ;;  %6962 = vmatpush3.bf16.msra.mxu0 %v7349_v35  ;;  %v7380_v17 = vld [vmem:[%s9914_s5 + $0x580] ss:$168 sps:$4 sm:$0xff]   ;;  %v7378_v35 = vld [vmem:[%s9914_s5 + $0x57c] ss:$168 sps:$4 sm:$0xff]  }
 0xab3   :  { %6963 = vmatprep.subr.bf16.mxu0 %v7766_v5  ;;  %2640 = vmatprep.subr.bf16.mxu1 %v7352_v41  ;;  %v7381_v41 = vld [vmem:[%s9914_s5 + $0x584] ss:$168 sps:$4 sm:$0xff]  }
 0xab6   :  { %2641 = vmatpush1.bf16.msra.mxu1 %v7350_v18  ;;  %6964 = vmatpush3.bf16.msra.mxu0 %v7353_v19  ;;  %v7384_v18 = vld [vmem:[%s9914_s5 + $0x6d0] ss:$168 sps:$4 sm:$0xff]   ;;  %v7382_v19 = vld [vmem:[%s9914_s5 + $0x6cc] ss:$168 sps:$4 sm:$0xff]  }
 0xab7   :  { %6965 = vmatprep.subr.bf16.mxu0 %v7766_v5  ;;  %2642 = vmatprep.subr.bf16.mxu1 %v7356_v20  ;;  %v7385_v20 = vld [vmem:[%s9914_s5 + $0x6d4] ss:$168 sps:$4 sm:$0xff]  }
 0xaba   :  { %2643 = vmatpush1.bf16.msra.mxu1 %v7354_v21  ;;  %6966 = vmatpush3.bf16.msra.mxu0 %v7357_v22  ;;  %v7388_v21 = vld [vmem:[%s9914_s5 + $0x820] ss:$168 sps:$4 sm:$0xff]   ;;  %v7386_v22 = vld [vmem:[%s9914_s5 + $0x81c] ss:$168 sps:$4 sm:$0xff]  }
 0xabb   :  { %6967 = vmatprep.subr.bf16.mxu0 %v7766_v5  ;;  %2644 = vmatprep.subr.bf16.mxu1 %v7360_v26  ;;  %v7392_v26 = vld [vmem:[%s9914_s5 + $0x970] ss:$168 sps:$4 sm:$0xff]  }
 0xabe   :  { %2645 = vmatpush1.bf16.msra.mxu1 %v7358_v23  ;;  %6968 = vmatpush3.bf16.msra.mxu0 %v7361_v28  ;;  %v7389_v23 = vld [vmem:[%s9914_s5 + $0x824] ss:$168 sps:$4 sm:$0xff]  }
 0xabf   :  { %6973 = vmatprep.subr.bf16.mxu0 %v7766_v5  ;;  %2894 = vmatprep.subr.bf16.mxu1 %v7364_v34  ;;  %v7390_v28 = vld [vmem:[%s9914_s5 + $0x96c] ss:$168 sps:$4 sm:$0xff]  }
 0xac0   :  { %v7396_v34 = vld [vmem:[%s9914_s5 + $0x4c] ss:$168 sps:$4 sm:$0xff]  }
 0xb73   :  { %v2400_v29 = vpop.f32.mrb[36].mxu1  ;;  %v2441_v30 = vpop.f32.mrb[40].mxu0 }
 0xb74   :  { %v2448_v31 = vrot.slane %v2400_v29, 7  ;;  %v2450_v33 = vrot.slane %v2441_v30, 1  ;;  %v2402_v36 = vpop.f32.mrb[37].mxu1  ;;  %v6951_v37 = vpop.f32.mrb[41].mxu0  ;;  %v7393_v29 = vld [vmem:[%s9914_s5 + $0x974] ss:$168 sps:$4 sm:$0xff]  }
 0xb75   :  { %v2404_v40 = vpop.f32.mrb[38].mxu1  ;;  %v2444_v42 = vpop.f32.mrb[42].mxu0 }
 0xb76   :  { %v2449_v43 = vmul.f32 %v8507_v45, %v2448_v31  ;;  %v2405_v46 = vpop.f32.mrb[39].mxu1  ;;  %v6952_v47 = vpop.f32.mrb[43].mxu0  ;;  %v2451_v48 = vmul.f32 %v8512_v32, %v2450_v33 }
 0xb78   :  { %v2452_v49 = vadd.f32 %v2449_v43, %v2402_v36 }
 0xb7a   :  { %v2453_v51 = vadd.f32 %v2452_v49, %v2451_v48 }
 0xb7c   :  { %v2460_v52 = vadd.f32 %v6316_v50, %v2453_v51  ;;  %v6342_v51 = vld [vmem:[%s9915_s7 + $0xa] ss:$0 sm:$0xff] }
 0xb7e   :  { %v6317_v53 = vmul.f32 -1.442695, %v2460_v52 }
 0xb80   :  { %7701 = vpow2.f32 %v6317_v53 }
 0xb8a   :  { %v7702_v2 = vpop.eup %7701 }
 0xb8b   :  { %v2464_v16 = vadd.f32 1.0, %v7702_v2 }
 0xb8d   :  { %7703 = vrcp.f32 %v2464_v16 }
 0xb97   :  { %v7704_v25 = vpop.eup %7703 }
 0xb98   :  { %v2467_v57 = vmul.f32 %v7704_v25, %v2460_v52 }
 0xb9a   :  { %v2468_v59 = vadd.f32 %v2467_v57, %v190_v56 }
 0xb9c   :  { %v2501_v60 = vpack.c.bf16 %v2468_v59, %v2468_v59 }
 0xb9e   :  { %2663 = vmatmul.mubr.bf16.vlgmr.msra.gmra.mrb[40].mxu1 %v2501_v60  ;;  %6970 = vmatmul.mubr.bf16.vlgmr.msra.gmra.mrb[44].mxu0 %v2501_v60 }
 0xb9f   :  { %2926 = vmatprep.mubr.bf16.mxu1 %v7765_v1  ;;  %6989 = vmatprep.mubr.msk.bf16.mxu0 %vm7768_vm7, %v7766_v5 }
 0xba0   :  { %2895 = vmatpush1.bf16.msra.mxu1 %v7362_v61  ;;  %6974 = vmatpush3.bf16.msra.mxu0 %v7365_v62  ;;  %v7394_v61 = vld [vmem:[%s9914_s5 + $0x48] ss:$168 sps:$4 sm:$0xff]   ;;  %v7400_v62 = vld [vmem:[%s9914_s5 + $0x19c] ss:$168 sps:$4 sm:$0xff]  }
 0xba1   :  { %6975 = vmatprep.subr.bf16.mxu0 %v7766_v5  ;;  %2896 = vmatprep.subr.bf16.mxu1 %v7368_v63  ;;  %v7398_v63 = vld [vmem:[%s9914_s5 + $0x198] ss:$168 sps:$4 sm:$0xff]  }
 0xba4   :  { %2897 = vmatpush1.bf16.msra.mxu1 %v7366_v0  ;;  %6976 = vmatpush3.bf16.msra.mxu0 %v7369_v3  ;;  %v7401_v0 = vld [vmem:[%s9914_s5 + $0x1a0] ss:$168 sps:$4 sm:$0xff]   ;;  %v7404_v3 = vld [vmem:[%s9914_s5 + $0x2ec] ss:$168 sps:$4 sm:$0xff]  }
 0xba5   :  { %6977 = vmatprep.subr.bf16.mxu0 %v7766_v5  ;;  %2898 = vmatprep.subr.bf16.mxu1 %v7372_v4  ;;  %v7402_v4 = vld [vmem:[%s9914_s5 + $0x2e8] ss:$168 sps:$4 sm:$0xff]  }
 0xba8   :  { %2899 = vmatpush1.bf16.msra.mxu1 %v7370_v8  ;;  %6978 = vmatpush3.bf16.msra.mxu0 %v7373_v12  ;;  %v7405_v8 = vld [vmem:[%s9914_s5 + $0x2f0] ss:$168 sps:$4 sm:$0xff]   ;;  %v7408_v12 = vld [vmem:[%s9914_s5 + $0x43c] ss:$168 sps:$4 sm:$0xff]  }
 0xba9   :  { %6979 = vmatprep.subr.bf16.mxu0 %v7766_v5  ;;  %2900 = vmatprep.subr.bf16.mxu1 %v7376_v13  ;;  %v7406_v13 = vld [vmem:[%s9914_s5 + $0x438] ss:$168 sps:$4 sm:$0xff]  }
 0xbac   :  { %2901 = vmatpush1.bf16.msra.mxu1 %v7374_v14  ;;  %6980 = vmatpush3.bf16.msra.mxu0 %v7377_v15  ;;  %v7409_v14 = vld [vmem:[%s9914_s5 + $0x440] ss:$168 sps:$4 sm:$0xff]   ;;  %v7412_v15 = vld [vmem:[%s9914_s5 + $0x58c] ss:$168 sps:$4 sm:$0xff]  }
 0xbad   :  { %6981 = vmatprep.subr.bf16.mxu0 %v7766_v5  ;;  %2902 = vmatprep.subr.bf16.mxu1 %v7380_v17  ;;  %v7410_v17 = vld [vmem:[%s9914_s5 + $0x588] ss:$168 sps:$4 sm:$0xff]  }
 0xbb0   :  { %2903 = vmatpush1.bf16.msra.mxu1 %v7378_v35  ;;  %6982 = vmatpush3.bf16.msra.mxu0 %v7381_v41  ;;  %v7413_v35 = vld [vmem:[%s9914_s5 + $0x590] ss:$168 sps:$4 sm:$0xff]   ;;  %v7416_v41 = vld [vmem:[%s9914_s5 + $0x6dc] ss:$168 sps:$4 sm:$0xff]  }
 0xbb1   :  { %6983 = vmatprep.subr.bf16.mxu0 %v7766_v5  ;;  %2904 = vmatprep.subr.bf16.mxu1 %v7384_v18  ;;  %v7414_v18 = vld [vmem:[%s9914_s5 + $0x6d8] ss:$168 sps:$4 sm:$0xff]  }
 0xbb4   :  { %2905 = vmatpush1.bf16.msra.mxu1 %v7382_v19  ;;  %6984 = vmatpush3.bf16.msra.mxu0 %v7385_v20  ;;  %v7417_v19 = vld [vmem:[%s9914_s5 + $0x6e0] ss:$168 sps:$4 sm:$0xff]   ;;  %v7420_v20 = vld [vmem:[%s9914_s5 + $0x82c] ss:$168 sps:$4 sm:$0xff]  }
 0xbb5   :  { %6985 = vmatprep.subr.bf16.mxu0 %v7766_v5  ;;  %2906 = vmatprep.subr.bf16.mxu1 %v7388_v21  ;;  %v7418_v21 = vld [vmem:[%s9914_s5 + $0x828] ss:$168 sps:$4 sm:$0xff]  }
 0xbb8   :  { %2907 = vmatpush1.bf16.msra.mxu1 %v7386_v22  ;;  %6986 = vmatpush3.bf16.msra.mxu0 %v7389_v23  ;;  %v7421_v22 = vld [vmem:[%s9914_s5 + $0x830] ss:$168 sps:$4 sm:$0xff]  }
 0xbb9   :  { %6987 = vmatprep.subr.bf16.mxu0 %v7766_v5  ;;  %2908 = vmatprep.subr.bf16.mxu1 %v7392_v26  ;;  %v7422_v23 = vld [vmem:[%s9914_s5 + $0x978] ss:$168 sps:$4 sm:$0xff]   ;;  %v7424_v26 = vld [vmem:[%s9914_s5 + $0x97c] ss:$168 sps:$4 sm:$0xff]  }
 0xbbc   :  { %2909 = vmatpush1.bf16.msra.mxu1 %v7390_v28  ;;  %6988 = vmatpush3.bf16.msra.mxu0 %v7393_v29  ;;  %v7425_v28 = vld [vmem:[%s9914_s5 + $0x980] ss:$168 sps:$4 sm:$0xff]  }
 0xbbd   :  { %6993 = vmatprep.subr.bf16.mxu0 %v7766_v5  ;;  %3158 = vmatprep.subr.bf16.mxu1 %v7396_v34 }
 0xc71   :  { %v2664_v30 = vpop.f32.mrb[40].mxu1  ;;  %v2705_v31 = vpop.f32.mrb[44].mxu0 }
 0xc72   :  { %v2712_v33 = vrot.slane %v2664_v30, 7  ;;  %v2714_v36 = vrot.slane %v2705_v31, 1  ;;  %v2666_v37 = vpop.f32.mrb[41].mxu1  ;;  %v6971_v40 = vpop.f32.mrb[45].mxu0 }
 0xc73   :  { %v2668_v42 = vpop.f32.mrb[42].mxu1  ;;  %v2708_v43 = vpop.f32.mrb[46].mxu0 }
 0xc74   :  { %v2713_v46 = vmul.f32 %v8507_v45, %v2712_v33  ;;  %v2669_v47 = vpop.f32.mrb[43].mxu1  ;;  %v6972_v48 = vpop.f32.mrb[47].mxu0  ;;  %v2715_v49 = vmul.f32 %v8512_v32, %v2714_v36 }
 0xc76   :  { %v2716_v50 = vadd.f32 %v2713_v46, %v2666_v37 }
 0xc78   :  { %v2717_v52 = vadd.f32 %v2716_v50, %v2715_v49  ;;  %v6368_v50 = vld [vmem:[%s9915_s7 + $0xb] ss:$0 sm:$0xff] }
 0xc7a   :  { %v2724_v53 = vadd.f32 %v6342_v51, %v2717_v52 }
 0xc7c   :  { %v6343_v2 = vmul.f32 -1.442695, %v2724_v53 }
 0xc7e   :  { %7705 = vpow2.f32 %v6343_v2 }
 0xc88   :  { %v7706_v16 = vpop.eup %7705 }
 0xc89   :  { %v2728_v25 = vadd.f32 1.0, %v7706_v16 }
 0xc8b   :  { %7707 = vrcp.f32 %v2728_v25 }
 0xc95   :  { %v7708_v56 = vpop.eup %7707 }
 0xc96   :  { %v2731_v57 = vmul.f32 %v7708_v56, %v2724_v53  ;;  %v191_v56 = vld [vmem:[%s9920_s3 + $0x10] sm:$0xff] }
 0xc98   :  { %v8798_v59 = vadd.f32 %v2731_v57, %v8614_v58  ;;  %v7397_v58 = vld [vmem:[%s9914_s5 + $0x50] ss:$168 sps:$4 sm:$0xff]  }
 0xc9a   :  { %v2765_v60 = vpack.c.bf16 %v8798_v59, %v8798_v59 }
 0xc9c   :  { %2927 = vmatmul.mubr.bf16.vlgmr.msra.gmra.mrb[44].mxu1 %v2765_v60  ;;  %6990 = vmatmul.mubr.bf16.vlgmr.msra.gmra.mrb[48].mxu0 %v2765_v60 }
 0xc9d   :  { %3190 = vmatprep.mubr.bf16.mxu1 %v7765_v1  ;;  %7009 = vmatprep.mubr.msk.bf16.mxu0 %vm7768_vm7, %v7766_v5 }
 0xc9e   :  { %3159 = vmatpush1.bf16.msra.mxu1 %v7394_v61  ;;  %6994 = vmatpush3.bf16.msra.mxu0 %v7397_v58  ;;  %v7428_v61 = vld [vmem:[%s9914_s5 + $0x98] ss:$168 sps:$4 sm:$0xff]   ;;  %v7426_v58 = vld [vmem:[%s9914_s5 + $0x94] ss:$168 sps:$4 sm:$0xff]  }
 0xc9f   :  { %6995 = vmatprep.subr.bf16.mxu0 %v7766_v5  ;;  %3160 = vmatprep.subr.bf16.mxu1 %v7400_v62  ;;  %v7431_v62 = vld [vmem:[%s9914_s5 + $0x1e8] ss:$168 sps:$4 sm:$0xff]  }
 0xca2   :  { %3161 = vmatpush1.bf16.msra.mxu1 %v7398_v63  ;;  %6996 = vmatpush3.bf16.msra.mxu0 %v7401_v0  ;;  %v7429_v63 = vld [vmem:[%s9914_s5 + $0x1e4] ss:$168 sps:$4 sm:$0xff]   ;;  %v7434_v0 = vld [vmem:[%s9914_s5 + $0x338] ss:$168 sps:$4 sm:$0xff]  }
 0xca3   :  { %6997 = vmatprep.subr.bf16.mxu0 %v7766_v5  ;;  %3162 = vmatprep.subr.bf16.mxu1 %v7404_v3  ;;  %v7432_v3 = vld [vmem:[%s9914_s5 + $0x334] ss:$168 sps:$4 sm:$0xff]  }
 0xca6   :  { %3163 = vmatpush1.bf16.msra.mxu1 %v7402_v4  ;;  %6998 = vmatpush3.bf16.msra.mxu0 %v7405_v8  ;;  %v7437_v4 = vld [vmem:[%s9914_s5 + $0x488] ss:$168 sps:$4 sm:$0xff]   ;;  %v7435_v8 = vld [vmem:[%s9914_s5 + $0x484] ss:$168 sps:$4 sm:$0xff]  }
 0xca7   :  { %6999 = vmatprep.subr.bf16.mxu0 %v7766_v5  ;;  %3164 = vmatprep.subr.bf16.mxu1 %v7408_v12  ;;  %v7440_v12 = vld [vmem:[%s9914_s5 + $0x5d8] ss:$168 sps:$4 sm:$0xff]  }
 0xcaa   :  { %3165 = vmatpush1.bf16.msra.mxu1 %v7406_v13  ;;  %7000 = vmatpush3.bf16.msra.mxu0 %v7409_v14  ;;  %v7438_v13 = vld [vmem:[%s9914_s5 + $0x5d4] ss:$168 sps:$4 sm:$0xff]   ;;  %v7443_v14 = vld [vmem:[%s9914_s5 + $0x728] ss:$168 sps:$4 sm:$0xff]  }
 0xcab   :  { %7001 = vmatprep.subr.bf16.mxu0 %v7766_v5  ;;  %3166 = vmatprep.subr.bf16.mxu1 %v7412_v15  ;;  %v7441_v15 = vld [vmem:[%s9914_s5 + $0x724] ss:$168 sps:$4 sm:$0xff]  }
 0xcae   :  { %3167 = vmatpush1.bf16.msra.mxu1 %v7410_v17  ;;  %7002 = vmatpush3.bf16.msra.mxu0 %v7413_v35  ;;  %v7446_v17 = vld [vmem:[%s9914_s5 + $0x878] ss:$168 sps:$4 sm:$0xff]   ;;  %v7444_v35 = vld [vmem:[%s9914_s5 + $0x874] ss:$168 sps:$4 sm:$0xff]  }
 0xcaf   :  { %7003 = vmatprep.subr.bf16.mxu0 %v7766_v5  ;;  %3168 = vmatprep.subr.bf16.mxu1 %v7416_v41  ;;  %v7449_v41 = vld [vmem:[%s9914_s5 + $0x9c8] ss:$168 sps:$4 sm:$0xff]  }
 0xcb2   :  { %3169 = vmatpush1.bf16.msra.mxu1 %v7414_v18  ;;  %7004 = vmatpush3.bf16.msra.mxu0 %v7417_v19  ;;  %v7447_v18 = vld [vmem:[%s9914_s5 + $0x9c4] ss:$168 sps:$4 sm:$0xff]   ;;  %v7452_v19 = vld [vmem:[%s9914_s5 + $0x60] ss:$168 sps:$4 sm:$0xff]  }
 0xcb3   :  { %7005 = vmatprep.subr.bf16.mxu0 %v7766_v5  ;;  %3170 = vmatprep.subr.bf16.mxu1 %v7420_v20 }
 0xcb6   :  { %3171 = vmatpush1.bf16.msra.mxu1 %v7418_v21  ;;  %7006 = vmatpush3.bf16.msra.mxu0 %v7421_v22 }
 0xcb7   :  { %7007 = vmatprep.subr.bf16.mxu0 %v7766_v5  ;;  %3172 = vmatprep.subr.bf16.mxu1 %v7424_v26 }
 0xcba   :  { %3173 = vmatpush1.bf16.msra.mxu1 %v7422_v23  ;;  %7008 = vmatpush3.bf16.msra.mxu0 %v7425_v28 }
 0xcbb   :  { %3358 = vmatprep.subr.bf16.mxu1 %v7428_v61  ;;  %v7465_v61 = vld [vmem:[%s9914_s5 + $0x6ec] ss:$168 sps:$4 sm:$0xff]  }
 0xd6f   :  { %v2928_v29 = vpop.f32.mrb[44].mxu1  ;;  %v2969_v30 = vpop.f32.mrb[48].mxu0 }
 0xd70   :  { %v2976_v31 = vrot.slane %v2928_v29, 7  ;;  %v2978_v33 = vrot.slane %v2969_v30, 1  ;;  %v2930_v36 = vpop.f32.mrb[45].mxu1  ;;  %v6991_v37 = vpop.f32.mrb[49].mxu0 }
 0xd71   :  { %v2932_v40 = vpop.f32.mrb[46].mxu1  ;;  %v2972_v42 = vpop.f32.mrb[50].mxu0 }
 0xd72   :  { %v2977_v43 = vmul.f32 %v8507_v45, %v2976_v31  ;;  %v2933_v46 = vpop.f32.mrb[47].mxu1  ;;  %v6992_v47 = vpop.f32.mrb[51].mxu0  ;;  %v2979_v48 = vmul.f32 %v8512_v32, %v2978_v33  ;;  %v6394_v42 = vld [vmem:[%s9915_s7 + $0xc] ss:$0 sm:$0xff] }
 0xd74   :  { %v2980_v49 = vadd.f32 %v2977_v43, %v2930_v36 }
 0xd76   :  { %v2981_v51 = vadd.f32 %v2980_v49, %v2979_v48 }
 0xd78   :  { %v2988_v52 = vadd.f32 %v6368_v50, %v2981_v51 }
 0xd7a   :  { %v6369_v53 = vmul.f32 -1.442695, %v2988_v52 }
 0xd7c   :  { %7709 = vpow2.f32 %v6369_v53  ;;  %v7455_v53 = vld [vmem:[%s9914_s5 + $0x1b0] ss:$168 sps:$4 sm:$0xff]  }
 0xd86   :  { %v7710_v2 = vpop.eup %7709 }
 0xd87   :  { %v2992_v16 = vadd.f32 1.0, %v7710_v2  ;;  %v7453_v2 = vld [vmem:[%s9914_s5 + $0x1ac] ss:$168 sps:$4 sm:$0xff]  }
 0xd89   :  { %7711 = vrcp.f32 %v2992_v16  ;;  %v7456_v16 = vld [vmem:[%s9914_s5 + $0x2fc] ss:$168 sps:$4 sm:$0xff]  }
 0xd93   :  { %v7712_v25 = vpop.eup %7711 }
 0xd94   :  { %v2995_v57 = vmul.f32 %v7712_v25, %v2988_v52  ;;  %v7461_v25 = vld [vmem:[%s9914_s5 + $0x450] ss:$168 sps:$4 sm:$0xff]  }
 0xd96   :  { %v2996_v60 = vadd.f32 %v2995_v57, %v191_v56  ;;  %v7459_v56 = vld [vmem:[%s9914_s5 + $0x44c] ss:$168 sps:$4 sm:$0xff]   ;;  %v7464_v57 = vld [vmem:[%s9914_s5 + $0x5a0] ss:$168 sps:$4 sm:$0xff]  }
 0xd98   :  { %v3029_v34 = vpack.c.bf16 %v2996_v60, %v2996_v60  ;;  %v7462_v60 = vld [vmem:[%s9914_s5 + $0x59c] ss:$168 sps:$4 sm:$0xff]  }
 0xd9a   :  { %3191 = vmatmul.mubr.bf16.vlgmr.msra.gmra.mrb[48].mxu1 %v3029_v34  ;;  %7010 = vmatmul.mubr.bf16.vlgmr.msra.gmra.mrb[52].mxu0 %v3029_v34  ;;  %v7467_v34 = vld [vmem:[%s9914_s5 + $0x6f0] ss:$168 sps:$4 sm:$0xff]  }
 0xd9b   :  { %3390 = vmatprep.mubr.bf16.mxu1 %v7765_v1  ;;  %3451 = vmatprep.mubr.bf16.mxu0 %v7765_v1 }
 0xd9c   :  { %3359 = vmatpush1.bf16.msra.mxu1 %v7426_v58  ;;  %v7470_v58 = vld [vmem:[%s9914_s5 + $0x840] ss:$168 sps:$4 sm:$0xff]  }
 0xd9d   :  { %3360 = vmatprep.subr.bf16.mxu1 %v7431_v62  ;;  %v7468_v62 = vld [vmem:[%s9914_s5 + $0x83c] ss:$168 sps:$4 sm:$0xff]  }
 0xda0   :  { %3361 = vmatpush1.bf16.msra.mxu1 %v7429_v63  ;;  %v7473_v63 = vld [vmem:[%s9914_s5 + $0x990] ss:$168 sps:$4 sm:$0xff]  }
 0xda1   :  { %3362 = vmatprep.subr.bf16.mxu1 %v7434_v0  ;;  %v7471_v0 = vld [vmem:[%s9914_s5 + $0x98c] ss:$168 sps:$4 sm:$0xff]  }
 0xda4   :  { %3363 = vmatpush1.bf16.msra.mxu1 %v7432_v3  ;;  %v3463_v3 = vld [vmem:[%s9922_s6 + $0x8] sm:$0xff] }
 0xda5   :  { %3364 = vmatprep.subr.bf16.mxu1 %v7437_v4  ;;  %v3465_v4 = vld [vmem:[%s9922_s6 + $0x28] sm:$0xff] }
 0xda8   :  { %3365 = vmatpush1.bf16.msra.mxu1 %v7435_v8  ;;  %v6449_v8 = vcombine.low %v3463_v3, %v3465_v4 }
 0xda9   :  { %3366 = vmatprep.subr.bf16.mxu1 %v7440_v12  ;;  %v6450_v12 = vcombine.high %v3463_v3, %v3465_v4 }
 0xdac   :  { %3367 = vmatpush1.bf16.msra.mxu1 %v7438_v13  ;;  %v3467_v13 = vld [vmem:[%s9922_s6 + $0x48] sm:$0xff] }
 0xdad   :  { %3368 = vmatprep.subr.bf16.mxu1 %v7443_v14  ;;  %v3469_v14 = vld [vmem:[%s9922_s6 + $0x68] sm:$0xff] }
 0xdb0   :  { %3369 = vmatpush1.bf16.msra.mxu1 %v7441_v15  ;;  %v6454_v15 = vcombine.high %v3467_v13, %v3469_v14 }
 0xdb1   :  { %3370 = vmatprep.subr.bf16.mxu1 %v7446_v17  ;;  %v6453_v17 = vcombine.low %v3467_v13, %v3469_v14 }
 0xdb4   :  { %3371 = vmatpush1.bf16.msra.mxu1 %v7444_v35  ;;  %v3471_v35 = vld [vmem:[%s9922_s6 + $0x88] sm:$0xff] }
 0xdb5   :  { %3372 = vmatprep.subr.bf16.mxu1 %v7449_v41  ;;  %v3473_v41 = vld [vmem:[%s9922_s6 + $0xa8] sm:$0xff] }
 0xdb8   :  { %3373 = vmatpush1.bf16.msra.mxu1 %v7447_v18  ;;  %v6458_v18 = vcombine.high %v3471_v35, %v3473_v41 }
 0xdb9   :  { %3763 = vmatprep.subr.bf16.mxu1 %v7452_v19  ;;  %v6457_v19 = vcombine.low %v3471_v35, %v3473_v41 }
 0xe6d   :  { %v3192_v20 = vpop.f32.mrb[48].mxu1  ;;  %v3233_v21 = vpop.f32.mrb[52].mxu0 }
 0xe6e   :  { %v3240_v22 = vrot.slane %v3192_v20, 7  ;;  %v3242_v23 = vrot.slane %v3233_v21, 1  ;;  %v3194_v26 = vpop.f32.mrb[49].mxu1  ;;  %v7011_v28 = vpop.f32.mrb[53].mxu0  ;;  %v3475_v20 = vld [vmem:[%s9922_s6 + $0xc8] sm:$0xff] }
 0xe6f   :  { %v3196_v29 = vpop.f32.mrb[50].mxu1  ;;  %v3236_v30 = vpop.f32.mrb[54].mxu0  ;;  %v3477_v21 = vld [vmem:[%s9922_s6 + $0xe8] sm:$0xff] }
 0xe70   :  { %v3241_v31 = vmul.f32 %v8507_v45, %v3240_v22  ;;  %v3197_v33 = vpop.f32.mrb[51].mxu1  ;;  %v7012_v36 = vpop.f32.mrb[55].mxu0  ;;  %v3243_v37 = vmul.f32 %v8512_v32, %v3242_v23  ;;  %v7450_v32 = vld [vmem:[%s9914_s5 + $0x5c] ss:$168 sps:$4 sm:$0xff]   ;;  %v6462_v22 = vcombine.high %v3475_v20, %v3477_v21  ;;  %v6461_v23 = vcombine.low %v3475_v20, %v3477_v21  ;;  %v3481_v28 = vld [vmem:[%s9922_s6 + $0x128] sm:$0xff] }
 0xe71   :  { %v3485_v33 = vld [vmem:[%s9922_s6 + $0x168] sm:$0xff] }
 0xe72   :  { %v3244_v40 = vadd.f32 %v3241_v31, %v3194_v26  ;;  %v3479_v26 = vld [vmem:[%s9922_s6 + $0x108] sm:$0xff] }
 0xe73   :  { %v6466_v29 = vcombine.high %v3479_v26, %v3481_v28  ;;  %v6465_v30 = vcombine.low %v3479_v26, %v3481_v28  ;;  %v3483_v31 = vld [vmem:[%s9922_s6 + $0x148] sm:$0xff] }
 0xe74   :  { %v3245_v43 = vadd.f32 %v3244_v40, %v3243_v37  ;;  %v6470_v36 = vcombine.high %v3483_v31, %v3485_v33  ;;  %v6469_v37 = vcombine.low %v3483_v31, %v3485_v33  ;;  %v3487_v40 = vld [vmem:[%s9922_s6 + $0x188] sm:$0xff] }
 0xe75   :  { %v7480_v31 = vld [vmem:[%s9914_s5 + $0x1a8] ss:$168 sps:$4 sm:$0xff]   ;;  %v7478_v33 = vld [vmem:[%s9914_s5 + $0x1a4] ss:$168 sps:$4 sm:$0xff]  }
 0xe76   :  { %v3252_v46 = vadd.f32 %v6394_v42, %v3245_v43  ;;  %v3489_v42 = vld [vmem:[%s9922_s6 + $0x1a8] sm:$0xff] }
 0xe77   :  { %v6474_v43 = vcombine.high %v3487_v40, %v3489_v42 }
 0xe78   :  { %v6395_v47 = vmul.f32 -1.442695, %v3252_v46 }
 0xe7a   :  { %7713 = vpow2.f32 %v6395_v47  ;;  %v3491_v47 = vld [vmem:[%s9922_s6 + $0x1c8] sm:$0xff] }
 0xe84   :  { %v7714_v48 = vpop.eup %7713 }
 0xe85   :  { %v3256_v49 = vadd.f32 1.0, %v7714_v48  ;;  %v3493_v48 = vld [vmem:[%s9922_s6 + $0x1e8] sm:$0xff] }
 0xe87   :  { %7715 = vrcp.f32 %v3256_v49  ;;  %v6478_v49 = vcombine.high %v3491_v47, %v3493_v48 }
 0xe91   :  { %v7716_v50 = vpop.eup %7715 }
 0xe92   :  { %v3259_v51 = vmul.f32 %v7716_v50, %v3252_v46  ;;  %v6473_v46 = vcombine.low %v3487_v40, %v3489_v42  ;;  %v6477_v50 = vcombine.low %v3491_v47, %v3493_v48  ;;  %v7486_v40 = vld [vmem:[%s9914_s5 + $0x448] ss:$168 sps:$4 sm:$0xff]   ;;  %v7484_v42 = vld [vmem:[%s9914_s5 + $0x444] ss:$168 sps:$4 sm:$0xff]  }
 0xe93   :  { %v7492_v47 = vld [vmem:[%s9914_s5 + $0x6e8] ss:$168 sps:$4 sm:$0xff]   ;;  %v7490_v48 = vld [vmem:[%s9914_s5 + $0x6e4] ss:$168 sps:$4 sm:$0xff]  }
 0xe94   :  { %v3260_v45 = vadd.f32 %v3259_v51, %v8798_v59  ;;  %v7458_v59 = vld [vmem:[%s9914_s5 + $0x300] ss:$168 sps:$4 sm:$0xff]  }
 0xe95   :  { %v3495_v51 = vld [vmem:[%s9922_s6 + $0x208] sm:$0xff] }
 0xe96   :  { %v3277_v52 = vpack.c.bf16 %v3260_v45, %v3260_v45  ;;  %v3497_v45 = vld [vmem:[%s9922_s6 + $0x228] sm:$0xff] }
 0xe98   :  { %3391 = vmatmul.mubr.bf16.vlgmr.msra.gmra.mrb[52].mxu1 %v3277_v52  ;;  %v6481_v52 = vcombine.low %v3495_v51, %v3497_v45 }
 0xe99   :  { %3764 = vmatpush1.bf16.msra.mxu1 %v7450_v32  ;;  %3795 = vmatprep.mubr.bf16.mxu1 %v7765_v1  ;;  %v6482_v32 = vcombine.high %v3495_v51, %v3497_v45  ;;  %v7498_v51 = vld [vmem:[%s9914_s5 + $0x988] ss:$168 sps:$4 sm:$0xff]   ;;  %v3462_v45 = vld [vmem:[%s9922_s6] sm:$0xff] }
 0xe9a   :  { %3765 = vmatprep.subr.bf16.mxu1 %v7455_v53  ;;  %v3499_v53 = vld [vmem:[%s9922_s6 + $0x248] sm:$0xff] }
 0xe9d   :  { %3766 = vmatpush1.bf16.msra.mxu1 %v7453_v2  ;;  %v3501_v2 = vld [vmem:[%s9922_s6 + $0x268] sm:$0xff] }
 0xe9e   :  { %3767 = vmatprep.subr.bf16.mxu1 %v7458_v59  ;;  %v6486_v59 = vcombine.high %v3499_v53, %v3501_v2 }
 0xea1   :  { %3768 = vmatpush1.bf16.msra.mxu1 %v7456_v16  ;;  %v6485_v16 = vcombine.low %v3499_v53, %v3501_v2  ;;  %v3466_v2 = vld [vmem:[%s9922_s6 + $0x40] sm:$0xff] }
 0xea2   :  { %3769 = vmatprep.subr.bf16.mxu1 %v7461_v25  ;;  %v3503_v25 = vld [vmem:[%s9922_s6 + $0x288] sm:$0xff] }
 0xea5   :  { %3770 = vmatpush1.bf16.msra.mxu1 %v7459_v56  ;;  %v3505_v56 = vld [vmem:[%s9922_s6 + $0x2a8] sm:$0xff] }
 0xea6   :  { %3771 = vmatprep.subr.bf16.mxu1 %v7464_v57  ;;  %v6490_v57 = vcombine.high %v3503_v25, %v3505_v56 }
 0xea9   :  { %3772 = vmatpush1.bf16.msra.mxu1 %v7462_v60  ;;  %v6489_v60 = vcombine.low %v3503_v25, %v3505_v56  ;;  %v3470_v56 = vld [vmem:[%s9922_s6 + $0x80] sm:$0xff] }
 0xeaa   :  { %3773 = vmatprep.subr.bf16.mxu1 %v7467_v34  ;;  %v3507_v34 = vld [vmem:[%s9922_s6 + $0x2c8] sm:$0xff] }
 0xead   :  { %3774 = vmatpush1.bf16.msra.mxu1 %v7465_v61  ;;  %v3509_v61 = vld [vmem:[%s9922_s6 + $0x2e8] sm:$0xff] }
 0xeae   :  { %3775 = vmatprep.subr.bf16.mxu1 %v7470_v58  ;;  %v6494_v58 = vcombine.high %v3507_v34, %v3509_v61 }
 0xeb1   :  { %3776 = vmatpush1.bf16.msra.mxu1 %v7468_v62  ;;  %v6493_v62 = vcombine.low %v3507_v34, %v3509_v61  ;;  %v3474_v61 = vld [vmem:[%s9922_s6 + $0xc0] sm:$0xff] }
 0xeb2   :  { %3777 = vmatprep.subr.bf16.mxu1 %v7473_v63  ;;  %v3511_v63 = vld [vmem:[%s9922_s6 + $0x308] sm:$0xff] }
 0xeb5   :  { %3778 = vmatpush1.bf16.msra.mxu1 %v7471_v0  ;;  %v3513_v0 = vld [vmem:[%s9922_s6 + $0x328] sm:$0xff] }
 0xeb6   :  { %4169 = vmatprep.subr.bf16.mxu1 %v6450_v12  ;;  %v6498_v3 = vcombine.high %v3511_v63, %v3513_v0  ;;  %v6497_v4 = vcombine.low %v3511_v63, %v3513_v0  ;;  %v3517_v12 = vld [vmem:[%s9922_s6 + $0x368] sm:$0xff]  ;;  %v3480_v0 = vld [vmem:[%s9922_s6 + $0x120] sm:$0xff] }
 0xeb8   :  { %3796 = vmatmul.mubr.bf16.vlgmr.msra.gmra.mrb[56].mxu1 %v8357_v11 }
 0xeb9   :  { %4170 = vmatpush1.bf16.msra.mxu1 %v6449_v8  ;;  %v3515_v8 = vld [vmem:[%s9922_s6 + $0x348] sm:$0xff] }
 0xeba   :  { %4171 = vmatprep.subr.bf16.mxu1 %v6454_v15  ;;  %v6502_v13 = vcombine.high %v3515_v8, %v3517_v12  ;;  %v6501_v14 = vcombine.low %v3515_v8, %v3517_v12  ;;  %v3519_v15 = vld [vmem:[%s9922_s6 + $0x388] sm:$0xff]  ;;  %v3482_v8 = vld [vmem:[%s9922_s6 + $0x140] sm:$0xff] }
 0xebb   :  { %v3484_v12 = vld [vmem:[%s9922_s6 + $0x160] sm:$0xff] }
 0xebd   :  { %4172 = vmatpush1.bf16.msra.mxu1 %v6453_v17  ;;  %v3521_v17 = vld [vmem:[%s9922_s6 + $0x3a8] sm:$0xff] }
 0xebe   :  { %4173 = vmatprep.subr.bf16.mxu1 %v6458_v18  ;;  %v6506_v35 = vcombine.high %v3519_v15, %v3521_v17  ;;  %v6505_v41 = vcombine.low %v3519_v15, %v3521_v17  ;;  %v3486_v15 = vld [vmem:[%s9922_s6 + $0x180] sm:$0xff] }
 0xebf   :  { %v3488_v17 = vld [vmem:[%s9922_s6 + $0x1a0] sm:$0xff] }
 0xec1   :  { %4174 = vmatpush1.bf16.msra.mxu1 %v6457_v19 }
 0xec2   :  { %4175 = vmatprep.subr.bf16.mxu1 %v6462_v22 }
 0xec5   :  { %4176 = vmatpush1.bf16.msra.mxu1 %v6461_v23  ;;  %v7477_v23 = vld [vmem:[%s9914_s5 + $0x58] ss:$168 sps:$4 sm:$0xff]  }
 0xec6   :  { %4177 = vmatprep.subr.bf16.mxu1 %v6466_v29  ;;  %v7474_v29 = vld [vmem:[%s9921_s10] sm:$0xff]  }
 0xec9   :  { %4178 = vmatpush1.bf16.msra.mxu1 %v6465_v30  ;;  %v7475_v30 = vld [vmem:[%s9914_s5 + $0x54] ss:$168 sps:$4 sm:$0xff]  }
 0xeca   :  { %4179 = vmatprep.subr.bf16.mxu1 %v6470_v36  ;;  %v7483_v36 = vld [vmem:[%s9914_s5 + $0x2f8] ss:$168 sps:$4 sm:$0xff]  }
 0xecd   :  { %4180 = vmatpush1.bf16.msra.mxu1 %v6469_v37  ;;  %v7481_v37 = vld [vmem:[%s9914_s5 + $0x2f4] ss:$168 sps:$4 sm:$0xff]  }
 0xece   :  { %4181 = vmatprep.subr.bf16.mxu1 %v6474_v43  ;;  %v7489_v43 = vld [vmem:[%s9914_s5 + $0x598] ss:$168 sps:$4 sm:$0xff]  }
 0xed1   :  { %4182 = vmatpush1.bf16.msra.mxu1 %v6473_v46  ;;  %v7487_v46 = vld [vmem:[%s9914_s5 + $0x594] ss:$168 sps:$4 sm:$0xff]  }
 0xed2   :  { %4183 = vmatprep.subr.bf16.mxu1 %v6478_v49  ;;  %v7495_v49 = vld [vmem:[%s9914_s5 + $0x838] ss:$168 sps:$4 sm:$0xff]  }
 0xed5   :  { %4184 = vmatpush1.bf16.msra.mxu1 %v6477_v50  ;;  %v7493_v50 = vld [vmem:[%s9914_s5 + $0x834] ss:$168 sps:$4 sm:$0xff]  }
 0xed6   :  { %4185 = vmatprep.subr.bf16.mxu1 %v6482_v32  ;;  %v3464_v32 = vld [vmem:[%s9922_s6 + $0x20] sm:$0xff] }
 0xed7   :  { %v6448_v53 = vcombine.high %v3462_v45, %v3464_v32 }
 0xed9   :  { %4186 = vmatpush1.bf16.msra.mxu1 %v6481_v52  ;;  %v7496_v52 = vld [vmem:[%s9914_s5 + $0x984] ss:$168 sps:$4 sm:$0xff]  }
 0xeda   :  { %4187 = vmatprep.subr.bf16.mxu1 %v6486_v59  ;;  %v3468_v59 = vld [vmem:[%s9922_s6 + $0x60] sm:$0xff] }
 0xedb   :  { %v6452_v25 = vcombine.high %v3466_v2, %v3468_v59 }
 0xedd   :  { %4188 = vmatpush1.bf16.msra.mxu1 %v6485_v16  ;;  %v6447_v16 = vcombine.low %v3462_v45, %v3464_v32  ;;  %v3514_v32 = vld [vmem:[%s9922_s6 + $0x340] sm:$0xff] }
 0xede   :  { %4189 = vmatprep.subr.bf16.mxu1 %v6490_v57  ;;  %v3472_v57 = vld [vmem:[%s9922_s6 + $0xa0] sm:$0xff] }
 0xedf   :  { %v6456_v34 = vcombine.high %v3470_v56, %v3472_v57 }
 0xee1   :  { %4190 = vmatpush1.bf16.msra.mxu1 %v6489_v60  ;;  %v6451_v60 = vcombine.low %v3466_v2, %v3468_v59  ;;  %v3518_v59 = vld [vmem:[%s9922_s6 + $0x380] sm:$0xff] }
 0xee2   :  { %4191 = vmatprep.subr.bf16.mxu1 %v6494_v58  ;;  %v3476_v58 = vld [vmem:[%s9922_s6 + $0xe0] sm:$0xff] }
 0xee3   :  { %v6460_v63 = vcombine.high %v3474_v61, %v3476_v58 }
 0xee5   :  { %4192 = vmatpush1.bf16.msra.mxu1 %v6493_v62  ;;  %v6455_v62 = vcombine.low %v3470_v56, %v3472_v57  ;;  %v3522_v57 = vld [vmem:[%s9922_s6 + $0x3c0] sm:$0xff] }
 0xee6   :  { %4193 = vmatprep.subr.bf16.mxu1 %v6498_v3  ;;  %v6459_v3 = vcombine.low %v3474_v61, %v3476_v58  ;;  %v3525_v58 = vld [vmem:[%s9922_s6 + $0x3e8] sm:$0xff] }
 0xee9   :  { %4194 = vmatpush1.bf16.msra.mxu1 %v6497_v4 }
 0xeea   :  { %4195 = vmatprep.subr.bf16.mxu1 %v6502_v13 }
 0xeed   :  { %4196 = vmatpush1.bf16.msra.mxu1 %v6501_v14  ;;  %v6468_v14 = vcombine.high %v3482_v8, %v3484_v12 }
 0xeee   :  { %4197 = vmatprep.subr.bf16.mxu1 %v6506_v35  ;;  %v6467_v35 = vcombine.low %v3482_v8, %v3484_v12 }
 0xef1   :  { %4198 = vmatpush1.bf16.msra.mxu1 %v6505_v41  ;;  %v6472_v41 = vcombine.high %v3486_v15, %v3488_v17 }
 0xf6b   :  { %v3392_v18 = vpop.f32.mrb[52].mxu1 }
 0xf6c   :  { %v3401_v19 = vpack.c.bf16 %v3392_v18, %v3392_v18  ;;  %v3394_v20 = vpop.f32.mrb[53].mxu1  ;;  %v3490_v18 = vld [vmem:[%s9922_s6 + $0x1c0] sm:$0xff] }
 0xf6d   :  { %v3402_v21 = vpack.c.bf16 %v3394_v20, %v3394_v20  ;;  %v3396_v22 = vpop.f32.mrb[54].mxu1  ;;  %v6471_v20 = vcombine.low %v3486_v15, %v3488_v17  ;;  %v7501_v15 = vld [vmem:[%s9914_s5 + $0x68] ss:$168 sps:$4 sm:$0xff]   ;;  %v7499_v17 = vld [vmem:[%s9914_s5 + $0x64] ss:$168 sps:$4 sm:$0xff]  }
 0xf6e   :  { %v3414_v26 = vsel %vm3412_vm0, %v3401_v19, 0  ;;  %v3397_v28 = vpop.f32.mrb[55].mxu1  ;;  %v3492_v19 = vld [vmem:[%s9922_s6 + $0x1e0] sm:$0xff] }
 0xf6f   :  { %6413 = vmatprep.subr.msk.bf16.mxu0 %vm3412_vm0, %v3402_v21  ;;  %v6476_v21 = vcombine.high %v3490_v18, %v3492_v19  ;;  %v3494_v22 = vld [vmem:[%s9922_s6 + $0x200] sm:$0xff] }
 0xf70   :  { %3420 = vmatpush1.bf16.msra.mxu0 %v3414_v26  ;;  %v6475_v26 = vcombine.low %v3490_v18, %v3492_v19  ;;  %v7503_v18 = vld [vmem:[%s9914_s5 + $0x1b4] ss:$168 sps:$4 sm:$0xff]  }
 0xf71   :  { %3720 = vmatprep.subr.bf16.mxu0 %v7477_v23  ;;  %v3496_v23 = vld [vmem:[%s9922_s6 + $0x220] sm:$0xff] }
 0xf72   :  { %v6480_v28 = vcombine.high %v3494_v22, %v3496_v23  ;;  %v7506_v19 = vld [vmem:[%s9914_s5 + $0x1bc] ss:$168 sps:$4 sm:$0xff]  }
 0xf73   :  { %6414 = vmatmul.mubr.msk.bf16.vlgmr.msra.gmra.mrb[56].mxu0 %vm3408_vm3, %v7474_v29  ;;  %v3498_v29 = vld [vmem:[%s9922_s6 + $0x240] sm:$0xff] }
 0xf74   :  { %3721 = vmatpush1.bf16.msra.mxu0 %v7475_v30  ;;  %3752 = vmatprep.mubr.bf16.mxu0 %v7765_v1  ;;  %v3500_v30 = vld [vmem:[%s9922_s6 + $0x260] sm:$0xff] }
 0xf75   :  { %3722 = vmatprep.subr.bf16.mxu0 %v7480_v31  ;;  %v6479_v31 = vcombine.low %v3494_v22, %v3496_v23  ;;  %v7510_v22 = vld [vmem:[%s9914_s5 + $0x30c] ss:$168 sps:$4 sm:$0xff]   ;;  %v7513_v23 = vld [vmem:[%s9914_s5 + $0x458] ss:$168 sps:$4 sm:$0xff]  }
 0xf78   :  { %3723 = vmatpush1.bf16.msra.mxu0 %v7478_v33  ;;  %v6484_v33 = vcombine.high %v3498_v29, %v3500_v30 }
 0xf79   :  { %3724 = vmatprep.subr.bf16.mxu0 %v7483_v36  ;;  %v3502_v36 = vld [vmem:[%s9922_s6 + $0x280] sm:$0xff] }
 0xf7c   :  { %3725 = vmatpush1.bf16.msra.mxu0 %v7481_v37  ;;  %v3504_v37 = vld [vmem:[%s9922_s6 + $0x2a0] sm:$0xff] }
 0xf7d   :  { %3726 = vmatprep.subr.bf16.mxu0 %v7486_v40  ;;  %v6483_v40 = vcombine.low %v3498_v29, %v3500_v30  ;;  %v7517_v29 = vld [vmem:[%s9914_s5 + $0x5a8] ss:$168 sps:$4 sm:$0xff]   ;;  %v7515_v30 = vld [vmem:[%s9914_s5 + $0x5a4] ss:$168 sps:$4 sm:$0xff]  }
 0xf80   :  { %3727 = vmatpush1.bf16.msra.mxu0 %v7484_v42  ;;  %v6488_v42 = vcombine.high %v3502_v36, %v3504_v37 }
 0xf81   :  { %3728 = vmatprep.subr.bf16.mxu0 %v7489_v43  ;;  %v3506_v43 = vld [vmem:[%s9922_s6 + $0x2c0] sm:$0xff] }
 0xf84   :  { %3729 = vmatpush1.bf16.msra.mxu0 %v7487_v46  ;;  %v3508_v46 = vld [vmem:[%s9922_s6 + $0x2e0] sm:$0xff] }
 0xf85   :  { %3730 = vmatprep.subr.bf16.mxu0 %v7492_v47  ;;  %v6487_v47 = vcombine.low %v3502_v36, %v3504_v37  ;;  %v7519_v36 = vld [vmem:[%s9914_s5 + $0x6f4] ss:$168 sps:$4 sm:$0xff]  }
 0xf86   :  { %v7522_v37 = vld [vmem:[%s9914_s5 + $0x6fc] ss:$168 sps:$4 sm:$0xff]  }
 0xf88   :  { %3731 = vmatpush1.bf16.msra.mxu0 %v7490_v48  ;;  %v6492_v48 = vcombine.high %v3506_v43, %v3508_v46 }
 0xf89   :  { %3732 = vmatprep.subr.bf16.mxu0 %v7495_v49  ;;  %v3510_v49 = vld [vmem:[%s9922_s6 + $0x300] sm:$0xff] }
 0xf8c   :  { %3733 = vmatpush1.bf16.msra.mxu0 %v7493_v50  ;;  %v3512_v50 = vld [vmem:[%s9922_s6 + $0x320] sm:$0xff] }
 0xf8d   :  { %3734 = vmatprep.subr.bf16.mxu0 %v7498_v51  ;;  %v6491_v51 = vcombine.low %v3506_v43, %v3508_v46  ;;  %v6496_v45 = vcombine.high %v3510_v49, %v3512_v50  ;;  %v7526_v43 = vld [vmem:[%s9914_s5 + $0x84c] ss:$168 sps:$4 sm:$0xff]   ;;  %v7529_v46 = vld [vmem:[%s9914_s5 + $0x998] ss:$168 sps:$4 sm:$0xff]  }
 0xf90   :  { %3735 = vmatpush1.bf16.msra.mxu0 %v7496_v52  ;;  %v3516_v52 = vld [vmem:[%s9922_s6 + $0x360] sm:$0xff] }
 0xf91   :  { %4126 = vmatprep.subr.bf16.mxu0 %v6448_v53  ;;  %v6495_v53 = vcombine.low %v3510_v49, %v3512_v50  ;;  %v6500_v2 = vcombine.high %v3514_v32, %v3516_v52 }
 0xf93   :  { %3753 = vmatmul.mubr.bf16.vlgmr.msra.gmra.mrb[60].mxu0 %v8357_v11  ;;  %v3478_v11 = vld [vmem:[%s9922_s6 + $0x100] sm:$0xff] }
 0xf94   :  { %4127 = vmatpush1.bf16.msra.mxu0 %v6447_v16  ;;  %v6464_v4 = vcombine.high %v3478_v11, %v3480_v0  ;;  %v6463_v13 = vcombine.low %v3478_v11, %v3480_v0  ;;  %v3520_v16 = vld [vmem:[%s9922_s6 + $0x3a0] sm:$0xff] }
 0xf95   :  { %4128 = vmatprep.subr.bf16.mxu0 %v6452_v25  ;;  %v6499_v25 = vcombine.low %v3514_v32, %v3516_v52  ;;  %v6504_v56 = vcombine.high %v3518_v59, %v3520_v16  ;;  %v6503_v61 = vcombine.low %v3518_v59, %v3520_v16 }
 0xf98   :  { %4129 = vmatpush1.bf16.msra.mxu0 %v6451_v60  ;;  %v3524_v60 = vld [vmem:[%s9922_s6 + $0x3e0] sm:$0xff] }
 0xf99   :  { %4130 = vmatprep.subr.bf16.mxu0 %v6456_v34  ;;  %v3523_v34 = vld [vmem:[%s9922_s6 + $0x3c8] sm:$0xff]  ;;  %v6507_v0 = vcombine.low %v3522_v57, %v3524_v60 }
 0xf9a   :  { %v6510_v11 = vcombine.high %v3523_v34, %v3525_v58 }
 0xf9c   :  { %4131 = vmatpush1.bf16.msra.mxu0 %v6455_v62  ;;  %v6508_v62 = vcombine.high %v3522_v57, %v3524_v60  ;;  %4199 = vmatprep.subr.bf16.mxu1 %v6510_v11 }
 0xf9d   :  { %4132 = vmatprep.subr.bf16.mxu0 %v6460_v63  ;;  %v6509_v63 = vcombine.low %v3523_v34, %v3525_v58 }
 0xf9f   :  { %4200 = vmatpush1.bf16.msra.mxu1 %v6509_v63 }
 0xfa0   :  { %4133 = vmatpush1.bf16.msra.mxu0 %v6459_v3  ;;  %7013 = vmatprep.subr.bf16.mxu1 %v7766_v5 }
 0xfa1   :  { %4134 = vmatprep.subr.bf16.mxu0 %v6464_v4 }
 0xfa4   :  { %4135 = vmatpush1.bf16.msra.mxu0 %v6463_v13 }
 0xfa5   :  { %4136 = vmatprep.subr.bf16.mxu0 %v6468_v14 }
 0xfa8   :  { %4137 = vmatpush1.bf16.msra.mxu0 %v6467_v35  ;;  %v7502_v35 = vld [vmem:[%s9914_s5 + $0x6c] ss:$168 sps:$4 sm:$0xff]  }
 0xfa9   :  { %4138 = vmatprep.subr.bf16.mxu0 %v6472_v41  ;;  %v7505_v41 = vld [vmem:[%s9914_s5 + $0x1b8] ss:$168 sps:$4 sm:$0xff]  }
 0xfac   :  { %4139 = vmatpush1.bf16.msra.mxu0 %v6471_v20  ;;  %v7509_v20 = vld [vmem:[%s9914_s5 + $0x308] ss:$168 sps:$4 sm:$0xff]  }
 0xfad   :  { %4140 = vmatprep.subr.bf16.mxu0 %v6476_v21  ;;  %v7507_v21 = vld [vmem:[%s9914_s5 + $0x304] ss:$168 sps:$4 sm:$0xff]  }
 0xfb0   :  { %4141 = vmatpush1.bf16.msra.mxu0 %v6475_v26  ;;  %v7511_v26 = vld [vmem:[%s9914_s5 + $0x454] ss:$168 sps:$4 sm:$0xff]  }
 0xfb1   :  { %4142 = vmatprep.subr.bf16.mxu0 %v6480_v28  ;;  %v7514_v28 = vld [vmem:[%s9914_s5 + $0x45c] ss:$168 sps:$4 sm:$0xff]  }
 0xfb4   :  { %4143 = vmatpush1.bf16.msra.mxu0 %v6479_v31  ;;  %v7518_v31 = vld [vmem:[%s9914_s5 + $0x5ac] ss:$168 sps:$4 sm:$0xff]  }
 0xfb5   :  { %4144 = vmatprep.subr.bf16.mxu0 %v6484_v33  ;;  %v7521_v33 = vld [vmem:[%s9914_s5 + $0x6f8] ss:$168 sps:$4 sm:$0xff]  }
 0xfb8   :  { %4145 = vmatpush1.bf16.msra.mxu0 %v6483_v40  ;;  %v7525_v40 = vld [vmem:[%s9914_s5 + $0x848] ss:$168 sps:$4 sm:$0xff]  }
 0xfb9   :  { %4146 = vmatprep.subr.bf16.mxu0 %v6488_v42  ;;  %v7523_v42 = vld [vmem:[%s9914_s5 + $0x844] ss:$168 sps:$4 sm:$0xff]  }
 0xfbc   :  { %4147 = vmatpush1.bf16.msra.mxu0 %v6487_v47  ;;  %v7527_v47 = vld [vmem:[%s9914_s5 + $0x994] ss:$168 sps:$4 sm:$0xff]  }
 0xfbd   :  { %4148 = vmatprep.subr.bf16.mxu0 %v6492_v48  ;;  %v7530_v48 = vld [vmem:[%s9914_s5 + $0x99c] ss:$168 sps:$4 sm:$0xff]  }
 0xfc0   :  { %4149 = vmatpush1.bf16.msra.mxu0 %v6491_v51 }
 0xfc1   :  { %4150 = vmatprep.subr.bf16.mxu0 %v6496_v45 }
 0xfc4   :  { %4151 = vmatpush1.bf16.msra.mxu0 %v6495_v53 }
 0xfc5   :  { %4152 = vmatprep.subr.bf16.mxu0 %v6500_v2 }
 0xfc8   :  { %4153 = vmatpush1.bf16.msra.mxu0 %v6499_v25 }
 0xfc9   :  { %4154 = vmatprep.subr.bf16.mxu0 %v6504_v56 }
 0xfcc   :  { %4155 = vmatpush1.bf16.msra.mxu0 %v6503_v61 }
 0xfcd   :  { %4156 = vmatprep.subr.bf16.mxu0 %v6508_v62 }
 0xfd0   :  { %4157 = vmatpush1.bf16.msra.mxu0 %v6507_v0 }
 0xfd1   :  { %4414 = vmatprep.subr.bf16.mxu0 %v7501_v15 }
0x1046   :  { %v3453_v3 = vpop.f32.mrb[56].mxu0 }
0x1047   :  { %v3455_v4 = vpop.f32.mrb[57].mxu0 }
0x1048   :  { %v3457_v8 = vpop.f32.mrb[58].mxu0 }
0x1049   :  { %v3526_v12 = vpack.c.bf16 %v3457_v8, %v3453_v3  ;;  %v3459_v13 = vpop.f32.mrb[59].mxu0  ;;  %v6511_v3 = vld [vmem:[%s9915_s7 + $0xd] ss:$0 sm:$0xff] }
0x104a   :  { %v3527_v14 = vpack.c.bf16 %v3459_v13, %v3455_v4 }
0x104c   :  { %4158 = vmatprep.mubr.bf16.mxu0 %v3527_v14  ;;  %4201 = vmatprep.mubr.bf16.mxu1 %v3527_v14 }
0x104d   :  { %4159 = vmatmul.mubr.bf16.vlgmr.msra.gmra.mrb[60].mxu0 %v3526_v12  ;;  %4202 = vmatmul.mubr.bf16.vlgmr.msra.gmra.mrb[56].mxu1 %v3526_v12 }
0x104e   :  { %4446 = vmatprep.mubr.bf16.mxu0 %v7765_v1  ;;  %7029 = vmatprep.mubr.msk.bf16.mxu1 %vm7768_vm7, %v7766_v5 }
0x104f   :  { %4415 = vmatpush1.bf16.msra.mxu0 %v7499_v17  ;;  %7014 = vmatpush3.bf16.msra.mxu1 %v7502_v35 }
0x1050   :  { %7015 = vmatprep.subr.bf16.mxu1 %v7766_v5  ;;  %4416 = vmatprep.subr.bf16.mxu0 %v7505_v41 }
0x1053   :  { %4417 = vmatpush1.bf16.msra.mxu0 %v7503_v18  ;;  %7016 = vmatpush3.bf16.msra.mxu1 %v7506_v19 }
0x1054   :  { %7017 = vmatprep.subr.bf16.mxu1 %v7766_v5  ;;  %4418 = vmatprep.subr.bf16.mxu0 %v7509_v20  ;;  %v186_v20 = vld [vmem:[%s9918_s2 + $0x8] sm:$0xff] }
0x1057   :  { %4419 = vmatpush1.bf16.msra.mxu0 %v7507_v21  ;;  %7018 = vmatpush3.bf16.msra.mxu1 %v7510_v22  ;;  %v188_v22 = vld [vmem:[%s9918_s2 + $0x18] sm:$0xff] }
0x1058   :  { %7019 = vmatprep.subr.bf16.mxu1 %v7766_v5  ;;  %4420 = vmatprep.subr.bf16.mxu0 %v7513_v23 }
0x105b   :  { %4421 = vmatpush1.bf16.msra.mxu0 %v7511_v26  ;;  %7020 = vmatpush3.bf16.msra.mxu1 %v7514_v28 }
0x105c   :  { %7021 = vmatprep.subr.bf16.mxu1 %v7766_v5  ;;  %4422 = vmatprep.subr.bf16.mxu0 %v7517_v29 }
0x105f   :  { %4423 = vmatpush1.bf16.msra.mxu0 %v7515_v30  ;;  %7022 = vmatpush3.bf16.msra.mxu1 %v7518_v31  ;;  %v7533_v31 = vld [vmem:[%s9914_s5 + $0xa0] ss:$168 sps:$4 sm:$0xff]  }
0x1060   :  { %7023 = vmatprep.subr.bf16.mxu1 %v7766_v5  ;;  %4424 = vmatprep.subr.bf16.mxu0 %v7521_v33  ;;  %v7531_v33 = vld [vmem:[%s9914_s5 + $0x9c] ss:$168 sps:$4 sm:$0xff]  }
0x1063   :  { %4425 = vmatpush1.bf16.msra.mxu0 %v7519_v36  ;;  %7024 = vmatpush3.bf16.msra.mxu1 %v7522_v37  ;;  %v7536_v36 = vld [vmem:[%s9914_s5 + $0x1f0] ss:$168 sps:$4 sm:$0xff]   ;;  %v7534_v37 = vld [vmem:[%s9914_s5 + $0x1ec] ss:$168 sps:$4 sm:$0xff]  }
0x1064   :  { %7025 = vmatprep.subr.bf16.mxu1 %v7766_v5  ;;  %4426 = vmatprep.subr.bf16.mxu0 %v7525_v40  ;;  %v7539_v40 = vld [vmem:[%s9914_s5 + $0x340] ss:$168 sps:$4 sm:$0xff]  }
0x1067   :  { %4427 = vmatpush1.bf16.msra.mxu0 %v7523_v42  ;;  %7026 = vmatpush3.bf16.msra.mxu1 %v7526_v43  ;;  %v7537_v42 = vld [vmem:[%s9914_s5 + $0x33c] ss:$168 sps:$4 sm:$0xff]   ;;  %v7542_v43 = vld [vmem:[%s9914_s5 + $0x490] ss:$168 sps:$4 sm:$0xff]  }
0x1068   :  { %7027 = vmatprep.subr.bf16.mxu1 %v7766_v5  ;;  %4428 = vmatprep.subr.bf16.mxu0 %v7529_v46  ;;  %v7540_v46 = vld [vmem:[%s9914_s5 + $0x48c] ss:$168 sps:$4 sm:$0xff]  }
0x106b   :  { %4429 = vmatpush1.bf16.msra.mxu0 %v7527_v47  ;;  %7028 = vmatpush3.bf16.msra.mxu1 %v7530_v48  ;;  %v7545_v47 = vld [vmem:[%s9914_s5 + $0x5e0] ss:$168 sps:$4 sm:$0xff]   ;;  %v7543_v48 = vld [vmem:[%s9914_s5 + $0x5dc] ss:$168 sps:$4 sm:$0xff]  }
0x106c   :  { %4645 = vmatprep.subr.bf16.mxu0 %v7533_v31  ;;  %v6541_v31 = vld [vmem:[%s9915_s7 + $0xf] ss:$0 sm:$0xff] }
0x1120   :  { %v4160_v49 = vpop.f32.mrb[60].mxu0  ;;  %v4203_v50 = vpop.f32.mrb[56].mxu1 }
0x1121   :  { %v4162_v51 = vpop.f32.mrb[61].mxu0  ;;  %v9326_v45 = vpop.f32.mrb[57].mxu1  ;;  %v4213_v53 = vrot.slane %v4160_v49, 7  ;;  %v4219_v5 = vrot.slane %v4203_v50, 1  ;;  %v7548_v49 = vld [vmem:[%s9914_s5 + $0x730] ss:$168 sps:$4 sm:$0xff]  }
0x1122   :  { %v4164_v32 = vpop.f32.mrb[62].mxu0  ;;  %v4207_v52 = vpop.f32.mrb[58].mxu1  ;;  %v7546_v50 = vld [vmem:[%s9914_s5 + $0x72c] ss:$168 sps:$4 sm:$0xff]  }
0x1123   :  { %v4214_v2 = vrot.slane %v4164_v32, 7  ;;  %v4220_v59 = vrot.slane %v4207_v52, 1  ;;  %v4166_v16 = vpop.f32.mrb[63].mxu0  ;;  %v9328_v25 = vpop.f32.mrb[59].mxu1  ;;  %v7549_v32 = vld [vmem:[%s9914_s5 + $0x87c] ss:$168 sps:$4 sm:$0xff]  }
0x1124   :  { %v7554_v52 = vld [vmem:[%s9914_s5 + $0x9d0] ss:$168 sps:$4 sm:$0xff]  }
0x1125   :  { %v4216_v56 = vsel %vm416_vm1, %v4214_v2, %v4213_v53  ;;  %v4221_v57 = vsel %vm429_vm2, %v4219_v5, %v4220_v59  ;;  %v4222_v60 = vsel %vm429_vm2, %v4220_v59, %v4219_v5  ;;  %v4215_v34 = vsel %vm416_vm1, %v4213_v53, %v4214_v2  ;;  %v7552_v53 = vld [vmem:[%s9914_s5 + $0x9cc] ss:$168 sps:$4 sm:$0xff]   ;;  %v7557_v5 = vld [vmem:[%s9914_s5 + $0x7c] ss:$168 sps:$4 sm:$0xff]  }
0x1126   :  { %v4217_v61 = vmul.f32 %v8266_v24, %v4216_v56  ;;  %v4218_v58 = vmul.f32 %v8269_v27, %v4215_v34  ;;  %v4223_v63 = vmul.f32 %v8280_v38, %v4221_v57  ;;  %v4224_v11 = vmul.f32 %v8283_v39, %v4222_v60 }
0x1128   :  { %v4225_v62 = vadd.f32 %v4217_v61, %v4162_v51  ;;  %v4226_v0 = vadd.f32 %v4218_v58, %v4166_v16  ;;  %v7551_v51 = vld [vmem:[%s9914_s5 + $0x880] ss:$168 sps:$4 sm:$0xff]  }
0x112a   :  { %v4227_v4 = vadd.f32 %v4225_v62, %v4223_v63  ;;  %v4228_v8 = vadd.f32 %v4226_v0, %v4224_v11 }
0x112c   :  { %v4235_v12 = vadd.f32 %v6511_v3, %v4227_v4  ;;  %v4236_v13 = vadd.f32 %v6511_v3, %v4228_v8 }
0x112e   :  { %v6512_v14 = vmul.f32 -1.442695, %v4235_v12  ;;  %v6513_v15 = vmul.f32 -1.442695, %v4236_v13 }
0x1130   :  { %7717 = vpow2.f32 %v6512_v14 }
0x1131   :  { %7719 = vpow2.f32 %v6513_v15 }
0x113a   :  { %v7718_v17 = vpop.eup %7717 }
0x113b   :  { %v7720_v35 = vpop.eup %7719  ;;  %v4243_v41 = vadd.f32 1.0, %v7718_v17 }
0x113c   :  { %v4244_v18 = vadd.f32 1.0, %v7720_v35 }
0x113d   :  { %7721 = vrcp.f32 %v4243_v41  ;;  %v6538_v41 = vld [vmem:[%s9915_s7 + $0xe] ss:$0 sm:$0xff] }
0x113e   :  { %7723 = vrcp.f32 %v4244_v18 }
0x1147   :  { %v7722_v19 = vpop.eup %7721 }
0x1148   :  { %v7724_v21 = vpop.eup %7723  ;;  %v4249_v23 = vmul.f32 %v7722_v19, %v4235_v12 }
0x1149   :  { %v4250_v26 = vmul.f32 %v7724_v21, %v4236_v13 }
0x114a   :  { %v4251_v28 = vadd.f32 %v4249_v23, %v186_v20 }
0x114b   :  { %v4252_v29 = vadd.f32 %v4250_v26, %v188_v22 }
0x114d   :  { %v4285_v30 = vpack.c.bf16 %v4252_v29, %v4251_v28 }
0x114f   :  { %4447 = vmatmul.mubr.bf16.vlgmr.msra.gmra.mrb[64].mxu0 %v4285_v30  ;;  %7030 = vmatmul.mubr.bf16.vlgmr.msra.gmra.mrb[60].mxu1 %v4285_v30 }
0x1150   :  { %4677 = vmatprep.mubr.bf16.mxu0 %v7765_v1  ;;  %4742 = vmatprep.mubr.bf16.mxu1 %v7765_v1 }
0x1151   :  { %4646 = vmatpush1.bf16.msra.mxu0 %v7531_v33 }
0x1152   :  { %4647 = vmatprep.subr.bf16.mxu0 %v7536_v36 }
0x1155   :  { %4648 = vmatpush1.bf16.msra.mxu0 %v7534_v37 }
0x1156   :  { %4649 = vmatprep.subr.bf16.mxu0 %v7539_v40 }
0x1159   :  { %4650 = vmatpush1.bf16.msra.mxu0 %v7537_v42  ;;  %v7555_v42 = vld [vmem:[%s9914_s5 + $0x78] ss:$168 sps:$4 sm:$0xff]  }
0x115a   :  { %4651 = vmatprep.subr.bf16.mxu0 %v7542_v43 }
0x115d   :  { %4652 = vmatpush1.bf16.msra.mxu0 %v7540_v46  ;;  %v7560_v46 = vld [vmem:[%s9914_s5 + $0x1cc] ss:$168 sps:$4 sm:$0xff]  }
0x115e   :  { %4653 = vmatprep.subr.bf16.mxu0 %v7545_v47  ;;  %v7558_v47 = vld [vmem:[%s9914_s5 + $0x1c8] ss:$168 sps:$4 sm:$0xff]  }
0x1161   :  { %4654 = vmatpush1.bf16.msra.mxu0 %v7543_v48  ;;  %v7566_v48 = vld [vmem:[%s9914_s5 + $0x46c] ss:$168 sps:$4 sm:$0xff]  }
0x1162   :  { %4655 = vmatprep.subr.bf16.mxu0 %v7548_v49  ;;  %v7564_v49 = vld [vmem:[%s9914_s5 + $0x468] ss:$168 sps:$4 sm:$0xff]  }
0x1165   :  { %4656 = vmatpush1.bf16.msra.mxu0 %v7546_v50  ;;  %v7569_v50 = vld [vmem:[%s9914_s5 + $0x5bc] ss:$168 sps:$4 sm:$0xff]  }
0x1166   :  { %4657 = vmatprep.subr.bf16.mxu0 %v7551_v51  ;;  %v7567_v51 = vld [vmem:[%s9914_s5 + $0x5b8] ss:$168 sps:$4 sm:$0xff]  }
0x1169   :  { %4658 = vmatpush1.bf16.msra.mxu0 %v7549_v32  ;;  %v7572_v32 = vld [vmem:[%s9914_s5 + $0x70c] ss:$168 sps:$4 sm:$0xff]  }
0x116a   :  { %4659 = vmatprep.subr.bf16.mxu0 %v7554_v52  ;;  %v7570_v52 = vld [vmem:[%s9914_s5 + $0x708] ss:$168 sps:$4 sm:$0xff]  }
0x116d   :  { %4660 = vmatpush1.bf16.msra.mxu0 %v7552_v53  ;;  %v7575_v53 = vld [vmem:[%s9914_s5 + $0x85c] ss:$168 sps:$4 sm:$0xff]  }
0x116e   :  { %5076 = vmatprep.subr.bf16.mxu0 %v7557_v5  ;;  %v7573_v5 = vld [vmem:[%s9914_s5 + $0x858] ss:$168 sps:$4 sm:$0xff]  }
0x1222   :  { %v4448_v2 = vpop.f32.mrb[64].mxu0  ;;  %v4491_v59 = vpop.f32.mrb[60].mxu1 }
0x1223   :  { %v4450_v16 = vpop.f32.mrb[65].mxu0  ;;  %v7031_v56 = vpop.f32.mrb[61].mxu1  ;;  %v4499_v34 = vrot.slane %v4448_v2, 7  ;;  %v4505_v61 = vrot.slane %v4491_v59, 1  ;;  %v7578_v2 = vld [vmem:[%s9914_s5 + $0x9ac] ss:$168 sps:$4 sm:$0xff]  }
0x1224   :  { %v4452_v57 = vpop.f32.mrb[66].mxu0  ;;  %v4494_v60 = vpop.f32.mrb[62].mxu1  ;;  %v7576_v59 = vld [vmem:[%s9914_s5 + $0x9a8] ss:$168 sps:$4 sm:$0xff]   ;;  %v4766_v56 = vld [vmem:[%s9922_s6 + $0x38] sm:$0xff] }
0x1225   :  { %v4500_v58 = vrot.slane %v4452_v57, 7  ;;  %v4506_v62 = vrot.slane %v4494_v60, 1  ;;  %v4454_v63 = vpop.f32.mrb[67].mxu0  ;;  %v7032_v11 = vpop.f32.mrb[63].mxu1 }
0x1227   :  { %v4502_v0 = vsel %vm416_vm1, %v4500_v58, %v4499_v34  ;;  %v4507_v3 = vsel %vm429_vm2, %v4505_v61, %v4506_v62  ;;  %v4508_v4 = vsel %vm429_vm2, %v4506_v62, %v4505_v61  ;;  %v4501_v8 = vsel %vm416_vm1, %v4499_v34, %v4500_v58  ;;  %v4768_v34 = vld [vmem:[%s9922_s6 + $0x58] sm:$0xff] }
0x1228   :  { %v4503_v12 = vmul.f32 %v8266_v24, %v4502_v0  ;;  %v4504_v13 = vmul.f32 %v8269_v27, %v4501_v8  ;;  %v4509_v15 = vmul.f32 %v8280_v38, %v4507_v3  ;;  %v4510_v17 = vmul.f32 %v8283_v39, %v4508_v4  ;;  %v4770_v61 = vld [vmem:[%s9922_s6 + $0x78] sm:$0xff] }
0x1229   :  { %v6601_v58 = vcombine.high %v4768_v34, %v4770_v61  ;;  %v4772_v62 = vld [vmem:[%s9922_s6 + $0x98] sm:$0xff]  ;;  %v6600_v11 = vcombine.low %v4768_v34, %v4770_v61 }
0x122a   :  { %v4511_v14 = vadd.f32 %v4503_v12, %v4450_v16  ;;  %v4512_v35 = vadd.f32 %v4504_v13, %v4454_v63  ;;  %v4764_v16 = vld [vmem:[%s9922_s6 + $0x18] sm:$0xff] }
0x122b   :  { %v6596_v57 = vcombine.low %v4764_v16, %v4766_v56  ;;  %v6597_v60 = vcombine.high %v4764_v16, %v4766_v56  ;;  %v4774_v63 = vld [vmem:[%s9922_s6 + $0xb8] sm:$0xff] }
0x122c   :  { %v4513_v18 = vadd.f32 %v4511_v14, %v4509_v15  ;;  %v4514_v19 = vadd.f32 %v4512_v35, %v4510_v17  ;;  %v6605_v0 = vcombine.high %v4772_v62, %v4774_v63  ;;  %v4776_v3 = vld [vmem:[%s9922_s6 + $0xd8] sm:$0xff]  ;;  %v6604_v8 = vcombine.low %v4772_v62, %v4774_v63 }
0x122d   :  { %v4778_v4 = vld [vmem:[%s9922_s6 + $0xf8] sm:$0xff] }
0x122e   :  { %v4521_v20 = vadd.f32 %v6538_v41, %v4513_v18  ;;  %v4522_v21 = vadd.f32 %v6538_v41, %v4514_v19  ;;  %v6609_v12 = vcombine.high %v4776_v3, %v4778_v4  ;;  %v4780_v13 = vld [vmem:[%s9922_s6 + $0x118] sm:$0xff]  ;;  %v6608_v15 = vcombine.low %v4776_v3, %v4778_v4  ;;  %v7579_v3 = vld [vmem:[%s9923_s11] sm:$0xff]  }
0x122f   :  { %v4782_v14 = vld [vmem:[%s9922_s6 + $0x138] sm:$0xff] }
0x1230   :  { %v6539_v22 = vmul.f32 -1.442695, %v4521_v20  ;;  %v6540_v23 = vmul.f32 -1.442695, %v4522_v21  ;;  %v6613_v17 = vcombine.high %v4780_v13, %v4782_v14  ;;  %v4784_v35 = vld [vmem:[%s9922_s6 + $0x158] sm:$0xff]  ;;  %v6612_v18 = vcombine.low %v4780_v13, %v4782_v14  ;;  %v7586_v14 = vld [vmem:[%s9923_s11 + $0x8] sm:$0xff]  }
0x1231   :  { %v4786_v41 = vld [vmem:[%s9922_s6 + $0x178] sm:$0xff] }
0x1232   :  { %7725 = vpow2.f32 %v6539_v22  ;;  %v6617_v19 = vcombine.high %v4784_v35, %v4786_v41  ;;  %v6616_v22 = vcombine.low %v4784_v35, %v4786_v41  ;;  %v4822_v16 = vld [vmem:[%s9922_s6 + $0x3b8] sm:$0xff]  ;;  %v7590_v35 = vld [vmem:[%s9914_s5 + $0x460] ss:$168 sps:$4 sm:$0xff]  }
0x1233   :  { %7727 = vpow2.f32 %v6540_v23  ;;  %v7580_v4 = vld [vmem:[%s9914_s5 + $0x70] ss:$168 sps:$4 sm:$0xff]   ;;  %v7589_v13 = vld [vmem:[%s9914_s5 + $0x314] ss:$168 sps:$4 sm:$0xff]  }
0x1234   :  { %v7595_v41 = vld [vmem:[%s9914_s5 + $0x5b4] ss:$168 sps:$4 sm:$0xff]  }
0x123c   :  { %v7726_v24 = vpop.eup %7725 }
0x123d   :  { %v7728_v27 = vpop.eup %7727  ;;  %v4529_v26 = vadd.f32 1.0, %v7726_v24  ;;  %v4792_v24 = vld [vmem:[%s9922_s6 + $0x1d8] sm:$0xff] }
0x123e   :  { %v4530_v28 = vadd.f32 1.0, %v7728_v27  ;;  %v4794_v27 = vld [vmem:[%s9922_s6 + $0x1f8] sm:$0xff] }
0x123f   :  { %7729 = vrcp.f32 %v4529_v26 }
0x1240   :  { %7731 = vrcp.f32 %v4530_v28  ;;  %v6625_v28 = vcombine.high %v4792_v24, %v4794_v27 }
0x1249   :  { %v7730_v38 = vpop.eup %7729 }
0x124a   :  { %v7732_v39 = vpop.eup %7731  ;;  %v4535_v29 = vmul.f32 %v7730_v38, %v4521_v20  ;;  %v4788_v20 = vld [vmem:[%s9922_s6 + $0x198] sm:$0xff] }
0x124b   :  { %v4536_v30 = vmul.f32 %v7732_v39, %v4522_v21  ;;  %v4790_v21 = vld [vmem:[%s9922_s6 + $0x1b8] sm:$0xff] }
0x124c   :  { %v4537_v33 = vadd.f32 %v4535_v29, %v9326_v45  ;;  %v7563_v45 = vld [vmem:[%s9914_s5 + $0x31c] ss:$168 sps:$4 sm:$0xff]   ;;  %v6621_v23 = vcombine.high %v4788_v20, %v4790_v21  ;;  %v6620_v26 = vcombine.low %v4788_v20, %v4790_v21  ;;  %v6624_v29 = vcombine.low %v4792_v24, %v4794_v27  ;;  %v7596_v20 = vld [vmem:[%s9914_s5 + $0x700] ss:$168 sps:$4 sm:$0xff]   ;;  %v4763_v24 = vld [vmem:[%s9922_s6 + $0x10] sm:$0xff] }
0x124d   :  { %v4538_v36 = vadd.f32 %v4536_v30, %v9328_v25  ;;  %v7561_v25 = vld [vmem:[%s9914_s5 + $0x318] ss:$168 sps:$4 sm:$0xff]   ;;  %v7601_v21 = vld [vmem:[%s9914_s5 + $0x854] ss:$168 sps:$4 sm:$0xff]  }
0x124e   :  { %v4546_v37 = vadd.f32 %v6541_v31, %v4537_v33  ;;  %v4796_v38 = vld [vmem:[%s9922_s6 + $0x218] sm:$0xff]  ;;  %v4765_v27 = vld [vmem:[%s9922_s6 + $0x30] sm:$0xff] }
0x124f   :  { %v4547_v40 = vadd.f32 %v6541_v31, %v4538_v36  ;;  %v4798_v39 = vld [vmem:[%s9922_s6 + $0x238] sm:$0xff] }
0x1250   :  { %v6629_v30 = vcombine.high %v4796_v38, %v4798_v39  ;;  %v4800_v31 = vld [vmem:[%s9922_s6 + $0x258] sm:$0xff]  ;;  %v6628_v36 = vcombine.low %v4796_v38, %v4798_v39  ;;  %v4767_v38 = vld [vmem:[%s9922_s6 + $0x50] sm:$0xff] }
0x1251   :  { %v4564_v43 = vpack.c.bf16 %v4547_v40, %v4546_v37  ;;  %v4802_v33 = vld [vmem:[%s9922_s6 + $0x278] sm:$0xff]  ;;  %v4769_v39 = vld [vmem:[%s9922_s6 + $0x70] sm:$0xff] }
0x1252   :  { %v6633_v37 = vcombine.high %v4800_v31, %v4802_v33  ;;  %v4804_v40 = vld [vmem:[%s9922_s6 + $0x298] sm:$0xff] }
0x1253   :  { %4678 = vmatmul.mubr.bf16.vlgmr.msra.gmra.mrb[68].mxu0 %v4564_v43  ;;  %v6632_v43 = vcombine.low %v4800_v31, %v4802_v33  ;;  %v4771_v31 = vld [vmem:[%s9922_s6 + $0x90] sm:$0xff] }
0x1254   :  { %5077 = vmatpush1.bf16.msra.mxu0 %v7555_v42  ;;  %5108 = vmatprep.mubr.bf16.mxu0 %v7765_v1  ;;  %v4806_v42 = vld [vmem:[%s9922_s6 + $0x2b8] sm:$0xff]  ;;  %v4773_v33 = vld [vmem:[%s9922_s6 + $0xb0] sm:$0xff] }
0x1255   :  { %5078 = vmatprep.subr.bf16.mxu0 %v7560_v46  ;;  %v6637_v46 = vcombine.high %v4804_v40, %v4806_v42 }
0x1258   :  { %5079 = vmatpush1.bf16.msra.mxu0 %v7558_v47  ;;  %v4808_v47 = vld [vmem:[%s9922_s6 + $0x2d8] sm:$0xff] }
0x1259   :  { %5080 = vmatprep.subr.bf16.mxu0 %v7563_v45  ;;  %v4810_v45 = vld [vmem:[%s9922_s6 + $0x2f8] sm:$0xff] }
0x125c   :  { %5081 = vmatpush1.bf16.msra.mxu0 %v7561_v25  ;;  %v6636_v25 = vcombine.low %v4804_v40, %v4806_v42  ;;  %v4775_v40 = vld [vmem:[%s9922_s6 + $0xd0] sm:$0xff] }
0x125d   :  { %5082 = vmatprep.subr.bf16.mxu0 %v7566_v48  ;;  %v6641_v48 = vcombine.high %v4808_v47, %v4810_v45  ;;  %v4777_v42 = vld [vmem:[%s9922_s6 + $0xf0] sm:$0xff] }
0x1260   :  { %5083 = vmatpush1.bf16.msra.mxu0 %v7564_v49  ;;  %v4812_v49 = vld [vmem:[%s9922_s6 + $0x318] sm:$0xff] }
0x1261   :  { %5084 = vmatprep.subr.bf16.mxu0 %v7569_v50  ;;  %v4814_v50 = vld [vmem:[%s9922_s6 + $0x338] sm:$0xff] }
0x1264   :  { %5085 = vmatpush1.bf16.msra.mxu0 %v7567_v51  ;;  %v6640_v51 = vcombine.low %v4808_v47, %v4810_v45  ;;  %v4781_v47 = vld [vmem:[%s9922_s6 + $0x130] sm:$0xff]  ;;  %v6606_v45 = vcombine.low %v4775_v40, %v4777_v42 }
0x1265   :  { %5086 = vmatprep.subr.bf16.mxu0 %v7572_v32  ;;  %v6645_v32 = vcombine.high %v4812_v49, %v4814_v50 }
0x1268   :  { %5087 = vmatpush1.bf16.msra.mxu0 %v7570_v52  ;;  %v4816_v52 = vld [vmem:[%s9922_s6 + $0x358] sm:$0xff] }
0x1269   :  { %5088 = vmatprep.subr.bf16.mxu0 %v7575_v53  ;;  %v4818_v53 = vld [vmem:[%s9922_s6 + $0x378] sm:$0xff] }
0x126a   :  { %v6648_v56 = vcombine.low %v4816_v52, %v4818_v53 }
0x126c   :  { %5089 = vmatpush1.bf16.msra.mxu0 %v7573_v5  ;;  %v6644_v5 = vcombine.low %v4812_v49, %v4814_v50  ;;  %v4785_v49 = vld [vmem:[%s9922_s6 + $0x170] sm:$0xff] }
0x126d   :  { %5090 = vmatprep.subr.bf16.mxu0 %v7578_v2  ;;  %v6649_v2 = vcombine.high %v4816_v52, %v4818_v53 }
0x1270   :  { %5091 = vmatpush1.bf16.msra.mxu0 %v7576_v59  ;;  %v4820_v59 = vld [vmem:[%s9922_s6 + $0x398] sm:$0xff] }
0x1271   :  { %5502 = vmatprep.subr.bf16.mxu0 %v6597_v60  ;;  %v6652_v60 = vcombine.low %v4820_v59, %v4822_v16 }
0x1273   :  { %5109 = vmatmul.mubr.bf16.vlgmr.msra.gmra.mrb[72].mxu0 %v8106_v55 }
0x1274   :  { %5118 = vmatprep.mubr.bf16.mxu0 %v7765_v1  ;;  %5503 = vmatpush1.bf16.msra.mxu0 %v6596_v57  ;;  %v6653_v57 = vcombine.high %v4820_v59, %v4822_v16 }
0x1275   :  { %5504 = vmatprep.subr.bf16.mxu0 %v6601_v58 }
0x1278   :  { %5505 = vmatpush1.bf16.msra.mxu0 %v6600_v11 }
0x1279   :  { %5506 = vmatprep.subr.bf16.mxu0 %v6605_v0  ;;  %v7582_v0 = vld [vmem:[%s9914_s5 + $0x74] ss:$168 sps:$4 sm:$0xff]  }
0x127b   :  { %5119 = vmatmul.mubr.bf16.gmra.mrb[76].mxu0 %v8104_v54 }
0x127c   :  { %5507 = vmatpush1.bf16.msra.mxu0 %v6604_v8  ;;  %v7585_v8 = vld [vmem:[%s9914_s5 + $0x1c4] ss:$168 sps:$4 sm:$0xff]  }
0x127d   :  { %5508 = vmatprep.subr.bf16.mxu0 %v6609_v12  ;;  %v7583_v12 = vld [vmem:[%s9914_s5 + $0x1c0] ss:$168 sps:$4 sm:$0xff]  }
0x1280   :  { %5509 = vmatpush1.bf16.msra.mxu0 %v6608_v15  ;;  %v7587_v15 = vld [vmem:[%s9914_s5 + $0x310] ss:$168 sps:$4 sm:$0xff]  }
0x1281   :  { %5510 = vmatprep.subr.bf16.mxu0 %v6613_v17  ;;  %v7592_v17 = vld [vmem:[%s9914_s5 + $0x464] ss:$168 sps:$4 sm:$0xff]  }
0x1284   :  { %5511 = vmatpush1.bf16.msra.mxu0 %v6612_v18  ;;  %v7593_v18 = vld [vmem:[%s9914_s5 + $0x5b0] ss:$168 sps:$4 sm:$0xff]  }
0x1285   :  { %5512 = vmatprep.subr.bf16.mxu0 %v6617_v19  ;;  %v7598_v19 = vld [vmem:[%s9914_s5 + $0x704] ss:$168 sps:$4 sm:$0xff]  }
0x1288   :  { %5513 = vmatpush1.bf16.msra.mxu0 %v6616_v22  ;;  %v7599_v22 = vld [vmem:[%s9914_s5 + $0x850] ss:$168 sps:$4 sm:$0xff]  }
0x1289   :  { %5514 = vmatprep.subr.bf16.mxu0 %v6621_v23  ;;  %v7604_v23 = vld [vmem:[%s9914_s5 + $0x9a4] ss:$168 sps:$4 sm:$0xff]  }
0x128c   :  { %5515 = vmatpush1.bf16.msra.mxu0 %v6620_v26  ;;  %v7602_v26 = vld [vmem:[%s9914_s5 + $0x9a0] ss:$168 sps:$4 sm:$0xff]  }
0x128d   :  { %5516 = vmatprep.subr.bf16.mxu0 %v6625_v28  ;;  %v6595_v28 = vcombine.high %v4763_v24, %v4765_v27 }
0x1290   :  { %5517 = vmatpush1.bf16.msra.mxu0 %v6624_v29  ;;  %v6594_v29 = vcombine.low %v4763_v24, %v4765_v27 }
0x1291   :  { %5518 = vmatprep.subr.bf16.mxu0 %v6629_v30  ;;  %v6599_v30 = vcombine.high %v4767_v38, %v4769_v39 }
0x1294   :  { %5519 = vmatpush1.bf16.msra.mxu0 %v6628_v36  ;;  %v6598_v36 = vcombine.low %v4767_v38, %v4769_v39  ;;  %v4824_v38 = vld [vmem:[%s9922_s6 + $0x3d8] sm:$0xff] }
0x1295   :  { %5520 = vmatprep.subr.bf16.mxu0 %v6633_v37  ;;  %v6603_v37 = vcombine.high %v4771_v31, %v4773_v33 }
0x1298   :  { %5521 = vmatpush1.bf16.msra.mxu0 %v6632_v43  ;;  %v6602_v43 = vcombine.low %v4771_v31, %v4773_v33 }
0x1299   :  { %5522 = vmatprep.subr.bf16.mxu0 %v6637_v46  ;;  %v6607_v46 = vcombine.high %v4775_v40, %v4777_v42 }
0x129c   :  { %5523 = vmatpush1.bf16.msra.mxu0 %v6636_v25 }
0x129d   :  { %5524 = vmatprep.subr.bf16.mxu0 %v6641_v48  ;;  %v4783_v48 = vld [vmem:[%s9922_s6 + $0x150] sm:$0xff] }
0x129e   :  { %v6614_v52 = vcombine.low %v4783_v48, %v4785_v49 }
0x12a0   :  { %5525 = vmatpush1.bf16.msra.mxu0 %v6640_v51  ;;  %v6615_v51 = vcombine.high %v4783_v48, %v4785_v49 }
0x12a1   :  { %5526 = vmatprep.subr.bf16.mxu0 %v6645_v32  ;;  %v4789_v32 = vld [vmem:[%s9922_s6 + $0x1b0] sm:$0xff] }
0x12a4   :  { %5527 = vmatpush1.bf16.msra.mxu0 %v6644_v5  ;;  %v4791_v5 = vld [vmem:[%s9922_s6 + $0x1d0] sm:$0xff] }
0x12a5   :  { %5528 = vmatprep.subr.bf16.mxu0 %v6649_v2  ;;  %v4793_v2 = vld [vmem:[%s9922_s6 + $0x1f0] sm:$0xff] }
0x12a6   :  { %v6623_v16 = vcombine.high %v4791_v5, %v4793_v2 }
0x12a8   :  { %5529 = vmatpush1.bf16.msra.mxu0 %v6648_v56  ;;  %v4795_v56 = vld [vmem:[%s9922_s6 + $0x210] sm:$0xff] }
0x12a9   :  { %5530 = vmatprep.subr.bf16.mxu0 %v6653_v57  ;;  %v4797_v57 = vld [vmem:[%s9922_s6 + $0x230] sm:$0xff] }
0x12ac   :  { %5531 = vmatpush1.bf16.msra.mxu0 %v6652_v60  ;;  %v6622_v60 = vcombine.low %v4791_v5, %v4793_v2  ;;  %v7612_v5 = vld [vmem:[%s9914_s5 + $0x1d8] ss:$168 sps:$4 sm:$0xff]   ;;  %v7615_v2 = vld [vmem:[%s9914_s5 + $0x324] ss:$168 sps:$4 sm:$0xff]  }
0x1326   :  { %v4679_v34 = vpop.f32.mrb[68].mxu0 }
0x1327   :  { %v4681_v61 = vpop.f32.mrb[69].mxu0 }
0x1328   :  { %v4683_v58 = vpop.f32.mrb[70].mxu0 }
0x1329   :  { %v4692_v62 = vpack.c.bf16 %v4683_v58, %v4679_v34  ;;  %v4685_v63 = vpop.f32.mrb[71].mxu0  ;;  %v6627_v34 = vcombine.high %v4795_v56, %v4797_v57  ;;  %v4801_v58 = vld [vmem:[%s9922_s6 + $0x270] sm:$0xff] }
0x132a   :  { %v4693_v11 = vpack.c.bf16 %v4685_v63, %v4681_v61  ;;  %v4799_v61 = vld [vmem:[%s9922_s6 + $0x250] sm:$0xff] }
0x132b   :  { %v6631_v63 = vcombine.high %v4799_v61, %v4801_v58 }
0x132c   :  { %4710 = vmatprep.subr.bf16.mxu1 %v4693_v11  ;;  %v4803_v11 = vld [vmem:[%s9922_s6 + $0x290] sm:$0xff] }
0x132d   :  { %4711 = vmatpush1.bf16.msra.mxu1 %v4692_v62  ;;  %v6626_v62 = vcombine.low %v4795_v56, %v4797_v57  ;;  %v7619_v56 = vld [vmem:[%s9914_s5 + $0x474] ss:$168 sps:$4 sm:$0xff]   ;;  %v7617_v57 = vld [vmem:[%s9914_s5 + $0x470] ss:$168 sps:$4 sm:$0xff]  }
0x132e   :  { %5023 = vmatprep.subr.bf16.mxu1 %v7582_v0  ;;  %v4805_v0 = vld [vmem:[%s9922_s6 + $0x2b0] sm:$0xff] }
0x1330   :  { %6560 = vmatmul.mubr.msk.bf16.vlgmr.msra.gmra.mrb[64].mxu1 %vm1685_vm13, %v7579_v3  ;;  %v6630_v3 = vcombine.low %v4799_v61, %v4801_v58  ;;  %v7621_v61 = vld [vmem:[%s9914_s5 + $0x5c0] ss:$168 sps:$4 sm:$0xff]  }
0x1331   :  { %5024 = vmatpush1.bf16.msra.mxu1 %v7580_v4  ;;  %4752 = vmatprep.mubr.bf16.mxu1 %v7765_v1  ;;  %v6635_v4 = vcombine.high %v4803_v11, %v4805_v0  ;;  %v7624_v58 = vld [vmem:[%s9914_s5 + $0x5c8] ss:$168 sps:$4 sm:$0xff]  }
0x1332   :  { %5025 = vmatprep.subr.bf16.mxu1 %v7585_v8  ;;  %v4807_v8 = vld [vmem:[%s9922_s6 + $0x2d0] sm:$0xff] }
0x1335   :  { %5026 = vmatpush1.bf16.msra.mxu1 %v7583_v12  ;;  %v4809_v12 = vld [vmem:[%s9922_s6 + $0x2f0] sm:$0xff] }
0x1336   :  { %5027 = vmatprep.subr.bf16.mxu1 %v7589_v13  ;;  %v6634_v13 = vcombine.low %v4803_v11, %v4805_v0  ;;  %v7628_v11 = vld [vmem:[%s9914_s5 + $0x718] ss:$168 sps:$4 sm:$0xff]   ;;  %v7631_v0 = vld [vmem:[%s9914_s5 + $0x864] ss:$168 sps:$4 sm:$0xff]  }
0x1338   :  { %6561 = vmatmul.mubr.msk.bf16.gmra.mrb[68].mxu1 %vm1685_vm13, %v7586_v14  ;;  %v6639_v14 = vcombine.high %v4807_v8, %v4809_v12 }
0x1339   :  { %5028 = vmatpush1.bf16.msra.mxu1 %v7587_v15  ;;  %5055 = vmatprep.mubr.bf16.mxu1 %v7765_v1  ;;  %v4811_v15 = vld [vmem:[%s9922_s6 + $0x310] sm:$0xff] }
0x133a   :  { %5029 = vmatprep.subr.bf16.mxu1 %v7592_v17  ;;  %v4813_v17 = vld [vmem:[%s9922_s6 + $0x330] sm:$0xff] }
0x133d   :  { %5030 = vmatpush1.bf16.msra.mxu1 %v7590_v35  ;;  %v6638_v35 = vcombine.low %v4807_v8, %v4809_v12  ;;  %v7635_v8 = vld [vmem:[%s9914_s5 + $0x9b4] ss:$168 sps:$4 sm:$0xff]   ;;  %v7633_v12 = vld [vmem:[%s9914_s5 + $0x9b0] ss:$168 sps:$4 sm:$0xff]  }
0x133e   :  { %5031 = vmatprep.subr.bf16.mxu1 %v7595_v41  ;;  %v6643_v41 = vcombine.high %v4811_v15, %v4813_v17 }
0x1341   :  { %5032 = vmatpush1.bf16.msra.mxu1 %v7593_v18  ;;  %v4815_v18 = vld [vmem:[%s9922_s6 + $0x350] sm:$0xff] }
0x1342   :  { %5033 = vmatprep.subr.bf16.mxu1 %v7598_v19  ;;  %v4817_v19 = vld [vmem:[%s9922_s6 + $0x370] sm:$0xff] }
0x1343   :  { %v6646_v24 = vcombine.low %v4815_v18, %v4817_v19 }
0x1345   :  { %5034 = vmatpush1.bf16.msra.mxu1 %v7596_v20  ;;  %v6642_v20 = vcombine.low %v4811_v15, %v4813_v17 }
0x1346   :  { %5035 = vmatprep.subr.bf16.mxu1 %v7601_v21  ;;  %v6647_v21 = vcombine.high %v4815_v18, %v4817_v19 }
0x1349   :  { %5036 = vmatpush1.bf16.msra.mxu1 %v7599_v22  ;;  %v4819_v22 = vld [vmem:[%s9922_s6 + $0x390] sm:$0xff] }
0x134a   :  { %5037 = vmatprep.subr.bf16.mxu1 %v7604_v23  ;;  %v4821_v23 = vld [vmem:[%s9922_s6 + $0x3b0] sm:$0xff] }
0x134b   :  { %v6651_v27 = vcombine.high %v4819_v22, %v4821_v23  ;;  %v6650_v39 = vcombine.low %v4819_v22, %v4821_v23 }
0x134d   :  { %5038 = vmatpush1.bf16.msra.mxu1 %v7602_v26  ;;  %v4823_v26 = vld [vmem:[%s9922_s6 + $0x3d0] sm:$0xff] }
0x134e   :  { %5449 = vmatprep.subr.bf16.mxu1 %v6595_v28  ;;  %v4825_v28 = vld [vmem:[%s9922_s6 + $0x3f0] sm:$0xff] }
0x1350   :  { %5056 = vmatmul.mubr.bf16.vlgmr.msra.gmra.mrb[72].mxu1 %v8106_v55  ;;  %v4779_v55 = vld [vmem:[%s9922_s6 + $0x110] sm:$0xff] }
0x1351   :  { %5065 = vmatprep.mubr.bf16.mxu1 %v7765_v1  ;;  %5450 = vmatpush1.bf16.msra.mxu1 %v6594_v29  ;;  %v6611_v25 = vcombine.high %v4779_v55, %v4781_v47  ;;  %v6610_v50 = vcombine.low %v4779_v55, %v4781_v47  ;;  %v4826_v29 = vld [vmem:[%s9922_s6 + $0x3f8] sm:$0xff] }
0x1352   :  { %5451 = vmatprep.subr.bf16.mxu1 %v6599_v30  ;;  %v6655_v30 = vcombine.high %v4823_v26, %v4825_v28  ;;  %v6656_v31 = vcombine.low %v4824_v38, %v4826_v29  ;;  %v6657_v33 = vcombine.high %v4824_v38, %v4826_v29 }
0x1354   :  { %5532 = vmatprep.subr.bf16.mxu0 %v6657_v33 }
0x1355   :  { %5452 = vmatpush1.bf16.msra.mxu1 %v6598_v36  ;;  %v6654_v36 = vcombine.low %v4823_v26, %v4825_v28  ;;  %5533 = vmatpush1.bf16.msra.mxu0 %v6656_v31 }
0x1356   :  { %5453 = vmatprep.subr.bf16.mxu1 %v6603_v37 }
0x1358   :  { %5066 = vmatmul.mubr.bf16.gmra.mrb[76].mxu1 %v8104_v54  ;;  %v4787_v54 = vld [vmem:[%s9922_s6 + $0x190] sm:$0xff] }
0x1359   :  { %5454 = vmatpush1.bf16.msra.mxu1 %v6602_v43  ;;  %v6619_v53 = vcombine.high %v4787_v54, %v4789_v32  ;;  %v6618_v59 = vcombine.low %v4787_v54, %v4789_v32  ;;  %v7605_v54 = vld [vmem:[%s9914_s5 + $0x80] ss:$168 sps:$4 sm:$0xff]  }
0x135a   :  { %5455 = vmatprep.subr.bf16.mxu1 %v6607_v46  ;;  %v7608_v32 = vld [vmem:[%s9914_s5 + $0x88] ss:$168 sps:$4 sm:$0xff]  }
0x135b   :  { %7033 = vmatprep.subr.bf16.mxu0 %v7608_v32 }
0x135d   :  { %5456 = vmatpush1.bf16.msra.mxu1 %v6606_v45 }
0x135e   :  { %5457 = vmatprep.subr.bf16.mxu1 %v6611_v25 }
0x1361   :  { %5458 = vmatpush1.bf16.msra.mxu1 %v6610_v50 }
0x1362   :  { %5459 = vmatprep.subr.bf16.mxu1 %v6615_v51  ;;  %v7607_v51 = vld [vmem:[%s9914_s5 + $0x84] ss:$168 sps:$4 sm:$0xff]  }
0x1365   :  { %5460 = vmatpush1.bf16.msra.mxu1 %v6614_v52  ;;  %v7611_v52 = vld [vmem:[%s9914_s5 + $0x1d4] ss:$168 sps:$4 sm:$0xff]  }
0x1366   :  { %5461 = vmatprep.subr.bf16.mxu1 %v6619_v53  ;;  %v7609_v53 = vld [vmem:[%s9914_s5 + $0x1d0] ss:$168 sps:$4 sm:$0xff]  }
0x1369   :  { %5462 = vmatpush1.bf16.msra.mxu1 %v6618_v59  ;;  %v7613_v59 = vld [vmem:[%s9914_s5 + $0x320] ss:$168 sps:$4 sm:$0xff]  }
0x136a   :  { %5463 = vmatprep.subr.bf16.mxu1 %v6623_v16  ;;  %v7616_v16 = vld [vmem:[%s9914_s5 + $0x328] ss:$168 sps:$4 sm:$0xff]  }
0x136d   :  { %5464 = vmatpush1.bf16.msra.mxu1 %v6622_v60  ;;  %v7620_v60 = vld [vmem:[%s9914_s5 + $0x478] ss:$168 sps:$4 sm:$0xff]  }
0x136e   :  { %5465 = vmatprep.subr.bf16.mxu1 %v6627_v34  ;;  %v7623_v34 = vld [vmem:[%s9914_s5 + $0x5c4] ss:$168 sps:$4 sm:$0xff]  }
0x1371   :  { %5466 = vmatpush1.bf16.msra.mxu1 %v6626_v62  ;;  %v7627_v62 = vld [vmem:[%s9914_s5 + $0x714] ss:$168 sps:$4 sm:$0xff]  }
0x1372   :  { %5467 = vmatprep.subr.bf16.mxu1 %v6631_v63  ;;  %v7625_v63 = vld [vmem:[%s9914_s5 + $0x710] ss:$168 sps:$4 sm:$0xff]  }
0x1375   :  { %5468 = vmatpush1.bf16.msra.mxu1 %v6630_v3  ;;  %v7629_v3 = vld [vmem:[%s9914_s5 + $0x860] ss:$168 sps:$4 sm:$0xff]  }
0x1376   :  { %5469 = vmatprep.subr.bf16.mxu1 %v6635_v4  ;;  %v7632_v4 = vld [vmem:[%s9914_s5 + $0x868] ss:$168 sps:$4 sm:$0xff]  }
0x1379   :  { %5470 = vmatpush1.bf16.msra.mxu1 %v6634_v13  ;;  %v7636_v13 = vld [vmem:[%s9914_s5 + $0x9b8] ss:$168 sps:$4 sm:$0xff]  }
0x137a   :  { %5471 = vmatprep.subr.bf16.mxu1 %v6639_v14 }
0x137d   :  { %5472 = vmatpush1.bf16.msra.mxu1 %v6638_v35 }
0x137e   :  { %5473 = vmatprep.subr.bf16.mxu1 %v6643_v41 }
0x1381   :  { %5474 = vmatpush1.bf16.msra.mxu1 %v6642_v20 }
0x1382   :  { %5475 = vmatprep.subr.bf16.mxu1 %v6647_v21 }
0x1385   :  { %5476 = vmatpush1.bf16.msra.mxu1 %v6646_v24 }
0x1386   :  { %5477 = vmatprep.subr.bf16.mxu1 %v6651_v27 }
0x1389   :  { %5478 = vmatpush1.bf16.msra.mxu1 %v6650_v39 }
0x138a   :  { %5479 = vmatprep.subr.bf16.mxu1 %v6655_v30 }
0x138d   :  { %5480 = vmatpush1.bf16.msra.mxu1 %v6654_v36 }
0x138e   :  { %5792 = vmatprep.subr.bf16.mxu1 %v7607_v51 }
0x1403   :  { %v4744_v37 = vpop.f32.mrb[64].mxu1 }
0x1404   :  { %v4746_v40 = vpop.f32.mrb[65].mxu1 }
0x1405   :  { %v4748_v42 = vpop.f32.mrb[66].mxu1 }
0x1406   :  { %v4827_v43 = vpack.c.bf16 %v4748_v42, %v4744_v37  ;;  %v4750_v46 = vpop.f32.mrb[67].mxu1 }
0x1407   :  { %v4828_v55 = vpack.c.bf16 %v4750_v46, %v4746_v40 }
0x1409   :  { %5481 = vmatprep.mubr.bf16.mxu1 %v4828_v55  ;;  %5534 = vmatprep.mubr.bf16.mxu0 %v4828_v55 }
0x140a   :  { %5482 = vmatmul.mubr.bf16.vlgmr.msra.gmra.mrb[72].mxu1 %v4827_v43  ;;  %5535 = vmatmul.mubr.bf16.vlgmr.msra.gmra.mrb[72].mxu0 %v4827_v43 }
0x140b   :  { %v4754_v47 = vpop.f32.mrb[68].mxu1  ;;  %5793 = vmatpush1.bf16.msra.mxu1 %v7605_v54  ;;  %7034 = vmatpush3.bf16.msra.mxu0 %v7608_v32 }
0x140c   :  { %v4756_v45 = vpop.f32.mrb[69].mxu1  ;;  %5794 = vmatprep.subr.bf16.mxu1 %v7611_v52  ;;  %7035 = vmatprep.subr.bf16.mxu0 %v7612_v5 }
0x140d   :  { %v4758_v25 = vpop.f32.mrb[70].mxu1 }
0x140e   :  { %v4829_v48 = vpack.c.bf16 %v4758_v25, %v4754_v47  ;;  %v4760_v49 = vpop.f32.mrb[71].mxu1 }
0x140f   :  { %v4830_v50 = vpack.c.bf16 %v4760_v49, %v4756_v45  ;;  %5795 = vmatpush1.bf16.msra.mxu1 %v7609_v53  ;;  %7036 = vmatpush3.bf16.msra.mxu0 %v7612_v5  ;;  %v6658_v49 = vld [vmem:[%s9915_s7 + $0x10] ss:$0 sm:$0xff] }
0x1410   :  { %5796 = vmatprep.subr.bf16.mxu1 %v7615_v2  ;;  %7037 = vmatprep.subr.bf16.mxu0 %v7616_v16 }
0x1411   :  { %5491 = vmatprep.mubr.bf16.mxu1 %v4830_v50  ;;  %5544 = vmatprep.mubr.bf16.mxu0 %v4830_v50 }
0x1412   :  { %5492 = vmatmul.mubr.bf16.gmra.mrb[76].mxu1 %v4829_v48  ;;  %5545 = vmatmul.mubr.bf16.gmra.mrb[76].mxu0 %v4829_v48 }
0x1413   :  { %5824 = vmatprep.mubr.bf16.mxu1 %v7765_v1  ;;  %5797 = vmatpush1.bf16.msra.mxu1 %v7613_v59 }
0x1414   :  { %7038 = vmatpush3.bf16.msra.mxu0 %v7616_v16  ;;  %5798 = vmatprep.subr.bf16.mxu1 %v7619_v56 }
0x1415   :  { %7039 = vmatprep.subr.bf16.mxu0 %v7620_v60 }
0x1417   :  { %5799 = vmatpush1.bf16.msra.mxu1 %v7617_v57 }
0x1418   :  { %7040 = vmatpush3.bf16.msra.mxu0 %v7620_v60  ;;  %5800 = vmatprep.subr.bf16.mxu1 %v7623_v34 }
0x1419   :  { %7041 = vmatprep.subr.bf16.mxu0 %v7624_v58 }
0x141b   :  { %5801 = vmatpush1.bf16.msra.mxu1 %v7621_v61 }
0x141c   :  { %7042 = vmatpush3.bf16.msra.mxu0 %v7624_v58  ;;  %5802 = vmatprep.subr.bf16.mxu1 %v7627_v62 }
0x141d   :  { %7043 = vmatprep.subr.bf16.mxu0 %v7628_v11 }
0x141f   :  { %5803 = vmatpush1.bf16.msra.mxu1 %v7625_v63 }
0x1420   :  { %7044 = vmatpush3.bf16.msra.mxu0 %v7628_v11  ;;  %5804 = vmatprep.subr.bf16.mxu1 %v7631_v0 }
0x1421   :  { %7045 = vmatprep.subr.bf16.mxu0 %v7632_v4 }
0x1423   :  { %5805 = vmatpush1.bf16.msra.mxu1 %v7629_v3 }
0x1424   :  { %7046 = vmatpush3.bf16.msra.mxu0 %v7632_v4  ;;  %5806 = vmatprep.subr.bf16.mxu1 %v7635_v8 }
0x1425   :  { %7047 = vmatprep.subr.bf16.mxu0 %v7636_v13 }
0x1427   :  { %5807 = vmatpush1.bf16.msra.mxu1 %v7633_v12 }
0x1428   :  { %7048 = vmatpush3.bf16.msra.mxu0 %v7636_v13 }
0x14dd   :  { %v5483_v14 = vpop.f32.mrb[72].mxu1  ;;  %v5536_v15 = vpop.f32.mrb[72].mxu0 }
0x14de   :  { %v5485_v17 = vpop.f32.mrb[73].mxu1  ;;  %v9799_v35 = vpop.f32.mrb[73].mxu0  ;;  %v5556_v19 = vrot.slane %v5483_v14, 7  ;;  %v5568_v20 = vrot.slane %v5536_v15, 1 }
0x14df   :  { %v5487_v41 = vpop.f32.mrb[74].mxu1  ;;  %v5540_v18 = vpop.f32.mrb[74].mxu0 }
0x14e0   :  { %v5557_v21 = vrot.slane %v5487_v41, 7  ;;  %v5569_v22 = vrot.slane %v5540_v18, 1  ;;  %v5489_v23 = vpop.f32.mrb[75].mxu1  ;;  %v9801_v24 = vpop.f32.mrb[75].mxu0 }
0x14e2   :  { %v5574_v27 = vsel %vm429_vm2, %v5568_v20, %v5569_v22  ;;  %v5562_v26 = vsel %vm416_vm1, %v5556_v19, %v5557_v21 }
0x14e3   :  { %v5581_v28 = vadd.f32 %v5562_v26, %v5489_v23 }
0x14e5   :  { %v5493_v38 = vpop.f32.mrb[76].mxu1  ;;  %v5546_v39 = vpop.f32.mrb[76].mxu0 }
0x14e6   :  { %v5558_v29 = vrot.slane %v5493_v38, 7  ;;  %v5570_v30 = vrot.slane %v5546_v39, 1  ;;  %v5495_v31 = vpop.f32.mrb[77].mxu1  ;;  %v9807_v33 = vpop.f32.mrb[77].mxu0  ;;  %v180_v38 = vld [vmem:[%s9916_s1 + $0x18] sm:$0xff] }
0x14e7   :  { %v5497_v36 = vpop.f32.mrb[78].mxu1  ;;  %v5550_v37 = vpop.f32.mrb[78].mxu0 }
0x14e8   :  { %v5573_v40 = vsel %vm429_vm2, %v5569_v22, %v5570_v30  ;;  %v5561_v42 = vsel %vm416_vm1, %v5557_v21, %v5558_v29  ;;  %v5559_v43 = vrot.slane %v5497_v36, 7  ;;  %v5571_v46 = vrot.slane %v5550_v37, 1  ;;  %v5499_v55 = vpop.f32.mrb[79].mxu1  ;;  %v9813_v47 = vpop.f32.mrb[79].mxu0  ;;  %v184_v22 = vld [vmem:[%s9916_s1 + $0x38] sm:$0xff] }
0x14e9   :  { %v5577_v45 = vmul.f32 %v7999_v6, %v5573_v40  ;;  %v5566_v25 = vmul.f32 %v8004_v7, %v5561_v42  ;;  %v7637_v42 = vld [vmem:[%s9914_s5 + $0xa4] ss:$168 sps:$4 sm:$0xff]  }
0x14ea   :  { %v5563_v48 = vsel %vm416_vm1, %v5559_v43, %v5556_v19  ;;  %v5572_v50 = vsel %vm429_vm2, %v5570_v30, %v5571_v46  ;;  %v5575_v51 = vsel %vm429_vm2, %v5571_v46, %v5568_v20  ;;  %v5560_v54 = vsel %vm416_vm1, %v5558_v29, %v5559_v43  ;;  %v182_v19 = vld [vmem:[%s9916_s1 + $0x28] sm:$0xff]  ;;  %7053 = vmatprep.subr.bf16.mxu1 %v7637_v42  ;;  %v7638_v43 = vld [vmem:[%s9914_s5 + $0x1f4] ss:$168 sps:$4 sm:$0xff]  }
0x14eb   :  { %v5585_v32 = vadd.f32 %v5581_v28, %v5577_v45  ;;  %v5582_v52 = vadd.f32 %v5566_v25, %v5495_v31  ;;  %v5564_v53 = vmul.f32 %v8007_v9, %v5563_v48  ;;  %v5579_v5 = vmul.f32 %v8010_v10, %v5575_v51  ;;  %v178_v28 = vld [vmem:[%s9916_s1 + $0x8] sm:$0xff]  ;;  %v7642_v45 = vld [vmem:[%s9914_s5 + $0x734] ss:$168 sps:$4 sm:$0xff]  }
0x14ec   :  { %v5583_v2 = vadd.f32 %v5560_v54, %v5499_v55  ;;  %v7639_v46 = vld [vmem:[%s9914_s5 + $0x344] ss:$168 sps:$4 sm:$0xff]   ;;  %v7644_v48 = vld [vmem:[%s9914_s5 + $0x9d4] ss:$168 sps:$4 sm:$0xff]  }
0x14ed   :  { %v5580_v59 = vadd.f32 %v5564_v53, %v5485_v17  ;;  %v5586_v16 = vadd.f32 %v5582_v52, %v5572_v50  ;;  %v5595_v56 = vadd.f32 %v6658_v49, %v5585_v32  ;;  %v7641_v55 = vld [vmem:[%s9914_s5 + $0x5e4] ss:$168 sps:$4 sm:$0xff]  }
0x14ee   :  { %v5587_v57 = vadd.f32 %v5583_v2, %v5579_v5  ;;  %v7643_v25 = vld [vmem:[%s9914_s5 + $0x884] ss:$168 sps:$4 sm:$0xff]  }
0x14ef   :  { %v5584_v60 = vadd.f32 %v5580_v59, %v5574_v27  ;;  %v5596_v34 = vadd.f32 %v6658_v49, %v5586_v16  ;;  %v6660_v61 = vmul.f32 -1.442695, %v5595_v56 }
0x14f0   :  { %v5597_v58 = vadd.f32 %v6658_v49, %v5587_v57 }
0x14f1   :  { %v5594_v62 = vadd.f32 %v6658_v49, %v5584_v60  ;;  %7733 = vpow2.f32 %v6660_v61  ;;  %v6661_v63 = vmul.f32 -1.442695, %v5596_v34 }
0x14f2   :  { %v6662_v11 = vmul.f32 -1.442695, %v5597_v58 }
0x14f3   :  { %v6659_v0 = vmul.f32 -1.442695, %v5594_v62  ;;  %7735 = vpow2.f32 %v6661_v63 }
0x14f4   :  { %7737 = vpow2.f32 %v6662_v11 }
0x14f5   :  { %7739 = vpow2.f32 %v6659_v0 }
0x14fb   :  { %v7734_v3 = vpop.eup %7733 }
0x14fc   :  { %v5611_v4 = vadd.f32 1.0, %v7734_v3 }
0x14fd   :  { %v7736_v8 = vpop.eup %7735 }
0x14fe   :  { %v7738_v12 = vpop.eup %7737  ;;  %v5612_v13 = vadd.f32 1.0, %v7736_v8  ;;  %7741 = vrcp.f32 %v5611_v4 }
0x14ff   :  { %v7740_v14 = vpop.eup %7739  ;;  %v5613_v15 = vadd.f32 1.0, %v7738_v12  ;;  %v6687_v12 = vld [vmem:[%s9915_s7 + $0x11] ss:$0 sm:$0xff] }
0x1500   :  { %v5610_v17 = vadd.f32 1.0, %v7740_v14  ;;  %7743 = vrcp.f32 %v5612_v13 }
0x1501   :  { %7745 = vrcp.f32 %v5613_v15 }
0x1502   :  { %7747 = vrcp.f32 %v5610_v17 }
0x1508   :  { %v7742_v41 = vpop.eup %7741 }
0x1509   :  { %v5623_v23 = vmul.f32 %v7742_v41, %v5595_v56 }
0x150a   :  { %v7744_v18 = vpop.eup %7743 }
0x150b   :  { %v7746_v20 = vpop.eup %7745  ;;  %v5624_v21 = vmul.f32 %v7744_v18, %v5596_v34  ;;  %v5627_v36 = vadd.f32 %v5623_v23, %v180_v38 }
0x150c   :  { %v7748_v27 = vpop.eup %7747  ;;  %v5625_v26 = vmul.f32 %v7746_v20, %v5597_v58 }
0x150d   :  { %v5628_v39 = vadd.f32 %v5624_v21, %v182_v19  ;;  %v5622_v29 = vmul.f32 %v7748_v27, %v5594_v62 }
0x150e   :  { %v5629_v30 = vadd.f32 %v5625_v26, %v184_v22 }
0x150f   :  { %v5626_v31 = vadd.f32 %v5622_v29, %v178_v28 }
0x1510   :  { %v5663_v37 = vpack.c.bf16 %v5629_v30, %v5628_v39 }
0x1511   :  { %v5662_v40 = vpack.c.bf16 %v5627_v36, %v5626_v31 }
0x1513   :  { %5825 = vmatmul.mubr.bf16.vlgmr.msra.gmra.mrb[80].mxu1 %v5662_v40  ;;  %7049 = vmatprep.mubr.bf16.mxu0 %v5662_v40 }
0x1514   :  { %7050 = vmatmul.mubr.bf16.vlgmr.msra.gmra.mrb[80].mxu0 %v5663_v37  ;;  %5834 = vmatprep.mubr.bf16.mxu1 %v7765_v1  ;;  %v7640_v1 = vld [vmem:[%s9914_s5 + $0x494] ss:$168 sps:$4 sm:$0xff]  }
0x1515   :  { %7054 = vmatpush3.bf16.msra.mxu1 %v7637_v42 }
0x1516   :  { %7055 = vmatprep.subr.bf16.mxu1 %v7638_v43 }
0x1519   :  { %7056 = vmatpush3.bf16.msra.mxu1 %v7638_v43 }
0x151a   :  { %7057 = vmatprep.subr.bf16.mxu1 %v7639_v46 }
0x151b   :  { %5835 = vmatmul.mubr.bf16.gmra.mrb[84].mxu1 %v5663_v37 }
0x151d   :  { %7058 = vmatpush3.bf16.msra.mxu1 %v7639_v46 }
0x151e   :  { %7059 = vmatprep.subr.bf16.mxu1 %v7640_v1 }
0x1521   :  { %7060 = vmatpush3.bf16.msra.mxu1 %v7640_v1 }
0x1522   :  { %7061 = vmatprep.subr.bf16.mxu1 %v7641_v55 }
0x1525   :  { %7062 = vmatpush3.bf16.msra.mxu1 %v7641_v55 }
0x1526   :  { %7063 = vmatprep.subr.bf16.mxu1 %v7642_v45 }
0x1529   :  { %7064 = vmatpush3.bf16.msra.mxu1 %v7642_v45 }
0x152a   :  { %7065 = vmatprep.subr.bf16.mxu1 %v7643_v25 }
0x152d   :  { %7066 = vmatpush3.bf16.msra.mxu1 %v7643_v25 }
0x152e   :  { %7067 = vmatprep.subr.bf16.mxu1 %v7644_v48 }
0x1531   :  { %7068 = vmatpush3.bf16.msra.mxu1 %v7644_v48 }
0x15e6   :  { %v5826_v49 = vpop.f32.mrb[80].mxu1 }
0x15e7   :  { %v5828_v50 = vpop.f32.mrb[81].mxu1  ;;  %v7051_v51 = vpop.f32.mrb[80].mxu0  ;;  %v5895_v52 = vrot.slane %v5826_v49, 7 }
0x15e8   :  { %v5830_v54 = vpop.f32.mrb[82].mxu1  ;;  %v5879_v32 = vpop.f32.mrb[81].mxu0  ;;  %v5909_v16 = vrot.slane %v7051_v51, 1 }
0x15e9   :  { %v5896_v53 = vrot.slane %v5830_v54, 7  ;;  %v5907_v5 = vrot.slane %v5879_v32, 1  ;;  %v5832_v2 = vpop.f32.mrb[83].mxu1  ;;  %v7052_v59 = vpop.f32.mrb[82].mxu0 }
0x15ea   :  { %v5910_v56 = vrot.slane %v7052_v59, 1  ;;  %v5882_v57 = vpop.f32.mrb[83].mxu0 }
0x15eb   :  { %v5901_v60 = vsel %vm416_vm1, %v5895_v52, %v5896_v53  ;;  %v5908_v34 = vrot.slane %v5882_v57, 1 }
0x15ec   :  { %v5920_v61 = vadd.f32 %v5901_v60, %v5832_v2  ;;  %v5914_v58 = vsel %vm429_vm2, %v5910_v56, %v5907_v5  ;;  %v5911_v62 = vsel %vm429_vm2, %v5909_v16, %v5910_v56  ;;  %v6692_v2 = vld [vmem:[%s9915_s7 + $0x12] ss:$0 sm:$0xff] }
0x15ed   :  { %v5912_v63 = vsel %vm429_vm2, %v5908_v34, %v5909_v16  ;;  %v5913_v11 = vsel %vm429_vm2, %v5907_v5, %v5908_v34  ;;  %v5918_v21 = vmul.f32 %v8010_v10, %v5914_v58 }
0x15ee   :  { %v5916_v0 = vmul.f32 %v7999_v6, %v5912_v63  ;;  %v5836_v3 = vpop.f32.mrb[84].mxu1 }
0x15ef   :  { %v5897_v4 = vrot.slane %v5836_v3, 7  ;;  %v5838_v8 = vpop.f32.mrb[85].mxu1 }
0x15f0   :  { %v5924_v13 = vadd.f32 %v5920_v61, %v5916_v0  ;;  %v5840_v14 = vpop.f32.mrb[86].mxu1 }
0x15f1   :  { %v5900_v15 = vsel %vm416_vm1, %v5896_v53, %v5897_v4  ;;  %v5898_v17 = vrot.slane %v5840_v14, 7  ;;  %v5842_v41 = vpop.f32.mrb[87].mxu1 }
0x15f2   :  { %v5905_v18 = vmul.f32 %v8004_v7, %v5900_v15  ;;  %v5934_v19 = vadd.f32 %v6687_v12, %v5924_v13 }
0x15f3   :  { %v5902_v6 = vsel %vm416_vm1, %v5898_v17, %v5895_v52  ;;  %v5899_v20 = vsel %vm416_vm1, %v5897_v4, %v5898_v17 }
0x15f4   :  { %v5921_v22 = vadd.f32 %v5905_v18, %v5838_v8  ;;  %v5903_v23 = vmul.f32 %v8007_v9, %v5902_v6  ;;  %v5922_v27 = vadd.f32 %v5899_v20, %v5842_v41  ;;  %v6689_v26 = vmul.f32 -1.442695, %v5934_v19 }
0x15f6   :  { %v5925_v28 = vadd.f32 %v5921_v22, %v5911_v62  ;;  %v5919_v38 = vadd.f32 %v5903_v23, %v5828_v50  ;;  %v5926_v39 = vadd.f32 %v5922_v27, %v5918_v21  ;;  %7749 = vpow2.f32 %v6689_v26 }
0x15f8   :  { %v5935_v29 = vadd.f32 %v6687_v12, %v5925_v28  ;;  %v5923_v7 = vadd.f32 %v5919_v38, %v5913_v11  ;;  %v5936_v30 = vadd.f32 %v6687_v12, %v5926_v39 }
0x15fa   :  { %v6690_v31 = vmul.f32 -1.442695, %v5935_v29  ;;  %v6691_v36 = vmul.f32 -1.442695, %v5936_v30  ;;  %v5933_v37 = vadd.f32 %v6687_v12, %v5923_v7 }
0x15fc   :  { %7751 = vpow2.f32 %v6690_v31  ;;  %v6688_v44 = vmul.f32 -1.442695, %v5933_v37 }
0x15fd   :  { %7753 = vpow2.f32 %v6691_v36 }
0x15fe   :  { %7755 = vpow2.f32 %v6688_v44 }
0x1600   :  { %v7750_v10 = vpop.eup %7749 }
0x1601   :  { %v5950_v40 = vadd.f32 1.0, %v7750_v10 }
0x1603   :  { %7757 = vrcp.f32 %v5950_v40 }
0x1606   :  { %v7752_v9 = vpop.eup %7751 }
0x1607   :  { %v7754_v42 = vpop.eup %7753  ;;  %v5951_v43 = vadd.f32 1.0, %v7752_v9 }
0x1608   :  { %v7756_v46 = vpop.eup %7755  ;;  %v5952_v1 = vadd.f32 1.0, %v7754_v42 }
0x1609   :  { %7759 = vrcp.f32 %v5951_v43  ;;  %v5949_v55 = vadd.f32 1.0, %v7756_v46 }
0x160a   :  { %7761 = vrcp.f32 %v5952_v1 }
0x160b   :  { %7763 = vrcp.f32 %v5949_v55 }
0x160d   :  { %v7758_v45 = vpop.eup %7757 }
0x160e   :  { %v5962_v25 = vmul.f32 %v7758_v45, %v5934_v19 }
0x1610   :  { %v5966_v48 = vadd.f32 %v5962_v25, %v9801_v24 }
0x1612   :  { %v5977_v24 = vadd.f32 %v6692_v2, %v5966_v48 }
0x1613   :  { %v7760_v49 = vpop.eup %7759 }
0x1614   :  { %v7762_v50 = vpop.eup %7761  ;;  %v5963_v51 = vmul.f32 %v7760_v49, %v5935_v29 }
0x1615   :  { %v7764_v54 = vpop.eup %7763  ;;  %v5964_v32 = vmul.f32 %v7762_v50, %v5936_v30 }
0x1616   :  { %v5967_v52 = vadd.f32 %v5963_v51, %v9807_v33  ;;  %v5961_v53 = vmul.f32 %v7764_v54, %v5933_v37  ;;  %v6693_v33 = vld [vmem:[%s9915_s7 + $0x13] ss:$0 sm:$0xff] }
0x1617   :  { %v5968_v5 = vadd.f32 %v5964_v32, %v9813_v47 }
0x1618   :  { %v5965_v59 = vadd.f32 %v5961_v53, %v9799_v35  ;;  %v5978_v16 = vadd.f32 %v6692_v2, %v5967_v52 }
0x1619   :  { %v5979_v56 = vadd.f32 %v6692_v2, %v5968_v5 }
0x161a   :  { %v5976_v57 = vadd.f32 %v6692_v2, %v5965_v59 }
0x161b   :  { %v5997_v60 = vpack.c.bf16 %v5979_v56, %v5978_v16 }
0x161c   :  { %v5996_v34 = vpack.c.bf16 %v5977_v24, %v5976_v57 }
0x161e   :  { %7069 = vmatprep.mubr.bf16.mxu1 %v5996_v34 }
0x161f   :  { %7070 = vmatmul.mubr.bf16.vlgmr.msra.gmra.mrb[88].mxu1 %v5997_v60 }
0x16f2   :  { %v7071_v61 = vpop.f32.mrb[88].mxu1 }
0x16f3   :  { %v6096_v47 = vadd.f32 %v7071_v61, %v6693_v33  ;;  %v6087_v58 = vpop.f32.mrb[89].mxu1 }
0x16f4   :  { %v6088_v62 = vadd.f32 %v6693_v33, %v6087_v58  ;;  %v7072_v63 = vpop.f32.mrb[90].mxu1 }
0x16f5   :  { %6104 = vst [vmem:[%s9924_s12 + $0x10] sm:$0xff] %v6096_v47  ;;  %v6099_v35 = vadd.f32 %v7072_v63, %v6693_v33  ;;  %v6090_v11 = vpop.f32.mrb[91].mxu1 }
0x16f6   :  { %6102 = vst [vmem:[%s9924_s12] sm:$0xff] %v6088_v62  ;;  %v6091_v0 = vadd.f32 %v6693_v33, %v6090_v11 }
0x16f7   :  { %6105 = vst [vmem:[%s9924_s12 + $0x18] sm:$0xff] %v6099_v35 }
0x16f8   :  { %6103 = vst [vmem:[%s9924_s12 + $0x8] sm:$0xff] %v6091_v0 }

</bundles_post_ra>
